<compile_context>
chip_gen: v5e
topology: v5e:2x2
jax: 0.10.0
libtpu: 0.0.40
codegen_flags: <defaults>
</compile_context>

<pallas_src>
import functools
import math

import jax
import jax.numpy as jnp
import numpy as np
from jax import lax
from jax.experimental import pallas as pl
from jax.experimental.pallas import tpu as pltpu


# ----------------------------------------------------------------------------
# Small helpers: tile-padded sizes, chip VMEM budget, time-chunk picker.
# ----------------------------------------------------------------------------
def _round_up(x, m):
    return (x + m - 1) // m * m


def _padded_bytes(shape, dtype):
    """VMEM bytes of `shape` after (sublane, lane) tile padding."""
    itemsize = jnp.dtype(dtype).itemsize
    sub = 8 * (4 // itemsize)            # 8 rows for f32, 16 for bf16
    dims = [1, 1] + list(shape)
    dims[-1] = _round_up(dims[-1], 128)
    dims[-2] = _round_up(dims[-2], sub)
    return int(np.prod(dims)) * itemsize


def _vmem_caps():
    """(vmem_limit_bytes, per-layer chunk budget); conservative 64 MiB (v7x)
    fallback if the hardware query is unavailable."""
    cap = 64 * 1024 * 1024
    try:
        info = pltpu.get_tpu_info()
        cap = int(getattr(info, "vmem_capacity_bytes", cap))
    except Exception:
        pass
    limit = min(max(int(0.70 * cap), 32 * 1024 * 1024), 100 * 1024 * 1024)
    budget = min(max(int(0.40 * cap), 16 * 1024 * 1024), 64 * 1024 * 1024)
    return limit, budget


def _layer_vmem_bytes(Tc, Bp, dins, H, dim, n_fc, last_layer):
    """Tile-padding-aware VMEM estimate for one fused bidirectional layer call
    (double-buffered pipeline blocks + scratch)."""
    rows = Tc * Bp
    bf16, f32 = jnp.bfloat16, jnp.float32
    nb = 0
    for d_s in dins:
        nb += 2 * 2 * 2 * _padded_bytes((rows, d_s), bf16)   # 2 time pos, 2 buf
        nb += 2 * _padded_bytes((2, d_s, 4 * H), bf16)       # W_ih^T part
    nb += 2 * _padded_bytes((2, H, 4 * H), bf16)             # W_hh^T
    nb += 2 * _padded_bytes((2, 1, 4 * H), f32)              # bias
    nb += 2 * 2 * _padded_bytes((2, Bp, H), f32)             # h0, c0
    nb += 2 * 2 * _padded_bytes((2, Bp, H), f32)             # h_N, c_N outputs
    if last_layer:
        nb += 2 * _padded_bytes((Bp, dim), f32)              # fused head output
        nb += 2 * 2 * _padded_bytes((H, dim), bf16)          # pair-sum matrices
        nb += 2 * n_fc * (_padded_bytes((dim, dim), bf16)
                          + _padded_bytes((1, dim), f32))    # fc weights
        nb += _padded_bytes((2, Bp, H), f32)                 # bound scratch
    else:
        nb += 2 * 2 * _padded_bytes((rows, H), bf16)         # state outputs
    nb += 2 * _padded_bytes((2, Bp, H), f32)                 # h/c scratch
    nb += 2 * _padded_bytes((rows, 4 * H), f32)              # hoisted-gate scratch
    return nb


def _pick_time_chunk(T, Bp, dins, H, dim, n_fc, last_layer, budget,
                     override=None):
    divisors = [tc for tc in range(1, T + 1) if T % tc == 0]
    if override is not None:
        assert override in divisors, "time_chunk must divide T"
        return override
    fitting = [tc for tc in divisors
               if _layer_vmem_bytes(tc, Bp, dins, H, dim, n_fc,
                                    last_layer) <= budget]
    # TODO(synk): allow non-divisor chunks (remainder step) for awkward T.
    return max(fitting) if fitting else 1


# ----------------------------------------------------------------------------
# Fused bidirectional LSTM layer kernel (both directions per grid step).
# ----------------------------------------------------------------------------
def _bilstm_fused_kernel(*refs, n_streams, n_fc, Tc, Bp, H, dim, last_layer,
                         unroll):
    """One bidirectional LSTM layer; fwd and bwd recurrences interleaved.

    Grid = (NT,) time chunks marked "arbitrary" (strictly sequential): h/c and
    the bottleneck boundary states live in VMEM scratch across chunks and
    h_N/c_N/out use constant output block indices.  Do NOT reorder grid axes
    or mark this axis "parallel" — that would silently corrupt the carry.
    """
    ix = 0
    xf = refs[ix:ix + n_streams]; ix += n_streams        # chunks @ fwd time blk
    xb = refs[ix:ix + n_streams]; ix += n_streams        # chunks @ bwd time blk
    h0_ref, c0_ref = refs[ix], refs[ix + 1]; ix += 2
    wih = refs[ix:ix + n_streams]; ix += n_streams       # (2, din_s, 4H) bf16
    whh_ref, b_ref = refs[ix], refs[ix + 1]; ix += 2
    if last_layer:
        pf_ref, pb_ref = refs[ix], refs[ix + 1]; ix += 2
        fc_refs = refs[ix:ix + 2 * n_fc]; ix += 2 * n_fc
        out_ref, hN_ref, cN_ref = refs[ix:ix + 3]; ix += 3
        sf_out = sb_out = None
    else:
        sf_out, sb_out, hN_ref, cN_ref = refs[ix:ix + 4]; ix += 4
    h_sc, c_sc, gxf_sc, gxb_sc = refs[ix:ix + 4]; ix += 4
    bound_sc = refs[ix] if last_layer else None

    tc = pl.program_id(0)
    nt = pl.num_programs(0)

    @pl.when(tc == 0)
    def _init():
        h_sc[...] = h0_ref[...]
        c_sc[...] = c0_ref[...]

    # Hoisted input projection: one big bf16 MXU matmul per stream & direction
    # for the whole chunk; kept flat in f32 scratch (no repack loop) and read
    # back with 8-aligned pl.ds slices inside the recurrence.
    gf = b_ref[0]
    gb = b_ref[1]
    for s in range(n_streams):
        gf = gf + jnp.dot(xf[s][...], wih[s][0],
                          preferred_element_type=jnp.float32)
        gb = gb + jnp.dot(xb[s][...], wih[s][1],
                          preferred_element_type=jnp.float32)
    gxf_sc[...] = gf
    gxb_sc[...] = gb

    whh_f = whh_ref[0]                                   # (H, 4H) bf16
    whh_b = whh_ref[1]

    def gates_to_state(g, c_prev):
        i = jax.nn.sigmoid(g[:, 0 * H:1 * H])
        f = jax.nn.sigmoid(g[:, 1 * H:2 * H])
        gg = jnp.tanh(g[:, 2 * H:3 * H])
        o = jax.nn.sigmoid(g[:, 3 * H:4 * H])
        c = f * c_prev + i * gg
        h = o * jnp.tanh(c)
        return h, c

    def step(p, carry):
        h_f, c_f, h_b, c_b = carry                       # all f32 (Bp, H)
        rf = pl.multiple_of(p * Bp, 8)                   # fwd local time p
        rb = pl.multiple_of((Tc - 1 - p) * Bp, 8)        # bwd local time Tc-1-p
        g_f = gxf_sc[pl.ds(rf, Bp), :] + jnp.dot(
            h_f.astype(jnp.bfloat16), whh_f, preferred_element_type=jnp.float32)
        g_b = gxb_sc[pl.ds(rb, Bp), :] + jnp.dot(
            h_b.astype(jnp.bfloat16), whh_b, preferred_element_type=jnp.float32)
        h_f, c_f = gates_to_state(g_f, c_f)
        h_b, c_b = gates_to_state(g_b, c_b)
        if last_layer:
            # Only the first processed step per direction feeds the bottleneck;
            # the full (T, B, H) last-layer states never touch HBM.
            @pl.when(jnp.logical_and(tc == 0, p == 0))
            def _first():
                bound_sc[0] = h_f
                bound_sc[1] = h_b
        else:
            sf_out[pl.ds(rf, Bp), :] = h_f.astype(sf_out.dtype)
            sb_out[pl.ds(rb, Bp), :] = h_b.astype(sb_out.dtype)
        return h_f, c_f, h_b, c_b

    h_f, c_f, h_b, c_b = lax.fori_loop(
        0, Tc, step, (h_sc[0], c_sc[0], h_sc[1], c_sc[1]), unroll=unroll)
    h_sc[0] = h_f
    c_sc[0] = c_f
    h_sc[1] = h_b
    c_sc[1] = c_b

    @pl.when(tc == nt - 1)                               # guarded final stores
    def _finalize():
        hN_ref[0] = h_f
        hN_ref[1] = h_b
        cN_ref[0] = c_f
        cN_ref[1] = c_b
        if last_layer:
            # Fused 'add' bottleneck + fc head: the adjacent-pair feature sum
            # is a matmul with a constant 0/1 matrix (no in-kernel reshape).
            v_f = (bound_sc[0] + h_f).astype(jnp.bfloat16)
            v_b = (bound_sc[1] + h_b).astype(jnp.bfloat16)
            y = (jnp.dot(v_f, pf_ref[...], preferred_element_type=jnp.float32)
                 + jnp.dot(v_b, pb_ref[...], preferred_element_type=jnp.float32))
            for i in range(n_fc):
                w = fc_refs[2 * i][...]
                bb = fc_refs[2 * i + 1][...]
                y = jnp.dot(y.astype(jnp.bfloat16), w,
                            preferred_element_type=jnp.float32) + bb
                if i < n_fc - 1:
                    y = jnp.tanh(y)
            out_ref[...] = y.astype(out_ref.dtype)


def _bilstm_layer(streams, h0, c0, wih_parts, whh, bias, *, T, Bp, H, dim, Tc,
                  last_layer, head, vmem_limit):
    """streams: list of (T*Bp, din_s) bf16 time-major-flattened activations."""
    NT = T // Tc
    rows = Tc * Bp
    n_streams = len(streams)

    inputs, in_specs = [], []
    for s in streams:                       # chunks the forward chain consumes
        inputs.append(s)
        in_specs.append(pl.BlockSpec((rows, int(s.shape[1])),
                                     lambda tc: (tc, 0)))
    for s in streams:                       # chunks the backward chain consumes
        inputs.append(s)
        in_specs.append(pl.BlockSpec((rows, int(s.shape[1])),
                                     lambda tc: (NT - 1 - tc, 0)))
    inputs += [h0, c0]
    in_specs += [pl.BlockSpec((2, Bp, H), lambda tc: (0, 0, 0)),
                 pl.BlockSpec((2, Bp, H), lambda tc: (0, 0, 0))]
    for w in wih_parts:
        inputs.append(w)
        in_specs.append(pl.BlockSpec(tuple(w.shape), lambda tc: (0, 0, 0)))
    inputs += [whh, bias]
    in_specs += [pl.BlockSpec(tuple(whh.shape), lambda tc: (0, 0, 0)),
                 pl.BlockSpec(tuple(bias.shape), lambda tc: (0, 0, 0))]

    if last_layer:
        pf, pb, fc_params = head
        n_fc = len(fc_params)
        inputs += [pf, pb]
        in_specs += [pl.BlockSpec(tuple(pf.shape), lambda tc: (0, 0)),
                     pl.BlockSpec(tuple(pb.shape), lambda tc: (0, 0))]
        for (w_t, b) in fc_params:
            inputs += [w_t, b]
            in_specs += [pl.BlockSpec(tuple(w_t.shape), lambda tc: (0, 0)),
                         pl.BlockSpec(tuple(b.shape), lambda tc: (0, 0))]
        out_shape = [jax.ShapeDtypeStruct((Bp, dim), jnp.float32),
                     jax.ShapeDtypeStruct((2, Bp, H), jnp.float32),
                     jax.ShapeDtypeStruct((2, Bp, H), jnp.float32)]
        out_specs = [pl.BlockSpec((Bp, dim), lambda tc: (0, 0)),
                     pl.BlockSpec((2, Bp, H), lambda tc: (0, 0, 0)),
                     pl.BlockSpec((2, Bp, H), lambda tc: (0, 0, 0))]
    else:
        n_fc = 0
        out_shape = [jax.ShapeDtypeStruct((T * Bp, H), jnp.bfloat16),
                     jax.ShapeDtypeStruct((T * Bp, H), jnp.bfloat16),
                     jax.ShapeDtypeStruct((2, Bp, H), jnp.float32),
                     jax.ShapeDtypeStruct((2, Bp, H), jnp.float32)]
        out_specs = [pl.BlockSpec((rows, H), lambda tc: (tc, 0)),
                     pl.BlockSpec((rows, H), lambda tc: (NT - 1 - tc, 0)),
                     pl.BlockSpec((2, Bp, H), lambda tc: (0, 0, 0)),
                     pl.BlockSpec((2, Bp, H), lambda tc: (0, 0, 0))]

    scratch = [pltpu.VMEM((2, Bp, H), jnp.float32),      # h carry
               pltpu.VMEM((2, Bp, H), jnp.float32),      # c carry
               pltpu.VMEM((rows, 4 * H), jnp.float32),   # hoisted gates (fwd)
               pltpu.VMEM((rows, 4 * H), jnp.float32)]   # hoisted gates (bwd)
    if last_layer:
        scratch.append(pltpu.VMEM((2, Bp, H), jnp.float32))  # bottleneck bound

    unroll = True if Tc <= 16 else 8
    kernel = functools.partial(_bilstm_fused_kernel, n_streams=n_streams,
                               n_fc=n_fc, Tc=Tc, Bp=Bp, H=H, dim=dim,
                               last_layer=last_layer, unroll=unroll)
    grid_spec = pltpu.PrefetchScalarGridSpec(
        num_scalar_prefetch=0, grid=(NT,), in_specs=in_specs,
        out_specs=out_specs, scratch_shapes=scratch)
    return pl.pallas_call(
        kernel, out_shape=out_shape, grid_spec=grid_spec,
        compiler_params=pltpu.CompilerParams(
            dimension_semantics=("arbitrary",),
            vmem_limit_bytes=vmem_limit),
    )(*inputs)


# ----------------------------------------------------------------------------
# Parameter init (PyTorch-style uniform(-1/sqrt(H), 1/sqrt(H)); weights stacked
# per direction, pre-transposed, bias-folded, bf16 MXU operands).
# ----------------------------------------------------------------------------
def init_params(key, input_d, model_dim, num_layers, bottleneck='add', n_fc=1):
    # TODO(synk): the 'cat' bottleneck path in the reference reshapes states to
    # (dim, 2) although the feature dim is only `dim`; only 'add' is implemented.
    assert bottleneck == 'add'
    H = model_dim
    k = 1.0 / math.sqrt(H)
    f32, bf16 = jnp.float32, jnp.bfloat16
    layers = []
    for layer in range(num_layers):
        din = input_d if layer == 0 else 2 * H
        wih_d, whh_d, b_d = [], [], []
        for _ in range(2):                               # forward, backward
            key, k1, k2, k3, k4 = jax.random.split(key, 5)
            w_ih = jax.random.uniform(k1, (4 * H, din), f32, -k, k)
            w_hh = jax.random.uniform(k2, (4 * H, H), f32, -k, k)
            b_ih = jax.random.uniform(k3, (4 * H,), f32, -k, k)
            b_hh = jax.random.uniform(k4, (4 * H,), f32, -k, k)
            wih_d.append(w_ih.T)                         # (din, 4H)
            whh_d.append(w_hh.T)                         # (H, 4H)
            b_d.append((b_ih + b_hh).reshape(1, 4 * H))
        wih = jnp.stack(wih_d).astype(bf16)              # (2, din, 4H)
        if layer == 0:
            wih_parts = (wih,)
        else:            # split along input features: [fwd-half, bwd-half]
            wih_parts = (wih[:, :H, :], wih[:, H:, :])
        layers.append((wih_parts, jnp.stack(whh_d).astype(bf16),
                       jnp.stack(b_d)))                  # bias stays f32
    fcs = []
    kf = 1.0 / math.sqrt(model_dim)
    for _ in range(n_fc):
        key, k1, k2 = jax.random.split(key, 3)
        w = jax.random.uniform(k1, (model_dim, model_dim), f32, -kf, kf)
        b = jax.random.uniform(k2, (model_dim,), f32, -kf, kf)
        fcs.append((w.T.astype(bf16), b.reshape(1, model_dim)))
    return dict(hidden=H, dim=model_dim, num_layers=num_layers,
                layers=layers, fc=fcs)


# ----------------------------------------------------------------------------
# Full forward (matches EncoderLSTM.forward, bottleneck='add').
# ----------------------------------------------------------------------------
def encoder_lstm_forward(x, params, hiddens=None, cells=None, time_chunk=None):
    B, T, input_d = x.shape
    H, dim, L = params['hidden'], params['dim'], params['num_layers']
    n_fc = len(params['fc'])
    # Pad batch to a multiple of 16 so every bf16/f32 sublane access is tile
    # aligned; padded rows are dead weight and get sliced off at the end.
    Bp = _round_up(B, 16)
    vmem_limit, chunk_budget = _vmem_caps()

    if hiddens is None or cells is None:
        hiddens = jnp.zeros((2 * L, B, H), jnp.float32)
        cells = jnp.zeros((2 * L, B, H), jnp.float32)
    h_all = jnp.zeros((2 * L, Bp, H), jnp.float32).at[:, :B, :].set(
        hiddens.astype(jnp.float32))
    c_all = jnp.zeros((2 * L, Bp, H), jnp.float32).at[:, :B, :].set(
        cells.astype(jnp.float32))

    # Time-major, batch-padded, flattened (T*Bp, Din) activations; bf16 in HBM
    # (half the DMA + native MXU operand).  All state math stays f32 in-kernel.
    x_tm = jnp.zeros((T, Bp, input_d), jnp.float32).at[:, :B, :].set(
        jnp.transpose(x, (1, 0, 2)).astype(jnp.float32))
    streams = [x_tm.reshape(T * Bp, input_d).astype(jnp.bfloat16)]

    # Constant 0/1 pair-sum matrices for the 'add' bottleneck (exact in bf16).
    P = jnp.repeat(jnp.eye(dim, dtype=jnp.float32), 2, axis=0).astype(
        jnp.bfloat16)
    head = (P[:H], P[H:], params['fc'])

    h_list, c_list, out = [], [], None
    for layer in range(L):
        wih_parts, whh, bias = params['layers'][layer]
        last = layer == L - 1
        dins = [int(w.shape[1]) for w in wih_parts]
        Tc = _pick_time_chunk(T, Bp, dins, H, dim, n_fc, last, chunk_budget,
                              override=time_chunk)
        outs = _bilstm_layer(streams, h_all[2 * layer:2 * layer + 2],
                             c_all[2 * layer:2 * layer + 2], wih_parts, whh,
                             bias, T=T, Bp=Bp, H=H, dim=dim, Tc=Tc,
                             last_layer=last, head=head if last else None,
                             vmem_limit=vmem_limit)
        if last:
            out, hN, cN = outs
        else:
            sf, sb, hN, cN = outs
            streams = [sf, sb]      # fed straight to the next layer: no concat
        h_list += [hN[0, :B], hN[1, :B]]
        c_list += [cN[0, :B], cN[1, :B]]

    h_n = jnp.stack(h_list, axis=0)             # (2L, B, H), PyTorch ordering
    c_n = jnp.stack(c_list, axis=0)
    return out[:B], (h_n, c_n)


# ----------------------------------------------------------------------------
# Pure-JAX reference (mirrors the kernel's bf16-MXU / f32-state numerics; the
# 'add' bottleneck follows the PyTorch view/sum construction literally).
# ----------------------------------------------------------------------------
def _reference_forward(x, params):
    B, T, _ = x.shape
    H, dim, L = params['hidden'], params['dim'], params['num_layers']
    f32, bf16 = jnp.float32, jnp.bfloat16

    streams = [jnp.transpose(x, (1, 0, 2)).astype(bf16)]      # (T, B, din)
    hs, cs = [], []
    sf = sb = None
    for l in range(L):
        wih_parts, whh, bias = params['layers'][l]
        outs = []
        for d in range(2):
            def cell(carry, xts, d=d, wih_parts=wih_parts, whh=whh, bias=bias):
                h, c = carry
                g = bias[d, 0].astype(f32)
                for s, xt in enumerate(xts):
                    g = g + jnp.dot(xt, wih_parts[s][d],
                                    preferred_element_type=f32)
                g = g + jnp.dot(h.astype(bf16), whh[d],
                                preferred_element_type=f32)
                i = jax.nn.sigmoid(g[:, :H])
                f = jax.nn.sigmoid(g[:, H:2 * H])
                gg = jnp.tanh(g[:, 2 * H:3 * H])
                o = jax.nn.sigmoid(g[:, 3 * H:])
                c = f * c + i * gg
                h = o * jnp.tanh(c)
                return (h, c), h

            xs = tuple(s if d == 0 else s[::-1] for s in streams)
            init = (jnp.zeros((B, H), f32), jnp.zeros((B, H), f32))
            (hT, cT), ys = lax.scan(cell, init, xs)
            outs.append(ys if d == 0 else ys[::-1])
            hs.append(hT)
            cs.append(cT)
        if l < L - 1:
            streams = [outs[0].astype(bf16), outs[1].astype(bf16)]
        else:
            sf, sb = outs

    # 'add' bottleneck exactly as in the PyTorch module.
    states = jnp.transpose(jnp.concatenate([sf, sb], axis=-1), (1, 0, 2))
    s = states.reshape(B, T, dim, 2).sum(-1)
    y = s[:, 0, :] + s[:, -1, :]
    for i, (w_t, bb) in enumerate(params['fc']):
        y = jnp.dot(y.astype(bf16), w_t, preferred_element_type=f32) + bb
        if i < len(params['fc']) - 1:
            y = jnp.tanh(y)
    return y, jnp.stack(hs, axis=0), jnp.stack(cs, axis=0)


if __name__ == "__main__":
    key = jax.random.PRNGKey(0)
    B, T, input_d, model_dim, num_layers, n_fc = 2, 8, 16, 32, 2, 2
    kx, kp = jax.random.split(key)
    x = jax.random.normal(kx, (B, T, input_d), jnp.float32)
    params = init_params(kp, input_d, model_dim, num_layers,
                         bottleneck='add', n_fc=n_fc)

    out, (h_n, c_n) = encoder_lstm_forward(x, params)
    jax.block_until_ready((out, h_n, c_n))
    assert out.shape == (B, model_dim)
    assert h_n.shape == (2 * num_layers, B, model_dim)
    assert c_n.shape == (2 * num_layers, B, model_dim)

    ref_out, ref_h, ref_c = _reference_forward(x, params)
    jax.block_until_ready((ref_out, ref_h, ref_c))
    # h/c follow the exact same precision path -> tight; the head differs only
    # by the bf16 cast feeding the fused bottleneck matmuls (~1e-3).
    np.testing.assert_allclose(np.asarray(h_n), np.asarray(ref_h),
                               rtol=5e-3, atol=5e-3)
    np.testing.assert_allclose(np.asarray(c_n), np.asarray(ref_c),
                               rtol=5e-3, atol=5e-3)
    np.testing.assert_allclose(np.asarray(out), np.asarray(ref_out),
                               rtol=1e-2, atol=1e-2)

    # Multi-chunk path (NT > 1): exercises the VMEM h/c carry across grid
    # steps, the reversed backward block maps and the guarded final stores.
    out2, (h2, c2) = encoder_lstm_forward(x, params, time_chunk=2)
    jax.block_until_ready((out2, h2, c2))
    np.testing.assert_allclose(np.asarray(h2), np.asarray(ref_h),
                               rtol=5e-3, atol=5e-3)
    np.testing.assert_allclose(np.asarray(c2), np.asarray(ref_c),
                               rtol=5e-3, atol=5e-3)
    np.testing.assert_allclose(np.asarray(out2), np.asarray(ref_out),
                               rtol=1e-2, atol=1e-2)

    print("KERNEL_OK")
</pallas_src>

<mosaic_0001>
module attributes {stable_mosaic.version = 11 : i64} {
  func.func @_bilstm_fused_kernel(%arg0: i32, %arg1: memref<128x16xbf16, #tpu.memory_space<vmem>>, %arg2: memref<128x16xbf16, #tpu.memory_space<vmem>>, %arg3: memref<2x16x32xf32, #tpu.memory_space<vmem>>, %arg4: memref<2x16x32xf32, #tpu.memory_space<vmem>>, %arg5: memref<2x16x128xbf16, #tpu.memory_space<vmem>>, %arg6: memref<2x32x128xbf16, #tpu.memory_space<vmem>>, %arg7: memref<2x1x128xf32, #tpu.memory_space<vmem>>, %arg8: memref<128x32xbf16, #tpu.memory_space<vmem>>, %arg9: memref<128x32xbf16, #tpu.memory_space<vmem>>, %arg10: memref<2x16x32xf32, #tpu.memory_space<vmem>>, %arg11: memref<2x16x32xf32, #tpu.memory_space<vmem>>, %arg12: memref<2x16x32xf32, #tpu.memory_space<vmem>>, %arg13: memref<2x16x32xf32, #tpu.memory_space<vmem>>, %arg14: memref<128x128xf32, #tpu.memory_space<vmem>>, %arg15: memref<128x128xf32, #tpu.memory_space<vmem>>) attributes {dimension_semantics = [#tpu.dimension_semantics<arbitrary>], iteration_bounds = array<i64: 1>, scalar_prefetch = 0 : i64, scratch_operands = 4 : i64, tpu.core_type = #tpu.core_type<tc>, window_params = [{transform_indices = @transform_0, window_bounds = array<i64: 128, 16>}, {transform_indices = @transform_1, window_bounds = array<i64: 128, 16>}, {pipeline_mode = #tpu.pipeline_mode<synchronous>, transform_indices = @transform_2, window_bounds = array<i64: 2, 16, 32>}, {pipeline_mode = #tpu.pipeline_mode<synchronous>, transform_indices = @transform_3, window_bounds = array<i64: 2, 16, 32>}, {pipeline_mode = #tpu.pipeline_mode<synchronous>, transform_indices = @transform_4, window_bounds = array<i64: 2, 16, 128>}, {pipeline_mode = #tpu.pipeline_mode<synchronous>, transform_indices = @transform_5, window_bounds = array<i64: 2, 32, 128>}, {pipeline_mode = #tpu.pipeline_mode<synchronous>, transform_indices = @transform_6, window_bounds = array<i64: 2, 1, 128>}, {transform_indices = @transform_7, window_bounds = array<i64: 128, 32>}, {transform_indices = @transform_8, window_bounds = array<i64: 128, 32>}, {pipeline_mode = #tpu.pipeline_mode<synchronous>, transform_indices = @transform_9, window_bounds = array<i64: 2, 16, 32>}, {pipeline_mode = #tpu.pipeline_mode<synchronous>, transform_indices = @transform_10, window_bounds = array<i64: 2, 16, 32>}]} {
    %c0_i32 = arith.constant 0 : i32
    %0 = arith.cmpi eq, %arg0, %c0_i32 : i32
    %1 = arith.extui %0 : i1 to i32
    %c0_i32_0 = arith.constant 0 : i32
    %2 = arith.cmpi ne, %1, %c0_i32_0 : i32
    scf.if %2 {
      %c0_172 = arith.constant 0 : index
      %c0_173 = arith.constant 0 : index
      %c0_174 = arith.constant 0 : index
      %616 = vector.load %arg3[%c0_172, %c0_173, %c0_174] : memref<2x16x32xf32, #tpu.memory_space<vmem>>, vector<2x16x32xf32>
      %c0_175 = arith.constant 0 : index
      %c0_176 = arith.constant 0 : index
      %c0_177 = arith.constant 0 : index
      %617 = vector.load %arg12[%c0_175, %c0_176, %c0_177] : memref<2x16x32xf32, #tpu.memory_space<vmem>>, vector<2x16x32xf32>
      tpu.vector_store %arg12[%c0_175, %c0_176, %c0_177], %616 {strides = array<i32>} : memref<2x16x32xf32, #tpu.memory_space<vmem>>, vector<2x16x32xf32>,
      %c0_178 = arith.constant 0 : index
      %c0_179 = arith.constant 0 : index
      %c0_180 = arith.constant 0 : index
      %618 = vector.load %arg4[%c0_178, %c0_179, %c0_180] : memref<2x16x32xf32, #tpu.memory_space<vmem>>, vector<2x16x32xf32>
      %c0_181 = arith.constant 0 : index
      %c0_182 = arith.constant 0 : index
      %c0_183 = arith.constant 0 : index
      %619 = vector.load %arg13[%c0_181, %c0_182, %c0_183] : memref<2x16x32xf32, #tpu.memory_space<vmem>>, vector<2x16x32xf32>
      tpu.vector_store %arg13[%c0_181, %c0_182, %c0_183], %618 {strides = array<i32>} : memref<2x16x32xf32, #tpu.memory_space<vmem>>, vector<2x16x32xf32>,
    } else {
    }
    %c0 = arith.constant 0 : index
    %c0_1 = arith.constant 0 : index
    %c0_2 = arith.constant 0 : index
    %3 = vector.load %arg7[%c0, %c0_1, %c0_2] : memref<2x1x128xf32, #tpu.memory_space<vmem>>, vector<1x1x128xf32>
    %4 = vector.shape_cast %3 : vector<1x1x128xf32> to vector<1x128xf32>
    %c1 = arith.constant 1 : index
    %c0_3 = arith.constant 0 : index
    %c0_4 = arith.constant 0 : index
    %5 = vector.load %arg7[%c1, %c0_3, %c0_4] : memref<2x1x128xf32, #tpu.memory_space<vmem>>, vector<1x1x128xf32>
    %6 = vector.shape_cast %5 : vector<1x1x128xf32> to vector<1x128xf32>
    %c0_5 = arith.constant 0 : index
    %c0_6 = arith.constant 0 : index
    %7 = vector.load %arg1[%c0_5, %c0_6] : memref<128x16xbf16, #tpu.memory_space<vmem>>, vector<128x16xbf16>
    %c0_7 = arith.constant 0 : index
    %c0_8 = arith.constant 0 : index
    %c0_9 = arith.constant 0 : index
    %8 = vector.load %arg5[%c0_7, %c0_8, %c0_9] : memref<2x16x128xbf16, #tpu.memory_space<vmem>>, vector<1x16x128xbf16>
    %9 = vector.shape_cast %8 : vector<1x16x128xbf16> to vector<16x128xbf16>
    %cst = arith.constant dense<0.000000e+00> : vector<128x128xf32>
    %10 = tpu.matmul %7, %9, %cst {dimension_numbers = #tpu.dot_dimension_numbers<[1], [0], [0], [1], [0, 0, 1, 1], [], []>} : vector<128x16xbf16>, vector<16x128xbf16>, vector<128x128xf32> -> vector<128x128xf32>
    %11 = vector.broadcast %4 : vector<1x128xf32> to vector<128x128xf32>
    %12 = arith.addf %11, %10 : vector<128x128xf32>
    %c0_10 = arith.constant 0 : index
    %c0_11 = arith.constant 0 : index
    %13 = vector.load %arg2[%c0_10, %c0_11] : memref<128x16xbf16, #tpu.memory_space<vmem>>, vector<128x16xbf16>
    %c1_12 = arith.constant 1 : index
    %c0_13 = arith.constant 0 : index
    %c0_14 = arith.constant 0 : index
    %14 = vector.load %arg5[%c1_12, %c0_13, %c0_14] : memref<2x16x128xbf16, #tpu.memory_space<vmem>>, vector<1x16x128xbf16>
    %15 = vector.shape_cast %14 : vector<1x16x128xbf16> to vector<16x128xbf16>
    %cst_15 = arith.constant dense<0.000000e+00> : vector<128x128xf32>
    %16 = tpu.matmul %13, %15, %cst_15 {dimension_numbers = #tpu.dot_dimension_numbers<[1], [0], [0], [1], [0, 0, 1, 1], [], []>} : vector<128x16xbf16>, vector<16x128xbf16>, vector<128x128xf32> -> vector<128x128xf32>
    %17 = vector.broadcast %6 : vector<1x128xf32> to vector<128x128xf32>
    %18 = arith.addf %17, %16 : vector<128x128xf32>
    %c0_16 = arith.constant 0 : index
    %c0_17 = arith.constant 0 : index
    %19 = vector.load %arg14[%c0_16, %c0_17] : memref<128x128xf32, #tpu.memory_space<vmem>>, vector<128x128xf32>
    tpu.vector_store %arg14[%c0_16, %c0_17], %12 {strides = array<i32>} : memref<128x128xf32, #tpu.memory_space<vmem>>, vector<128x128xf32>,
    %c0_18 = arith.constant 0 : index
    %c0_19 = arith.constant 0 : index
    %20 = vector.load %arg15[%c0_18, %c0_19] : memref<128x128xf32, #tpu.memory_space<vmem>>, vector<128x128xf32>
    tpu.vector_store %arg15[%c0_18, %c0_19], %18 {strides = array<i32>} : memref<128x128xf32, #tpu.memory_space<vmem>>, vector<128x128xf32>,
    %c0_20 = arith.constant 0 : index
    %c0_21 = arith.constant 0 : index
    %c0_22 = arith.constant 0 : index
    %21 = vector.load %arg6[%c0_20, %c0_21, %c0_22] : memref<2x32x128xbf16, #tpu.memory_space<vmem>>, vector<1x32x128xbf16>
    %22 = vector.shape_cast %21 : vector<1x32x128xbf16> to vector<32x128xbf16>
    %c1_23 = arith.constant 1 : index
    %c0_24 = arith.constant 0 : index
    %c0_25 = arith.constant 0 : index
    %23 = vector.load %arg6[%c1_23, %c0_24, %c0_25] : memref<2x32x128xbf16, #tpu.memory_space<vmem>>, vector<1x32x128xbf16>
    %24 = vector.shape_cast %23 : vector<1x32x128xbf16> to vector<32x128xbf16>
    %c0_26 = arith.constant 0 : index
    %c0_27 = arith.constant 0 : index
    %c0_28 = arith.constant 0 : index
    %25 = vector.load %arg12[%c0_26, %c0_27, %c0_28] : memref<2x16x32xf32, #tpu.memory_space<vmem>>, vector<1x16x32xf32>
    %26 = vector.shape_cast %25 : vector<1x16x32xf32> to vector<16x32xf32>
    %c0_29 = arith.constant 0 : index
    %c0_30 = arith.constant 0 : index
    %c0_31 = arith.constant 0 : index
    %27 = vector.load %arg13[%c0_29, %c0_30, %c0_31] : memref<2x16x32xf32, #tpu.memory_space<vmem>>, vector<1x16x32xf32>
    %28 = vector.shape_cast %27 : vector<1x16x32xf32> to vector<16x32xf32>
    %c1_32 = arith.constant 1 : index
    %c0_33 = arith.constant 0 : index
    %c0_34 = arith.constant 0 : index
    %29 = vector.load %arg12[%c1_32, %c0_33, %c0_34] : memref<2x16x32xf32, #tpu.memory_space<vmem>>, vector<1x16x32xf32>
    %30 = vector.shape_cast %29 : vector<1x16x32xf32> to vector<16x32xf32>
    %c1_35 = arith.constant 1 : index
    %c0_36 = arith.constant 0 : index
    %c0_37 = arith.constant 0 : index
    %31 = vector.load %arg13[%c1_35, %c0_36, %c0_37] : memref<2x16x32xf32, #tpu.memory_space<vmem>>, vector<1x16x32xf32>
    %32 = vector.shape_cast %31 : vector<1x16x32xf32> to vector<16x32xf32>
    %c0_i32_38 = arith.constant 0 : i32
    %c16_i32 = arith.constant 16 : i32
    %33 = arith.muli %c0_i32_38, %c16_i32 : i32
    %34 = tpu.assume_multiple %33, 8 : i32
    %c7_i32 = arith.constant 7 : i32
    %35 = arith.subi %c7_i32, %c0_i32_38 : i32
    %c16_i32_39 = arith.constant 16 : i32
    %36 = arith.muli %35, %c16_i32_39 : i32
    %37 = tpu.assume_multiple %36, 8 : i32
    %38 = arith.index_cast %34 : i32 to index
    %c0_40 = arith.constant 0 : index
    %39 = vector.load %arg14[%38, %c0_40] : memref<128x128xf32, #tpu.memory_space<vmem>>, vector<16x128xf32>
    %40 = arith.truncf %26 : vector<16x32xf32> to vector<16x32xbf16>
    %cst_41 = arith.constant dense<0.000000e+00> : vector<16x128xf32>
    %41 = tpu.matmul %40, %22, %cst_41 {dimension_numbers = #tpu.dot_dimension_numbers<[1], [0], [0], [1], [0, 0, 1, 1], [], []>} : vector<16x32xbf16>, vector<32x128xbf16>, vector<16x128xf32> -> vector<16x128xf32>
    %42 = arith.addf %39, %41 : vector<16x128xf32>
    %43 = arith.index_cast %37 : i32 to index
    %c0_42 = arith.constant 0 : index
    %44 = vector.load %arg15[%43, %c0_42] : memref<128x128xf32, #tpu.memory_space<vmem>>, vector<16x128xf32>
    %45 = arith.truncf %30 : vector<16x32xf32> to vector<16x32xbf16>
    %cst_43 = arith.constant dense<0.000000e+00> : vector<16x128xf32>
    %46 = tpu.matmul %45, %24, %cst_43 {dimension_numbers = #tpu.dot_dimension_numbers<[1], [0], [0], [1], [0, 0, 1, 1], [], []>} : vector<16x32xbf16>, vector<32x128xbf16>, vector<16x128xf32> -> vector<16x128xf32>
    %47 = arith.addf %44, %46 : vector<16x128xf32>
    %48 = vector.extract_strided_slice %42 {offsets = [0, 0], sizes = [16, 32], strides = [1, 1]} : vector<16x128xf32> to vector<16x32xf32>
    %49 = arith.negf %48 : vector<16x32xf32>
    %50 = math.exp %49 : vector<16x32xf32>
    %cst_44 = arith.constant 1.000000e+00 : f32
    %51 = vector.broadcast %cst_44 : f32 to vector<16x32xf32>
    %52 = arith.addf %51, %50 : vector<16x32xf32>
    %53 = arith.divf %51, %52 : vector<16x32xf32>
    %54 = vector.extract_strided_slice %42 {offsets = [0, 32], sizes = [16, 32], strides = [1, 1]} : vector<16x128xf32> to vector<16x32xf32>
    %55 = arith.negf %54 : vector<16x32xf32>
    %56 = math.exp %55 : vector<16x32xf32>
    %cst_45 = arith.constant 1.000000e+00 : f32
    %57 = vector.broadcast %cst_45 : f32 to vector<16x32xf32>
    %58 = arith.addf %57, %56 : vector<16x32xf32>
    %59 = arith.divf %57, %58 : vector<16x32xf32>
    %60 = vector.extract_strided_slice %42 {offsets = [0, 64], sizes = [16, 32], strides = [1, 1]} : vector<16x128xf32> to vector<16x32xf32>
    %61 = math.tanh %60 : vector<16x32xf32>
    %62 = vector.extract_strided_slice %42 {offsets = [0, 96], sizes = [16, 32], strides = [1, 1]} : vector<16x128xf32> to vector<16x32xf32>
    %63 = arith.negf %62 : vector<16x32xf32>
    %64 = math.exp %63 : vector<16x32xf32>
    %cst_46 = arith.constant 1.000000e+00 : f32
    %65 = vector.broadcast %cst_46 : f32 to vector<16x32xf32>
    %66 = arith.addf %65, %64 : vector<16x32xf32>
    %67 = arith.divf %65, %66 : vector<16x32xf32>
    %68 = arith.mulf %59, %28 : vector<16x32xf32>
    %69 = arith.mulf %53, %61 : vector<16x32xf32>
    %70 = arith.addf %68, %69 : vector<16x32xf32>
    %71 = math.tanh %70 : vector<16x32xf32>
    %72 = arith.mulf %67, %71 : vector<16x32xf32>
    %73 = vector.extract_strided_slice %47 {offsets = [0, 0], sizes = [16, 32], strides = [1, 1]} : vector<16x128xf32> to vector<16x32xf32>
    %74 = arith.negf %73 : vector<16x32xf32>
    %75 = math.exp %74 : vector<16x32xf32>
    %cst_47 = arith.constant 1.000000e+00 : f32
    %76 = vector.broadcast %cst_47 : f32 to vector<16x32xf32>
    %77 = arith.addf %76, %75 : vector<16x32xf32>
    %78 = arith.divf %76, %77 : vector<16x32xf32>
    %79 = vector.extract_strided_slice %47 {offsets = [0, 32], sizes = [16, 32], strides = [1, 1]} : vector<16x128xf32> to vector<16x32xf32>
    %80 = arith.negf %79 : vector<16x32xf32>
    %81 = math.exp %80 : vector<16x32xf32>
    %cst_48 = arith.constant 1.000000e+00 : f32
    %82 = vector.broadcast %cst_48 : f32 to vector<16x32xf32>
    %83 = arith.addf %82, %81 : vector<16x32xf32>
    %84 = arith.divf %82, %83 : vector<16x32xf32>
    %85 = vector.extract_strided_slice %47 {offsets = [0, 64], sizes = [16, 32], strides = [1, 1]} : vector<16x128xf32> to vector<16x32xf32>
    %86 = math.tanh %85 : vector<16x32xf32>
    %87 = vector.extract_strided_slice %47 {offsets = [0, 96], sizes = [16, 32], strides = [1, 1]} : vector<16x128xf32> to vector<16x32xf32>
    %88 = arith.negf %87 : vector<16x32xf32>
    %89 = math.exp %88 : vector<16x32xf32>
    %cst_49 = arith.constant 1.000000e+00 : f32
    %90 = vector.broadcast %cst_49 : f32 to vector<16x32xf32>
    %91 = arith.addf %90, %89 : vector<16x32xf32>
    %92 = arith.divf %90, %91 : vector<16x32xf32>
    %93 = arith.mulf %84, %32 : vector<16x32xf32>
    %94 = arith.mulf %78, %86 : vector<16x32xf32>
    %95 = arith.addf %93, %94 : vector<16x32xf32>
    %96 = math.tanh %95 : vector<16x32xf32>
    %97 = arith.mulf %92, %96 : vector<16x32xf32>
    %98 = arith.truncf %72 : vector<16x32xf32> to vector<16x32xbf16>
    %99 = arith.index_cast %34 : i32 to index
    %c0_50 = arith.constant 0 : index
    %100 = vector.load %arg8[%99, %c0_50] : memref<128x32xbf16, #tpu.memory_space<vmem>>, vector<16x32xbf16>
    tpu.vector_store %arg8[%99, %c0_50], %98 {strides = array<i32>} : memref<128x32xbf16, #tpu.memory_space<vmem>>, vector<16x32xbf16>,
    %101 = arith.truncf %97 : vector<16x32xf32> to vector<16x32xbf16>
    %102 = arith.index_cast %37 : i32 to index
    %c0_51 = arith.constant 0 : index
    %103 = vector.load %arg9[%102, %c0_51] : memref<128x32xbf16, #tpu.memory_space<vmem>>, vector<16x32xbf16>
    tpu.vector_store %arg9[%102, %c0_51], %101 {strides = array<i32>} : memref<128x32xbf16, #tpu.memory_space<vmem>>, vector<16x32xbf16>,
    %c1_i32 = arith.constant 1 : i32
    %c16_i32_52 = arith.constant 16 : i32
    %104 = arith.muli %c1_i32, %c16_i32_52 : i32
    %105 = tpu.assume_multiple %104, 8 : i32
    %c7_i32_53 = arith.constant 7 : i32
    %106 = arith.subi %c7_i32_53, %c1_i32 : i32
    %c16_i32_54 = arith.constant 16 : i32
    %107 = arith.muli %106, %c16_i32_54 : i32
    %108 = tpu.assume_multiple %107, 8 : i32
    %109 = arith.index_cast %105 : i32 to index
    %c0_55 = arith.constant 0 : index
    %110 = vector.load %arg14[%109, %c0_55] : memref<128x128xf32, #tpu.memory_space<vmem>>, vector<16x128xf32>
    %111 = arith.truncf %72 : vector<16x32xf32> to vector<16x32xbf16>
    %cst_56 = arith.constant dense<0.000000e+00> : vector<16x128xf32>
    %112 = tpu.matmul %111, %22, %cst_56 {dimension_numbers = #tpu.dot_dimension_numbers<[1], [0], [0], [1], [0, 0, 1, 1], [], []>} : vector<16x32xbf16>, vector<32x128xbf16>, vector<16x128xf32> -> vector<16x128xf32>
    %113 = arith.addf %110, %112 : vector<16x128xf32>
    %114 = arith.index_cast %108 : i32 to index
    %c0_57 = arith.constant 0 : index
    %115 = vector.load %arg15[%114, %c0_57] : memref<128x128xf32, #tpu.memory_space<vmem>>, vector<16x128xf32>
    %116 = arith.truncf %97 : vector<16x32xf32> to vector<16x32xbf16>
    %cst_58 = arith.constant dense<0.000000e+00> : vector<16x128xf32>
    %117 = tpu.matmul %116, %24, %cst_58 {dimension_numbers = #tpu.dot_dimension_numbers<[1], [0], [0], [1], [0, 0, 1, 1], [], []>} : vector<16x32xbf16>, vector<32x128xbf16>, vector<16x128xf32> -> vector<16x128xf32>
    %118 = arith.addf %115, %117 : vector<16x128xf32>
    %119 = vector.extract_strided_slice %113 {offsets = [0, 0], sizes = [16, 32], strides = [1, 1]} : vector<16x128xf32> to vector<16x32xf32>
    %120 = arith.negf %119 : vector<16x32xf32>
    %121 = math.exp %120 : vector<16x32xf32>
    %cst_59 = arith.constant 1.000000e+00 : f32
    %122 = vector.broadcast %cst_59 : f32 to vector<16x32xf32>
    %123 = arith.addf %122, %121 : vector<16x32xf32>
    %124 = arith.divf %122, %123 : vector<16x32xf32>
    %125 = vector.extract_strided_slice %113 {offsets = [0, 32], sizes = [16, 32], strides = [1, 1]} : vector<16x128xf32> to vector<16x32xf32>
    %126 = arith.negf %125 : vector<16x32xf32>
    %127 = math.exp %126 : vector<16x32xf32>
    %cst_60 = arith.constant 1.000000e+00 : f32
    %128 = vector.broadcast %cst_60 : f32 to vector<16x32xf32>
    %129 = arith.addf %128, %127 : vector<16x32xf32>
    %130 = arith.divf %128, %129 : vector<16x32xf32>
    %131 = vector.extract_strided_slice %113 {offsets = [0, 64], sizes = [16, 32], strides = [1, 1]} : vector<16x128xf32> to vector<16x32xf32>
    %132 = math.tanh %131 : vector<16x32xf32>
    %133 = vector.extract_strided_slice %113 {offsets = [0, 96], sizes = [16, 32], strides = [1, 1]} : vector<16x128xf32> to vector<16x32xf32>
    %134 = arith.negf %133 : vector<16x32xf32>
    %135 = math.exp %134 : vector<16x32xf32>
    %cst_61 = arith.constant 1.000000e+00 : f32
    %136 = vector.broadcast %cst_61 : f32 to vector<16x32xf32>
    %137 = arith.addf %136, %135 : vector<16x32xf32>
    %138 = arith.divf %136, %137 : vector<16x32xf32>
    %139 = arith.mulf %130, %70 : vector<16x32xf32>
    %140 = arith.mulf %124, %132 : vector<16x32xf32>
    %141 = arith.addf %139, %140 : vector<16x32xf32>
    %142 = math.tanh %141 : vector<16x32xf32>
    %143 = arith.mulf %138, %142 : vector<16x32xf32>
    %144 = vector.extract_strided_slice %118 {offsets = [0, 0], sizes = [16, 32], strides = [1, 1]} : vector<16x128xf32> to vector<16x32xf32>
    %145 = arith.negf %144 : vector<16x32xf32>
    %146 = math.exp %145 : vector<16x32xf32>
    %cst_62 = arith.constant 1.000000e+00 : f32
    %147 = vector.broadcast %cst_62 : f32 to vector<16x32xf32>
    %148 = arith.addf %147, %146 : vector<16x32xf32>
    %149 = arith.divf %147, %148 : vector<16x32xf32>
    %150 = vector.extract_strided_slice %118 {offsets = [0, 32], sizes = [16, 32], strides = [1, 1]} : vector<16x128xf32> to vector<16x32xf32>
    %151 = arith.negf %150 : vector<16x32xf32>
    %152 = math.exp %151 : vector<16x32xf32>
    %cst_63 = arith.constant 1.000000e+00 : f32
    %153 = vector.broadcast %cst_63 : f32 to vector<16x32xf32>
    %154 = arith.addf %153, %152 : vector<16x32xf32>
    %155 = arith.divf %153, %154 : vector<16x32xf32>
    %156 = vector.extract_strided_slice %118 {offsets = [0, 64], sizes = [16, 32], strides = [1, 1]} : vector<16x128xf32> to vector<16x32xf32>
    %157 = math.tanh %156 : vector<16x32xf32>
    %158 = vector.extract_strided_slice %118 {offsets = [0, 96], sizes = [16, 32], strides = [1, 1]} : vector<16x128xf32> to vector<16x32xf32>
    %159 = arith.negf %158 : vector<16x32xf32>
    %160 = math.exp %159 : vector<16x32xf32>
    %cst_64 = arith.constant 1.000000e+00 : f32
    %161 = vector.broadcast %cst_64 : f32 to vector<16x32xf32>
    %162 = arith.addf %161, %160 : vector<16x32xf32>
    %163 = arith.divf %161, %162 : vector<16x32xf32>
    %164 = arith.mulf %155, %95 : vector<16x32xf32>
    %165 = arith.mulf %149, %157 : vector<16x32xf32>
    %166 = arith.addf %164, %165 : vector<16x32xf32>
    %167 = math.tanh %166 : vector<16x32xf32>
    %168 = arith.mulf %163, %167 : vector<16x32xf32>
    %169 = arith.truncf %143 : vector<16x32xf32> to vector<16x32xbf16>
    %170 = arith.index_cast %105 : i32 to index
    %c0_65 = arith.constant 0 : index
    %171 = vector.load %arg8[%170, %c0_65] : memref<128x32xbf16, #tpu.memory_space<vmem>>, vector<16x32xbf16>
    tpu.vector_store %arg8[%170, %c0_65], %169 {strides = array<i32>} : memref<128x32xbf16, #tpu.memory_space<vmem>>, vector<16x32xbf16>,
    %172 = arith.truncf %168 : vector<16x32xf32> to vector<16x32xbf16>
    %173 = arith.index_cast %108 : i32 to index
    %c0_66 = arith.constant 0 : index
    %174 = vector.load %arg9[%173, %c0_66] : memref<128x32xbf16, #tpu.memory_space<vmem>>, vector<16x32xbf16>
    tpu.vector_store %arg9[%173, %c0_66], %172 {strides = array<i32>} : memref<128x32xbf16, #tpu.memory_space<vmem>>, vector<16x32xbf16>,
    %c2_i32 = arith.constant 2 : i32
    %c16_i32_67 = arith.constant 16 : i32
    %175 = arith.muli %c2_i32, %c16_i32_67 : i32
    %176 = tpu.assume_multiple %175, 8 : i32
    %c7_i32_68 = arith.constant 7 : i32
    %177 = arith.subi %c7_i32_68, %c2_i32 : i32
    %c16_i32_69 = arith.constant 16 : i32
    %178 = arith.muli %177, %c16_i32_69 : i32
    %179 = tpu.assume_multiple %178, 8 : i32
    %180 = arith.index_cast %176 : i32 to index
    %c0_70 = arith.constant 0 : index
    %181 = vector.load %arg14[%180, %c0_70] : memref<128x128xf32, #tpu.memory_space<vmem>>, vector<16x128xf32>
    %182 = arith.truncf %143 : vector<16x32xf32> to vector<16x32xbf16>
    %cst_71 = arith.constant dense<0.000000e+00> : vector<16x128xf32>
    %183 = tpu.matmul %182, %22, %cst_71 {dimension_numbers = #tpu.dot_dimension_numbers<[1], [0], [0], [1], [0, 0, 1, 1], [], []>} : vector<16x32xbf16>, vector<32x128xbf16>, vector<16x128xf32> -> vector<16x128xf32>
    %184 = arith.addf %181, %183 : vector<16x128xf32>
    %185 = arith.index_cast %179 : i32 to index
    %c0_72 = arith.constant 0 : index
    %186 = vector.load %arg15[%185, %c0_72] : memref<128x128xf32, #tpu.memory_space<vmem>>, vector<16x128xf32>
    %187 = arith.truncf %168 : vector<16x32xf32> to vector<16x32xbf16>
    %cst_73 = arith.constant dense<0.000000e+00> : vector<16x128xf32>
    %188 = tpu.matmul %187, %24, %cst_73 {dimension_numbers = #tpu.dot_dimension_numbers<[1], [0], [0], [1], [0, 0, 1, 1], [], []>} : vector<16x32xbf16>, vector<32x128xbf16>, vector<16x128xf32> -> vector<16x128xf32>
    %189 = arith.addf %186, %188 : vector<16x128xf32>
    %190 = vector.extract_strided_slice %184 {offsets = [0, 0], sizes = [16, 32], strides = [1, 1]} : vector<16x128xf32> to vector<16x32xf32>
    %191 = arith.negf %190 : vector<16x32xf32>
    %192 = math.exp %191 : vector<16x32xf32>
    %cst_74 = arith.constant 1.000000e+00 : f32
    %193 = vector.broadcast %cst_74 : f32 to vector<16x32xf32>
    %194 = arith.addf %193, %192 : vector<16x32xf32>
    %195 = arith.divf %193, %194 : vector<16x32xf32>
    %196 = vector.extract_strided_slice %184 {offsets = [0, 32], sizes = [16, 32], strides = [1, 1]} : vector<16x128xf32> to vector<16x32xf32>
    %197 = arith.negf %196 : vector<16x32xf32>
    %198 = math.exp %197 : vector<16x32xf32>
    %cst_75 = arith.constant 1.000000e+00 : f32
    %199 = vector.broadcast %cst_75 : f32 to vector<16x32xf32>
    %200 = arith.addf %199, %198 : vector<16x32xf32>
    %201 = arith.divf %199, %200 : vector<16x32xf32>
    %202 = vector.extract_strided_slice %184 {offsets = [0, 64], sizes = [16, 32], strides = [1, 1]} : vector<16x128xf32> to vector<16x32xf32>
    %203 = math.tanh %202 : vector<16x32xf32>
    %204 = vector.extract_strided_slice %184 {offsets = [0, 96], sizes = [16, 32], strides = [1, 1]} : vector<16x128xf32> to vector<16x32xf32>
    %205 = arith.negf %204 : vector<16x32xf32>
    %206 = math.exp %205 : vector<16x32xf32>
    %cst_76 = arith.constant 1.000000e+00 : f32
    %207 = vector.broadcast %cst_76 : f32 to vector<16x32xf32>
    %208 = arith.addf %207, %206 : vector<16x32xf32>
    %209 = arith.divf %207, %208 : vector<16x32xf32>
    %210 = arith.mulf %201, %141 : vector<16x32xf32>
    %211 = arith.mulf %195, %203 : vector<16x32xf32>
    %212 = arith.addf %210, %211 : vector<16x32xf32>
    %213 = math.tanh %212 : vector<16x32xf32>
    %214 = arith.mulf %209, %213 : vector<16x32xf32>
    %215 = vector.extract_strided_slice %189 {offsets = [0, 0], sizes = [16, 32], strides = [1, 1]} : vector<16x128xf32> to vector<16x32xf32>
    %216 = arith.negf %215 : vector<16x32xf32>
    %217 = math.exp %216 : vector<16x32xf32>
    %cst_77 = arith.constant 1.000000e+00 : f32
    %218 = vector.broadcast %cst_77 : f32 to vector<16x32xf32>
    %219 = arith.addf %218, %217 : vector<16x32xf32>
    %220 = arith.divf %218, %219 : vector<16x32xf32>
    %221 = vector.extract_strided_slice %189 {offsets = [0, 32], sizes = [16, 32], strides = [1, 1]} : vector<16x128xf32> to vector<16x32xf32>
    %222 = arith.negf %221 : vector<16x32xf32>
    %223 = math.exp %222 : vector<16x32xf32>
    %cst_78 = arith.constant 1.000000e+00 : f32
    %224 = vector.broadcast %cst_78 : f32 to vector<16x32xf32>
    %225 = arith.addf %224, %223 : vector<16x32xf32>
    %226 = arith.divf %224, %225 : vector<16x32xf32>
    %227 = vector.extract_strided_slice %189 {offsets = [0, 64], sizes = [16, 32], strides = [1, 1]} : vector<16x128xf32> to vector<16x32xf32>
    %228 = math.tanh %227 : vector<16x32xf32>
    %229 = vector.extract_strided_slice %189 {offsets = [0, 96], sizes = [16, 32], strides = [1, 1]} : vector<16x128xf32> to vector<16x32xf32>
    %230 = arith.negf %229 : vector<16x32xf32>
    %231 = math.exp %230 : vector<16x32xf32>
    %cst_79 = arith.constant 1.000000e+00 : f32
    %232 = vector.broadcast %cst_79 : f32 to vector<16x32xf32>
    %233 = arith.addf %232, %231 : vector<16x32xf32>
    %234 = arith.divf %232, %233 : vector<16x32xf32>
    %235 = arith.mulf %226, %166 : vector<16x32xf32>
    %236 = arith.mulf %220, %228 : vector<16x32xf32>
    %237 = arith.addf %235, %236 : vector<16x32xf32>
    %238 = math.tanh %237 : vector<16x32xf32>
    %239 = arith.mulf %234, %238 : vector<16x32xf32>
    %240 = arith.truncf %214 : vector<16x32xf32> to vector<16x32xbf16>
    %241 = arith.index_cast %176 : i32 to index
    %c0_80 = arith.constant 0 : index
    %242 = vector.load %arg8[%241, %c0_80] : memref<128x32xbf16, #tpu.memory_space<vmem>>, vector<16x32xbf16>
    tpu.vector_store %arg8[%241, %c0_80], %240 {strides = array<i32>} : memref<128x32xbf16, #tpu.memory_space<vmem>>, vector<16x32xbf16>,
    %243 = arith.truncf %239 : vector<16x32xf32> to vector<16x32xbf16>
    %244 = arith.index_cast %179 : i32 to index
    %c0_81 = arith.constant 0 : index
    %245 = vector.load %arg9[%244, %c0_81] : memref<128x32xbf16, #tpu.memory_space<vmem>>, vector<16x32xbf16>
    tpu.vector_store %arg9[%244, %c0_81], %243 {strides = array<i32>} : memref<128x32xbf16, #tpu.memory_space<vmem>>, vector<16x32xbf16>,
    %c3_i32 = arith.constant 3 : i32
    %c16_i32_82 = arith.constant 16 : i32
    %246 = arith.muli %c3_i32, %c16_i32_82 : i32
    %247 = tpu.assume_multiple %246, 8 : i32
    %c7_i32_83 = arith.constant 7 : i32
    %248 = arith.subi %c7_i32_83, %c3_i32 : i32
    %c16_i32_84 = arith.constant 16 : i32
    %249 = arith.muli %248, %c16_i32_84 : i32
    %250 = tpu.assume_multiple %249, 8 : i32
    %251 = arith.index_cast %247 : i32 to index
    %c0_85 = arith.constant 0 : index
    %252 = vector.load %arg14[%251, %c0_85] : memref<128x128xf32, #tpu.memory_space<vmem>>, vector<16x128xf32>
    %253 = arith.truncf %214 : vector<16x32xf32> to vector<16x32xbf16>
    %cst_86 = arith.constant dense<0.000000e+00> : vector<16x128xf32>
    %254 = tpu.matmul %253, %22, %cst_86 {dimension_numbers = #tpu.dot_dimension_numbers<[1], [0], [0], [1], [0, 0, 1, 1], [], []>} : vector<16x32xbf16>, vector<32x128xbf16>, vector<16x128xf32> -> vector<16x128xf32>
    %255 = arith.addf %252, %254 : vector<16x128xf32>
    %256 = arith.index_cast %250 : i32 to index
    %c0_87 = arith.constant 0 : index
    %257 = vector.load %arg15[%256, %c0_87] : memref<128x128xf32, #tpu.memory_space<vmem>>, vector<16x128xf32>
    %258 = arith.truncf %239 : vector<16x32xf32> to vector<16x32xbf16>
    %cst_88 = arith.constant dense<0.000000e+00> : vector<16x128xf32>
    %259 = tpu.matmul %258, %24, %cst_88 {dimension_numbers = #tpu.dot_dimension_numbers<[1], [0], [0], [1], [0, 0, 1, 1], [], []>} : vector<16x32xbf16>, vector<32x128xbf16>, vector<16x128xf32> -> vector<16x128xf32>
    %260 = arith.addf %257, %259 : vector<16x128xf32>
    %261 = vector.extract_strided_slice %255 {offsets = [0, 0], sizes = [16, 32], strides = [1, 1]} : vector<16x128xf32> to vector<16x32xf32>
    %262 = arith.negf %261 : vector<16x32xf32>
    %263 = math.exp %262 : vector<16x32xf32>
    %cst_89 = arith.constant 1.000000e+00 : f32
    %264 = vector.broadcast %cst_89 : f32 to vector<16x32xf32>
    %265 = arith.addf %264, %263 : vector<16x32xf32>
    %266 = arith.divf %264, %265 : vector<16x32xf32>
    %267 = vector.extract_strided_slice %255 {offsets = [0, 32], sizes = [16, 32], strides = [1, 1]} : vector<16x128xf32> to vector<16x32xf32>
    %268 = arith.negf %267 : vector<16x32xf32>
    %269 = math.exp %268 : vector<16x32xf32>
    %cst_90 = arith.constant 1.000000e+00 : f32
    %270 = vector.broadcast %cst_90 : f32 to vector<16x32xf32>
    %271 = arith.addf %270, %269 : vector<16x32xf32>
    %272 = arith.divf %270, %271 : vector<16x32xf32>
    %273 = vector.extract_strided_slice %255 {offsets = [0, 64], sizes = [16, 32], strides = [1, 1]} : vector<16x128xf32> to vector<16x32xf32>
    %274 = math.tanh %273 : vector<16x32xf32>
    %275 = vector.extract_strided_slice %255 {offsets = [0, 96], sizes = [16, 32], strides = [1, 1]} : vector<16x128xf32> to vector<16x32xf32>
    %276 = arith.negf %275 : vector<16x32xf32>
    %277 = math.exp %276 : vector<16x32xf32>
    %cst_91 = arith.constant 1.000000e+00 : f32
    %278 = vector.broadcast %cst_91 : f32 to vector<16x32xf32>
    %279 = arith.addf %278, %277 : vector<16x32xf32>
    %280 = arith.divf %278, %279 : vector<16x32xf32>
    %281 = arith.mulf %272, %212 : vector<16x32xf32>
    %282 = arith.mulf %266, %274 : vector<16x32xf32>
    %283 = arith.addf %281, %282 : vector<16x32xf32>
    %284 = math.tanh %283 : vector<16x32xf32>
    %285 = arith.mulf %280, %284 : vector<16x32xf32>
    %286 = vector.extract_strided_slice %260 {offsets = [0, 0], sizes = [16, 32], strides = [1, 1]} : vector<16x128xf32> to vector<16x32xf32>
    %287 = arith.negf %286 : vector<16x32xf32>
    %288 = math.exp %287 : vector<16x32xf32>
    %cst_92 = arith.constant 1.000000e+00 : f32
    %289 = vector.broadcast %cst_92 : f32 to vector<16x32xf32>
    %290 = arith.addf %289, %288 : vector<16x32xf32>
    %291 = arith.divf %289, %290 : vector<16x32xf32>
    %292 = vector.extract_strided_slice %260 {offsets = [0, 32], sizes = [16, 32], strides = [1, 1]} : vector<16x128xf32> to vector<16x32xf32>
    %293 = arith.negf %292 : vector<16x32xf32>
    %294 = math.exp %293 : vector<16x32xf32>
    %cst_93 = arith.constant 1.000000e+00 : f32
    %295 = vector.broadcast %cst_93 : f32 to vector<16x32xf32>
    %296 = arith.addf %295, %294 : vector<16x32xf32>
    %297 = arith.divf %295, %296 : vector<16x32xf32>
    %298 = vector.extract_strided_slice %260 {offsets = [0, 64], sizes = [16, 32], strides = [1, 1]} : vector<16x128xf32> to vector<16x32xf32>
    %299 = math.tanh %298 : vector<16x32xf32>
    %300 = vector.extract_strided_slice %260 {offsets = [0, 96], sizes = [16, 32], strides = [1, 1]} : vector<16x128xf32> to vector<16x32xf32>
    %301 = arith.negf %300 : vector<16x32xf32>
    %302 = math.exp %301 : vector<16x32xf32>
    %cst_94 = arith.constant 1.000000e+00 : f32
    %303 = vector.broadcast %cst_94 : f32 to vector<16x32xf32>
    %304 = arith.addf %303, %302 : vector<16x32xf32>
    %305 = arith.divf %303, %304 : vector<16x32xf32>
    %306 = arith.mulf %297, %237 : vector<16x32xf32>
    %307 = arith.mulf %291, %299 : vector<16x32xf32>
    %308 = arith.addf %306, %307 : vector<16x32xf32>
    %309 = math.tanh %308 : vector<16x32xf32>
    %310 = arith.mulf %305, %309 : vector<16x32xf32>
    %311 = arith.truncf %285 : vector<16x32xf32> to vector<16x32xbf16>
    %312 = arith.index_cast %247 : i32 to index
    %c0_95 = arith.constant 0 : index
    %313 = vector.load %arg8[%312, %c0_95] : memref<128x32xbf16, #tpu.memory_space<vmem>>, vector<16x32xbf16>
    tpu.vector_store %arg8[%312, %c0_95], %311 {strides = array<i32>} : memref<128x32xbf16, #tpu.memory_space<vmem>>, vector<16x32xbf16>,
    %314 = arith.truncf %310 : vector<16x32xf32> to vector<16x32xbf16>
    %315 = arith.index_cast %250 : i32 to index
    %c0_96 = arith.constant 0 : index
    %316 = vector.load %arg9[%315, %c0_96] : memref<128x32xbf16, #tpu.memory_space<vmem>>, vector<16x32xbf16>
    tpu.vector_store %arg9[%315, %c0_96], %314 {strides = array<i32>} : memref<128x32xbf16, #tpu.memory_space<vmem>>, vector<16x32xbf16>,
    %c4_i32 = arith.constant 4 : i32
    %c16_i32_97 = arith.constant 16 : i32
    %317 = arith.muli %c4_i32, %c16_i32_97 : i32
    %318 = tpu.assume_multiple %317, 8 : i32
    %c7_i32_98 = arith.constant 7 : i32
    %319 = arith.subi %c7_i32_98, %c4_i32 : i32
    %c16_i32_99 = arith.constant 16 : i32
    %320 = arith.muli %319, %c16_i32_99 : i32
    %321 = tpu.assume_multiple %320, 8 : i32
    %322 = arith.index_cast %318 : i32 to index
    %c0_100 = arith.constant 0 : index
    %323 = vector.load %arg14[%322, %c0_100] : memref<128x128xf32, #tpu.memory_space<vmem>>, vector<16x128xf32>
    %324 = arith.truncf %285 : vector<16x32xf32> to vector<16x32xbf16>
    %cst_101 = arith.constant dense<0.000000e+00> : vector<16x128xf32>
    %325 = tpu.matmul %324, %22, %cst_101 {dimension_numbers = #tpu.dot_dimension_numbers<[1], [0], [0], [1], [0, 0, 1, 1], [], []>} : vector<16x32xbf16>, vector<32x128xbf16>, vector<16x128xf32> -> vector<16x128xf32>
    %326 = arith.addf %323, %325 : vector<16x128xf32>
    %327 = arith.index_cast %321 : i32 to index
    %c0_102 = arith.constant 0 : index
    %328 = vector.load %arg15[%327, %c0_102] : memref<128x128xf32, #tpu.memory_space<vmem>>, vector<16x128xf32>
    %329 = arith.truncf %310 : vector<16x32xf32> to vector<16x32xbf16>
    %cst_103 = arith.constant dense<0.000000e+00> : vector<16x128xf32>
    %330 = tpu.matmul %329, %24, %cst_103 {dimension_numbers = #tpu.dot_dimension_numbers<[1], [0], [0], [1], [0, 0, 1, 1], [], []>} : vector<16x32xbf16>, vector<32x128xbf16>, vector<16x128xf32> -> vector<16x128xf32>
    %331 = arith.addf %328, %330 : vector<16x128xf32>
    %332 = vector.extract_strided_slice %326 {offsets = [0, 0], sizes = [16, 32], strides = [1, 1]} : vector<16x128xf32> to vector<16x32xf32>
    %333 = arith.negf %332 : vector<16x32xf32>
    %334 = math.exp %333 : vector<16x32xf32>
    %cst_104 = arith.constant 1.000000e+00 : f32
    %335 = vector.broadcast %cst_104 : f32 to vector<16x32xf32>
    %336 = arith.addf %335, %334 : vector<16x32xf32>
    %337 = arith.divf %335, %336 : vector<16x32xf32>
    %338 = vector.extract_strided_slice %326 {offsets = [0, 32], sizes = [16, 32], strides = [1, 1]} : vector<16x128xf32> to vector<16x32xf32>
    %339 = arith.negf %338 : vector<16x32xf32>
    %340 = math.exp %339 : vector<16x32xf32>
    %cst_105 = arith.constant 1.000000e+00 : f32
    %341 = vector.broadcast %cst_105 : f32 to vector<16x32xf32>
    %342 = arith.addf %341, %340 : vector<16x32xf32>
    %343 = arith.divf %341, %342 : vector<16x32xf32>
    %344 = vector.extract_strided_slice %326 {offsets = [0, 64], sizes = [16, 32], strides = [1, 1]} : vector<16x128xf32> to vector<16x32xf32>
    %345 = math.tanh %344 : vector<16x32xf32>
    %346 = vector.extract_strided_slice %326 {offsets = [0, 96], sizes = [16, 32], strides = [1, 1]} : vector<16x128xf32> to vector<16x32xf32>
    %347 = arith.negf %346 : vector<16x32xf32>
    %348 = math.exp %347 : vector<16x32xf32>
    %cst_106 = arith.constant 1.000000e+00 : f32
    %349 = vector.broadcast %cst_106 : f32 to vector<16x32xf32>
    %350 = arith.addf %349, %348 : vector<16x32xf32>
    %351 = arith.divf %349, %350 : vector<16x32xf32>
    %352 = arith.mulf %343, %283 : vector<16x32xf32>
    %353 = arith.mulf %337, %345 : vector<16x32xf32>
    %354 = arith.addf %352, %353 : vector<16x32xf32>
    %355 = math.tanh %354 : vector<16x32xf32>
    %356 = arith.mulf %351, %355 : vector<16x32xf32>
    %357 = vector.extract_strided_slice %331 {offsets = [0, 0], sizes = [16, 32], strides = [1, 1]} : vector<16x128xf32> to vector<16x32xf32>
    %358 = arith.negf %357 : vector<16x32xf32>
    %359 = math.exp %358 : vector<16x32xf32>
    %cst_107 = arith.constant 1.000000e+00 : f32
    %360 = vector.broadcast %cst_107 : f32 to vector<16x32xf32>
    %361 = arith.addf %360, %359 : vector<16x32xf32>
    %362 = arith.divf %360, %361 : vector<16x32xf32>
    %363 = vector.extract_strided_slice %331 {offsets = [0, 32], sizes = [16, 32], strides = [1, 1]} : vector<16x128xf32> to vector<16x32xf32>
    %364 = arith.negf %363 : vector<16x32xf32>
    %365 = math.exp %364 : vector<16x32xf32>
    %cst_108 = arith.constant 1.000000e+00 : f32
    %366 = vector.broadcast %cst_108 : f32 to vector<16x32xf32>
    %367 = arith.addf %366, %365 : vector<16x32xf32>
    %368 = arith.divf %366, %367 : vector<16x32xf32>
    %369 = vector.extract_strided_slice %331 {offsets = [0, 64], sizes = [16, 32], strides = [1, 1]} : vector<16x128xf32> to vector<16x32xf32>
    %370 = math.tanh %369 : vector<16x32xf32>
    %371 = vector.extract_strided_slice %331 {offsets = [0, 96], sizes = [16, 32], strides = [1, 1]} : vector<16x128xf32> to vector<16x32xf32>
    %372 = arith.negf %371 : vector<16x32xf32>
    %373 = math.exp %372 : vector<16x32xf32>
    %cst_109 = arith.constant 1.000000e+00 : f32
    %374 = vector.broadcast %cst_109 : f32 to vector<16x32xf32>
    %375 = arith.addf %374, %373 : vector<16x32xf32>
    %376 = arith.divf %374, %375 : vector<16x32xf32>
    %377 = arith.mulf %368, %308 : vector<16x32xf32>
    %378 = arith.mulf %362, %370 : vector<16x32xf32>
    %379 = arith.addf %377, %378 : vector<16x32xf32>
    %380 = math.tanh %379 : vector<16x32xf32>
    %381 = arith.mulf %376, %380 : vector<16x32xf32>
    %382 = arith.truncf %356 : vector<16x32xf32> to vector<16x32xbf16>
    %383 = arith.index_cast %318 : i32 to index
    %c0_110 = arith.constant 0 : index
    %384 = vector.load %arg8[%383, %c0_110] : memref<128x32xbf16, #tpu.memory_space<vmem>>, vector<16x32xbf16>
    tpu.vector_store %arg8[%383, %c0_110], %382 {strides = array<i32>} : memref<128x32xbf16, #tpu.memory_space<vmem>>, vector<16x32xbf16>,
    %385 = arith.truncf %381 : vector<16x32xf32> to vector<16x32xbf16>
    %386 = arith.index_cast %321 : i32 to index
    %c0_111 = arith.constant 0 : index
    %387 = vector.load %arg9[%386, %c0_111] : memref<128x32xbf16, #tpu.memory_space<vmem>>, vector<16x32xbf16>
    tpu.vector_store %arg9[%386, %c0_111], %385 {strides = array<i32>} : memref<128x32xbf16, #tpu.memory_space<vmem>>, vector<16x32xbf16>,
    %c5_i32 = arith.constant 5 : i32
    %c16_i32_112 = arith.constant 16 : i32
    %388 = arith.muli %c5_i32, %c16_i32_112 : i32
    %389 = tpu.assume_multiple %388, 8 : i32
    %c7_i32_113 = arith.constant 7 : i32
    %390 = arith.subi %c7_i32_113, %c5_i32 : i32
    %c16_i32_114 = arith.constant 16 : i32
    %391 = arith.muli %390, %c16_i32_114 : i32
    %392 = tpu.assume_multiple %391, 8 : i32
    %393 = arith.index_cast %389 : i32 to index
    %c0_115 = arith.constant 0 : index
    %394 = vector.load %arg14[%393, %c0_115] : memref<128x128xf32, #tpu.memory_space<vmem>>, vector<16x128xf32>
    %395 = arith.truncf %356 : vector<16x32xf32> to vector<16x32xbf16>
    %cst_116 = arith.constant dense<0.000000e+00> : vector<16x128xf32>
    %396 = tpu.matmul %395, %22, %cst_116 {dimension_numbers = #tpu.dot_dimension_numbers<[1], [0], [0], [1], [0, 0, 1, 1], [], []>} : vector<16x32xbf16>, vector<32x128xbf16>, vector<16x128xf32> -> vector<16x128xf32>
    %397 = arith.addf %394, %396 : vector<16x128xf32>
    %398 = arith.index_cast %392 : i32 to index
    %c0_117 = arith.constant 0 : index
    %399 = vector.load %arg15[%398, %c0_117] : memref<128x128xf32, #tpu.memory_space<vmem>>, vector<16x128xf32>
    %400 = arith.truncf %381 : vector<16x32xf32> to vector<16x32xbf16>
    %cst_118 = arith.constant dense<0.000000e+00> : vector<16x128xf32>
    %401 = tpu.matmul %400, %24, %cst_118 {dimension_numbers = #tpu.dot_dimension_numbers<[1], [0], [0], [1], [0, 0, 1, 1], [], []>} : vector<16x32xbf16>, vector<32x128xbf16>, vector<16x128xf32> -> vector<16x128xf32>
    %402 = arith.addf %399, %401 : vector<16x128xf32>
    %403 = vector.extract_strided_slice %397 {offsets = [0, 0], sizes = [16, 32], strides = [1, 1]} : vector<16x128xf32> to vector<16x32xf32>
    %404 = arith.negf %403 : vector<16x32xf32>
    %405 = math.exp %404 : vector<16x32xf32>
    %cst_119 = arith.constant 1.000000e+00 : f32
    %406 = vector.broadcast %cst_119 : f32 to vector<16x32xf32>
    %407 = arith.addf %406, %405 : vector<16x32xf32>
    %408 = arith.divf %406, %407 : vector<16x32xf32>
    %409 = vector.extract_strided_slice %397 {offsets = [0, 32], sizes = [16, 32], strides = [1, 1]} : vector<16x128xf32> to vector<16x32xf32>
    %410 = arith.negf %409 : vector<16x32xf32>
    %411 = math.exp %410 : vector<16x32xf32>
    %cst_120 = arith.constant 1.000000e+00 : f32
    %412 = vector.broadcast %cst_120 : f32 to vector<16x32xf32>
    %413 = arith.addf %412, %411 : vector<16x32xf32>
    %414 = arith.divf %412, %413 : vector<16x32xf32>
    %415 = vector.extract_strided_slice %397 {offsets = [0, 64], sizes = [16, 32], strides = [1, 1]} : vector<16x128xf32> to vector<16x32xf32>
    %416 = math.tanh %415 : vector<16x32xf32>
    %417 = vector.extract_strided_slice %397 {offsets = [0, 96], sizes = [16, 32], strides = [1, 1]} : vector<16x128xf32> to vector<16x32xf32>
    %418 = arith.negf %417 : vector<16x32xf32>
    %419 = math.exp %418 : vector<16x32xf32>
    %cst_121 = arith.constant 1.000000e+00 : f32
    %420 = vector.broadcast %cst_121 : f32 to vector<16x32xf32>
    %421 = arith.addf %420, %419 : vector<16x32xf32>
    %422 = arith.divf %420, %421 : vector<16x32xf32>
    %423 = arith.mulf %414, %354 : vector<16x32xf32>
    %424 = arith.mulf %408, %416 : vector<16x32xf32>
    %425 = arith.addf %423, %424 : vector<16x32xf32>
    %426 = math.tanh %425 : vector<16x32xf32>
    %427 = arith.mulf %422, %426 : vector<16x32xf32>
    %428 = vector.extract_strided_slice %402 {offsets = [0, 0], sizes = [16, 32], strides = [1, 1]} : vector<16x128xf32> to vector<16x32xf32>
    %429 = arith.negf %428 : vector<16x32xf32>
    %430 = math.exp %429 : vector<16x32xf32>
    %cst_122 = arith.constant 1.000000e+00 : f32
    %431 = vector.broadcast %cst_122 : f32 to vector<16x32xf32>
    %432 = arith.addf %431, %430 : vector<16x32xf32>
    %433 = arith.divf %431, %432 : vector<16x32xf32>
    %434 = vector.extract_strided_slice %402 {offsets = [0, 32], sizes = [16, 32], strides = [1, 1]} : vector<16x128xf32> to vector<16x32xf32>
    %435 = arith.negf %434 : vector<16x32xf32>
    %436 = math.exp %435 : vector<16x32xf32>
    %cst_123 = arith.constant 1.000000e+00 : f32
    %437 = vector.broadcast %cst_123 : f32 to vector<16x32xf32>
    %438 = arith.addf %437, %436 : vector<16x32xf32>
    %439 = arith.divf %437, %438 : vector<16x32xf32>
    %440 = vector.extract_strided_slice %402 {offsets = [0, 64], sizes = [16, 32], strides = [1, 1]} : vector<16x128xf32> to vector<16x32xf32>
    %441 = math.tanh %440 : vector<16x32xf32>
    %442 = vector.extract_strided_slice %402 {offsets = [0, 96], sizes = [16, 32], strides = [1, 1]} : vector<16x128xf32> to vector<16x32xf32>
    %443 = arith.negf %442 : vector<16x32xf32>
    %444 = math.exp %443 : vector<16x32xf32>
    %cst_124 = arith.constant 1.000000e+00 : f32
    %445 = vector.broadcast %cst_124 : f32 to vector<16x32xf32>
    %446 = arith.addf %445, %444 : vector<16x32xf32>
    %447 = arith.divf %445, %446 : vector<16x32xf32>
    %448 = arith.mulf %439, %379 : vector<16x32xf32>
    %449 = arith.mulf %433, %441 : vector<16x32xf32>
    %450 = arith.addf %448, %449 : vector<16x32xf32>
    %451 = math.tanh %450 : vector<16x32xf32>
    %452 = arith.mulf %447, %451 : vector<16x32xf32>
    %453 = arith.truncf %427 : vector<16x32xf32> to vector<16x32xbf16>
    %454 = arith.index_cast %389 : i32 to index
    %c0_125 = arith.constant 0 : index
    %455 = vector.load %arg8[%454, %c0_125] : memref<128x32xbf16, #tpu.memory_space<vmem>>, vector<16x32xbf16>
    tpu.vector_store %arg8[%454, %c0_125], %453 {strides = array<i32>} : memref<128x32xbf16, #tpu.memory_space<vmem>>, vector<16x32xbf16>,
    %456 = arith.truncf %452 : vector<16x32xf32> to vector<16x32xbf16>
    %457 = arith.index_cast %392 : i32 to index
    %c0_126 = arith.constant 0 : index
    %458 = vector.load %arg9[%457, %c0_126] : memref<128x32xbf16, #tpu.memory_space<vmem>>, vector<16x32xbf16>
    tpu.vector_store %arg9[%457, %c0_126], %456 {strides = array<i32>} : memref<128x32xbf16, #tpu.memory_space<vmem>>, vector<16x32xbf16>,
    %c6_i32 = arith.constant 6 : i32
    %c16_i32_127 = arith.constant 16 : i32
    %459 = arith.muli %c6_i32, %c16_i32_127 : i32
    %460 = tpu.assume_multiple %459, 8 : i32
    %c7_i32_128 = arith.constant 7 : i32
    %461 = arith.subi %c7_i32_128, %c6_i32 : i32
    %c16_i32_129 = arith.constant 16 : i32
    %462 = arith.muli %461, %c16_i32_129 : i32
    %463 = tpu.assume_multiple %462, 8 : i32
    %464 = arith.index_cast %460 : i32 to index
    %c0_130 = arith.constant 0 : index
    %465 = vector.load %arg14[%464, %c0_130] : memref<128x128xf32, #tpu.memory_space<vmem>>, vector<16x128xf32>
    %466 = arith.truncf %427 : vector<16x32xf32> to vector<16x32xbf16>
    %cst_131 = arith.constant dense<0.000000e+00> : vector<16x128xf32>
    %467 = tpu.matmul %466, %22, %cst_131 {dimension_numbers = #tpu.dot_dimension_numbers<[1], [0], [0], [1], [0, 0, 1, 1], [], []>} : vector<16x32xbf16>, vector<32x128xbf16>, vector<16x128xf32> -> vector<16x128xf32>
    %468 = arith.addf %465, %467 : vector<16x128xf32>
    %469 = arith.index_cast %463 : i32 to index
    %c0_132 = arith.constant 0 : index
    %470 = vector.load %arg15[%469, %c0_132] : memref<128x128xf32, #tpu.memory_space<vmem>>, vector<16x128xf32>
    %471 = arith.truncf %452 : vector<16x32xf32> to vector<16x32xbf16>
    %cst_133 = arith.constant dense<0.000000e+00> : vector<16x128xf32>
    %472 = tpu.matmul %471, %24, %cst_133 {dimension_numbers = #tpu.dot_dimension_numbers<[1], [0], [0], [1], [0, 0, 1, 1], [], []>} : vector<16x32xbf16>, vector<32x128xbf16>, vector<16x128xf32> -> vector<16x128xf32>
    %473 = arith.addf %470, %472 : vector<16x128xf32>
    %474 = vector.extract_strided_slice %468 {offsets = [0, 0], sizes = [16, 32], strides = [1, 1]} : vector<16x128xf32> to vector<16x32xf32>
    %475 = arith.negf %474 : vector<16x32xf32>
    %476 = math.exp %475 : vector<16x32xf32>
    %cst_134 = arith.constant 1.000000e+00 : f32
    %477 = vector.broadcast %cst_134 : f32 to vector<16x32xf32>
    %478 = arith.addf %477, %476 : vector<16x32xf32>
    %479 = arith.divf %477, %478 : vector<16x32xf32>
    %480 = vector.extract_strided_slice %468 {offsets = [0, 32], sizes = [16, 32], strides = [1, 1]} : vector<16x128xf32> to vector<16x32xf32>
    %481 = arith.negf %480 : vector<16x32xf32>
    %482 = math.exp %481 : vector<16x32xf32>
    %cst_135 = arith.constant 1.000000e+00 : f32
    %483 = vector.broadcast %cst_135 : f32 to vector<16x32xf32>
    %484 = arith.addf %483, %482 : vector<16x32xf32>
    %485 = arith.divf %483, %484 : vector<16x32xf32>
    %486 = vector.extract_strided_slice %468 {offsets = [0, 64], sizes = [16, 32], strides = [1, 1]} : vector<16x128xf32> to vector<16x32xf32>
    %487 = math.tanh %486 : vector<16x32xf32>
    %488 = vector.extract_strided_slice %468 {offsets = [0, 96], sizes = [16, 32], strides = [1, 1]} : vector<16x128xf32> to vector<16x32xf32>
    %489 = arith.negf %488 : vector<16x32xf32>
    %490 = math.exp %489 : vector<16x32xf32>
    %cst_136 = arith.constant 1.000000e+00 : f32
    %491 = vector.broadcast %cst_136 : f32 to vector<16x32xf32>
    %492 = arith.addf %491, %490 : vector<16x32xf32>
    %493 = arith.divf %491, %492 : vector<16x32xf32>
    %494 = arith.mulf %485, %425 : vector<16x32xf32>
    %495 = arith.mulf %479, %487 : vector<16x32xf32>
    %496 = arith.addf %494, %495 : vector<16x32xf32>
    %497 = math.tanh %496 : vector<16x32xf32>
    %498 = arith.mulf %493, %497 : vector<16x32xf32>
    %499 = vector.extract_strided_slice %473 {offsets = [0, 0], sizes = [16, 32], strides = [1, 1]} : vector<16x128xf32> to vector<16x32xf32>
    %500 = arith.negf %499 : vector<16x32xf32>
    %501 = math.exp %500 : vector<16x32xf32>
    %cst_137 = arith.constant 1.000000e+00 : f32
    %502 = vector.broadcast %cst_137 : f32 to vector<16x32xf32>
    %503 = arith.addf %502, %501 : vector<16x32xf32>
    %504 = arith.divf %502, %503 : vector<16x32xf32>
    %505 = vector.extract_strided_slice %473 {offsets = [0, 32], sizes = [16, 32], strides = [1, 1]} : vector<16x128xf32> to vector<16x32xf32>
    %506 = arith.negf %505 : vector<16x32xf32>
    %507 = math.exp %506 : vector<16x32xf32>
    %cst_138 = arith.constant 1.000000e+00 : f32
    %508 = vector.broadcast %cst_138 : f32 to vector<16x32xf32>
    %509 = arith.addf %508, %507 : vector<16x32xf32>
    %510 = arith.divf %508, %509 : vector<16x32xf32>
    %511 = vector.extract_strided_slice %473 {offsets = [0, 64], sizes = [16, 32], strides = [1, 1]} : vector<16x128xf32> to vector<16x32xf32>
    %512 = math.tanh %511 : vector<16x32xf32>
    %513 = vector.extract_strided_slice %473 {offsets = [0, 96], sizes = [16, 32], strides = [1, 1]} : vector<16x128xf32> to vector<16x32xf32>
    %514 = arith.negf %513 : vector<16x32xf32>
    %515 = math.exp %514 : vector<16x32xf32>
    %cst_139 = arith.constant 1.000000e+00 : f32
    %516 = vector.broadcast %cst_139 : f32 to vector<16x32xf32>
    %517 = arith.addf %516, %515 : vector<16x32xf32>
    %518 = arith.divf %516, %517 : vector<16x32xf32>
    %519 = arith.mulf %510, %450 : vector<16x32xf32>
    %520 = arith.mulf %504, %512 : vector<16x32xf32>
    %521 = arith.addf %519, %520 : vector<16x32xf32>
    %522 = math.tanh %521 : vector<16x32xf32>
    %523 = arith.mulf %518, %522 : vector<16x32xf32>
    %524 = arith.truncf %498 : vector<16x32xf32> to vector<16x32xbf16>
    %525 = arith.index_cast %460 : i32 to index
    %c0_140 = arith.constant 0 : index
    %526 = vector.load %arg8[%525, %c0_140] : memref<128x32xbf16, #tpu.memory_space<vmem>>, vector<16x32xbf16>
    tpu.vector_store %arg8[%525, %c0_140], %524 {strides = array<i32>} : memref<128x32xbf16, #tpu.memory_space<vmem>>, vector<16x32xbf16>,
    %527 = arith.truncf %523 : vector<16x32xf32> to vector<16x32xbf16>
    %528 = arith.index_cast %463 : i32 to index
    %c0_141 = arith.constant 0 : index
    %529 = vector.load %arg9[%528, %c0_141] : memref<128x32xbf16, #tpu.memory_space<vmem>>, vector<16x32xbf16>
    tpu.vector_store %arg9[%528, %c0_141], %527 {strides = array<i32>} : memref<128x32xbf16, #tpu.memory_space<vmem>>, vector<16x32xbf16>,
    %c7_i32_142 = arith.constant 7 : i32
    %c16_i32_143 = arith.constant 16 : i32
    %530 = arith.muli %c7_i32_142, %c16_i32_143 : i32
    %531 = tpu.assume_multiple %530, 8 : i32
    %c7_i32_144 = arith.constant 7 : i32
    %532 = arith.subi %c7_i32_144, %c7_i32_142 : i32
    %c16_i32_145 = arith.constant 16 : i32
    %533 = arith.muli %532, %c16_i32_145 : i32
    %534 = tpu.assume_multiple %533, 8 : i32
    %535 = arith.index_cast %531 : i32 to index
    %c0_146 = arith.constant 0 : index
    %536 = vector.load %arg14[%535, %c0_146] : memref<128x128xf32, #tpu.memory_space<vmem>>, vector<16x128xf32>
    %537 = arith.truncf %498 : vector<16x32xf32> to vector<16x32xbf16>
    %cst_147 = arith.constant dense<0.000000e+00> : vector<16x128xf32>
    %538 = tpu.matmul %537, %22, %cst_147 {dimension_numbers = #tpu.dot_dimension_numbers<[1], [0], [0], [1], [0, 0, 1, 1], [], []>} : vector<16x32xbf16>, vector<32x128xbf16>, vector<16x128xf32> -> vector<16x128xf32>
    %539 = arith.addf %536, %538 : vector<16x128xf32>
    %540 = arith.index_cast %534 : i32 to index
    %c0_148 = arith.constant 0 : index
    %541 = vector.load %arg15[%540, %c0_148] : memref<128x128xf32, #tpu.memory_space<vmem>>, vector<16x128xf32>
    %542 = arith.truncf %523 : vector<16x32xf32> to vector<16x32xbf16>
    %cst_149 = arith.constant dense<0.000000e+00> : vector<16x128xf32>
    %543 = tpu.matmul %542, %24, %cst_149 {dimension_numbers = #tpu.dot_dimension_numbers<[1], [0], [0], [1], [0, 0, 1, 1], [], []>} : vector<16x32xbf16>, vector<32x128xbf16>, vector<16x128xf32> -> vector<16x128xf32>
    %544 = arith.addf %541, %543 : vector<16x128xf32>
    %545 = vector.extract_strided_slice %539 {offsets = [0, 0], sizes = [16, 32], strides = [1, 1]} : vector<16x128xf32> to vector<16x32xf32>
    %546 = arith.negf %545 : vector<16x32xf32>
    %547 = math.exp %546 : vector<16x32xf32>
    %cst_150 = arith.constant 1.000000e+00 : f32
    %548 = vector.broadcast %cst_150 : f32 to vector<16x32xf32>
    %549 = arith.addf %548, %547 : vector<16x32xf32>
    %550 = arith.divf %548, %549 : vector<16x32xf32>
    %551 = vector.extract_strided_slice %539 {offsets = [0, 32], sizes = [16, 32], strides = [1, 1]} : vector<16x128xf32> to vector<16x32xf32>
    %552 = arith.negf %551 : vector<16x32xf32>
    %553 = math.exp %552 : vector<16x32xf32>
    %cst_151 = arith.constant 1.000000e+00 : f32
    %554 = vector.broadcast %cst_151 : f32 to vector<16x32xf32>
    %555 = arith.addf %554, %553 : vector<16x32xf32>
    %556 = arith.divf %554, %555 : vector<16x32xf32>
    %557 = vector.extract_strided_slice %539 {offsets = [0, 64], sizes = [16, 32], strides = [1, 1]} : vector<16x128xf32> to vector<16x32xf32>
    %558 = math.tanh %557 : vector<16x32xf32>
    %559 = vector.extract_strided_slice %539 {offsets = [0, 96], sizes = [16, 32], strides = [1, 1]} : vector<16x128xf32> to vector<16x32xf32>
    %560 = arith.negf %559 : vector<16x32xf32>
    %561 = math.exp %560 : vector<16x32xf32>
    %cst_152 = arith.constant 1.000000e+00 : f32
    %562 = vector.broadcast %cst_152 : f32 to vector<16x32xf32>
    %563 = arith.addf %562, %561 : vector<16x32xf32>
    %564 = arith.divf %562, %563 : vector<16x32xf32>
    %565 = arith.mulf %556, %496 : vector<16x32xf32>
    %566 = arith.mulf %550, %558 : vector<16x32xf32>
    %567 = arith.addf %565, %566 : vector<16x32xf32>
    %568 = math.tanh %567 : vector<16x32xf32>
    %569 = arith.mulf %564, %568 : vector<16x32xf32>
    %570 = vector.extract_strided_slice %544 {offsets = [0, 0], sizes = [16, 32], strides = [1, 1]} : vector<16x128xf32> to vector<16x32xf32>
    %571 = arith.negf %570 : vector<16x32xf32>
    %572 = math.exp %571 : vector<16x32xf32>
    %cst_153 = arith.constant 1.000000e+00 : f32
    %573 = vector.broadcast %cst_153 : f32 to vector<16x32xf32>
    %574 = arith.addf %573, %572 : vector<16x32xf32>
    %575 = arith.divf %573, %574 : vector<16x32xf32>
    %576 = vector.extract_strided_slice %544 {offsets = [0, 32], sizes = [16, 32], strides = [1, 1]} : vector<16x128xf32> to vector<16x32xf32>
    %577 = arith.negf %576 : vector<16x32xf32>
    %578 = math.exp %577 : vector<16x32xf32>
    %cst_154 = arith.constant 1.000000e+00 : f32
    %579 = vector.broadcast %cst_154 : f32 to vector<16x32xf32>
    %580 = arith.addf %579, %578 : vector<16x32xf32>
    %581 = arith.divf %579, %580 : vector<16x32xf32>
    %582 = vector.extract_strided_slice %544 {offsets = [0, 64], sizes = [16, 32], strides = [1, 1]} : vector<16x128xf32> to vector<16x32xf32>
    %583 = math.tanh %582 : vector<16x32xf32>
    %584 = vector.extract_strided_slice %544 {offsets = [0, 96], sizes = [16, 32], strides = [1, 1]} : vector<16x128xf32> to vector<16x32xf32>
    %585 = arith.negf %584 : vector<16x32xf32>
    %586 = math.exp %585 : vector<16x32xf32>
    %cst_155 = arith.constant 1.000000e+00 : f32
    %587 = vector.broadcast %cst_155 : f32 to vector<16x32xf32>
    %588 = arith.addf %587, %586 : vector<16x32xf32>
    %589 = arith.divf %587, %588 : vector<16x32xf32>
    %590 = arith.mulf %581, %521 : vector<16x32xf32>
    %591 = arith.mulf %575, %583 : vector<16x32xf32>
    %592 = arith.addf %590, %591 : vector<16x32xf32>
    %593 = math.tanh %592 : vector<16x32xf32>
    %594 = arith.mulf %589, %593 : vector<16x32xf32>
    %595 = arith.truncf %569 : vector<16x32xf32> to vector<16x32xbf16>
    %596 = arith.index_cast %531 : i32 to index
    %c0_156 = arith.constant 0 : index
    %597 = vector.load %arg8[%596, %c0_156] : memref<128x32xbf16, #tpu.memory_space<vmem>>, vector<16x32xbf16>
    tpu.vector_store %arg8[%596, %c0_156], %595 {strides = array<i32>} : memref<128x32xbf16, #tpu.memory_space<vmem>>, vector<16x32xbf16>,
    %598 = arith.truncf %594 : vector<16x32xf32> to vector<16x32xbf16>
    %599 = arith.index_cast %534 : i32 to index
    %c0_157 = arith.constant 0 : index
    %600 = vector.load %arg9[%599, %c0_157] : memref<128x32xbf16, #tpu.memory_space<vmem>>, vector<16x32xbf16>
    tpu.vector_store %arg9[%599, %c0_157], %598 {strides = array<i32>} : memref<128x32xbf16, #tpu.memory_space<vmem>>, vector<16x32xbf16>,
    %c8_i32 = arith.constant 8 : i32
    %c0_158 = arith.constant 0 : index
    %c0_159 = arith.constant 0 : index
    %c0_160 = arith.constant 0 : index
    %601 = vector.load %arg12[%c0_158, %c0_159, %c0_160] : memref<2x16x32xf32, #tpu.memory_space<vmem>>, vector<1x16x32xf32>
    %602 = vector.shape_cast %601 : vector<1x16x32xf32> to vector<16x32xf32>
    %603 = vector.shape_cast %569 : vector<16x32xf32> to vector<1x16x32xf32>
    tpu.vector_store %arg12[%c0_158, %c0_159, %c0_160], %603 {strides = array<i32>} : memref<2x16x32xf32, #tpu.memory_space<vmem>>, vector<1x16x32xf32>,
    %c0_161 = arith.constant 0 : index
    %c0_162 = arith.constant 0 : index
    %c0_163 = arith.constant 0 : index
    %604 = vector.load %arg13[%c0_161, %c0_162, %c0_163] : memref<2x16x32xf32, #tpu.memory_space<vmem>>, vector<1x16x32xf32>
    %605 = vector.shape_cast %604 : vector<1x16x32xf32> to vector<16x32xf32>
    %606 = vector.shape_cast %567 : vector<16x32xf32> to vector<1x16x32xf32>
    tpu.vector_store %arg13[%c0_161, %c0_162, %c0_163], %606 {strides = array<i32>} : memref<2x16x32xf32, #tpu.memory_space<vmem>>, vector<1x16x32xf32>,
    %c1_164 = arith.constant 1 : index
    %c0_165 = arith.constant 0 : index
    %c0_166 = arith.constant 0 : index
    %607 = vector.load %arg12[%c1_164, %c0_165, %c0_166] : memref<2x16x32xf32, #tpu.memory_space<vmem>>, vector<1x16x32xf32>
    %608 = vector.shape_cast %607 : vector<1x16x32xf32> to vector<16x32xf32>
    %609 = vector.shape_cast %594 : vector<16x32xf32> to vector<1x16x32xf32>
    tpu.vector_store %arg12[%c1_164, %c0_165, %c0_166], %609 {strides = array<i32>} : memref<2x16x32xf32, #tpu.memory_space<vmem>>, vector<1x16x32xf32>,
    %c1_167 = arith.constant 1 : index
    %c0_168 = arith.constant 0 : index
    %c0_169 = arith.constant 0 : index
    %610 = vector.load %arg13[%c1_167, %c0_168, %c0_169] : memref<2x16x32xf32, #tpu.memory_space<vmem>>, vector<1x16x32xf32>
    %611 = vector.shape_cast %610 : vector<1x16x32xf32> to vector<16x32xf32>
    %612 = vector.shape_cast %592 : vector<16x32xf32> to vector<1x16x32xf32>
    tpu.vector_store %arg13[%c1_167, %c0_168, %c0_169], %612 {strides = array<i32>} : memref<2x16x32xf32, #tpu.memory_space<vmem>>, vector<1x16x32xf32>,
    %c0_i32_170 = arith.constant 0 : i32
    %613 = arith.cmpi eq, %arg0, %c0_i32_170 : i32
    %614 = arith.extui %613 : i1 to i32
    %c0_i32_171 = arith.constant 0 : i32
    %615 = arith.cmpi ne, %614, %c0_i32_171 : i32
    scf.if %615 {
      %c0_172 = arith.constant 0 : index
      %c0_173 = arith.constant 0 : index
      %c0_174 = arith.constant 0 : index
      %616 = vector.load %arg10[%c0_172, %c0_173, %c0_174] : memref<2x16x32xf32, #tpu.memory_space<vmem>>, vector<1x16x32xf32>
      %617 = vector.shape_cast %616 : vector<1x16x32xf32> to vector<16x32xf32>
      %618 = vector.shape_cast %569 : vector<16x32xf32> to vector<1x16x32xf32>
      tpu.vector_store %arg10[%c0_172, %c0_173, %c0_174], %618 {strides = array<i32>} : memref<2x16x32xf32, #tpu.memory_space<vmem>>, vector<1x16x32xf32>,
      %c1_175 = arith.constant 1 : index
      %c0_176 = arith.constant 0 : index
      %c0_177 = arith.constant 0 : index
      %619 = vector.load %arg10[%c1_175, %c0_176, %c0_177] : memref<2x16x32xf32, #tpu.memory_space<vmem>>, vector<1x16x32xf32>
      %620 = vector.shape_cast %619 : vector<1x16x32xf32> to vector<16x32xf32>
      %621 = vector.shape_cast %594 : vector<16x32xf32> to vector<1x16x32xf32>
      tpu.vector_store %arg10[%c1_175, %c0_176, %c0_177], %621 {strides = array<i32>} : memref<2x16x32xf32, #tpu.memory_space<vmem>>, vector<1x16x32xf32>,
      %c0_178 = arith.constant 0 : index
      %c0_179 = arith.constant 0 : index
      %c0_180 = arith.constant 0 : index
      %622 = vector.load %arg11[%c0_178, %c0_179, %c0_180] : memref<2x16x32xf32, #tpu.memory_space<vmem>>, vector<1x16x32xf32>
      %623 = vector.shape_cast %622 : vector<1x16x32xf32> to vector<16x32xf32>
      %624 = vector.shape_cast %567 : vector<16x32xf32> to vector<1x16x32xf32>
      tpu.vector_store %arg11[%c0_178, %c0_179, %c0_180], %624 {strides = array<i32>} : memref<2x16x32xf32, #tpu.memory_space<vmem>>, vector<1x16x32xf32>,
      %c1_181 = arith.constant 1 : index
      %c0_182 = arith.constant 0 : index
      %c0_183 = arith.constant 0 : index
      %625 = vector.load %arg11[%c1_181, %c0_182, %c0_183] : memref<2x16x32xf32, #tpu.memory_space<vmem>>, vector<1x16x32xf32>
      %626 = vector.shape_cast %625 : vector<1x16x32xf32> to vector<16x32xf32>
      %627 = vector.shape_cast %592 : vector<16x32xf32> to vector<1x16x32xf32>
      tpu.vector_store %arg11[%c1_181, %c0_182, %c0_183], %627 {strides = array<i32>} : memref<2x16x32xf32, #tpu.memory_space<vmem>>, vector<1x16x32xf32>,
    } else {
    }
    return
  }
  func.func @transform_0(%arg0: i32) -> (i32, i32) {
    %c0_i32 = arith.constant 0 : i32
    %c0_i32_0 = arith.constant 0 : i32
    return %arg0, %c0_i32 : i32, i32
  }
  func.func @transform_1(%arg0: i32) -> (i32, i32) {
    %c0_i32 = arith.constant 0 : i32
    %0 = arith.subi %c0_i32, %arg0 : i32
    %c0_i32_0 = arith.constant 0 : i32
    %c0_i32_1 = arith.constant 0 : i32
    return %0, %c0_i32_0 : i32, i32
  }
  func.func @transform_2(%arg0: i32) -> (i32, i32, i32) {
    %c0_i32 = arith.constant 0 : i32
    %c0_i32_0 = arith.constant 0 : i32
    %c0_i32_1 = arith.constant 0 : i32
    %c0_i32_2 = arith.constant 0 : i32
    return %c0_i32, %c0_i32_0, %c0_i32_1 : i32, i32, i32
  }
  func.func @transform_3(%arg0: i32) -> (i32, i32, i32) {
    %c0_i32 = arith.constant 0 : i32
    %c0_i32_0 = arith.constant 0 : i32
    %c0_i32_1 = arith.constant 0 : i32
    %c0_i32_2 = arith.constant 0 : i32
    return %c0_i32, %c0_i32_0, %c0_i32_1 : i32, i32, i32
  }
  func.func @transform_4(%arg0: i32) -> (i32, i32, i32) {
    %c0_i32 = arith.constant 0 : i32
    %c0_i32_0 = arith.constant 0 : i32
    %c0_i32_1 = arith.constant 0 : i32
    %c0_i32_2 = arith.constant 0 : i32
    return %c0_i32, %c0_i32_0, %c0_i32_1 : i32, i32, i32
  }
  func.func @transform_5(%arg0: i32) -> (i32, i32, i32) {
    %c0_i32 = arith.constant 0 : i32
    %c0_i32_0 = arith.constant 0 : i32
    %c0_i32_1 = arith.constant 0 : i32
    %c0_i32_2 = arith.constant 0 : i32
    return %c0_i32, %c0_i32_0, %c0_i32_1 : i32, i32, i32
  }
  func.func @transform_6(%arg0: i32) -> (i32, i32, i32) {
    %c0_i32 = arith.constant 0 : i32
    %c0_i32_0 = arith.constant 0 : i32
    %c0_i32_1 = arith.constant 0 : i32
    %c0_i32_2 = arith.constant 0 : i32
    return %c0_i32, %c0_i32_0, %c0_i32_1 : i32, i32, i32
  }
  func.func @transform_7(%arg0: i32) -> (i32, i32) {
    %c0_i32 = arith.constant 0 : i32
    %c0_i32_0 = arith.constant 0 : i32
    return %arg0, %c0_i32 : i32, i32
  }
  func.func @transform_8(%arg0: i32) -> (i32, i32) {
    %c0_i32 = arith.constant 0 : i32
    %0 = arith.subi %c0_i32, %arg0 : i32
    %c0_i32_0 = arith.constant 0 : i32
    %c0_i32_1 = arith.constant 0 : i32
    return %0, %c0_i32_0 : i32, i32
  }
  func.func @transform_9(%arg0: i32) -> (i32, i32, i32) {
    %c0_i32 = arith.constant 0 : i32
    %c0_i32_0 = arith.constant 0 : i32
    %c0_i32_1 = arith.constant 0 : i32
    %c0_i32_2 = arith.constant 0 : i32
    return %c0_i32, %c0_i32_0, %c0_i32_1 : i32, i32, i32
  }
  func.func @transform_10(%arg0: i32) -> (i32, i32, i32) {
    %c0_i32 = arith.constant 0 : i32
    %c0_i32_0 = arith.constant 0 : i32
    %c0_i32_1 = arith.constant 0 : i32
    %c0_i32_2 = arith.constant 0 : i32
    return %c0_i32, %c0_i32_0, %c0_i32_1 : i32, i32, i32
  }
}

</mosaic_0001>

<bundles_post_ra>
// kernel: tpu_custom_call.1
= control target key start
LH: loop header
LB: loop body
LE: loop exit
PB: predicated region body
PF: predicated region fallthrough
CT: control target
= control target key end

     0   :  { %16 = vsyncpa [#allocation7], 0  ;;  %vm77_vm0 = vcmask 261120   ;;  %vm157_vm1 = vcmask 130048   ;;  %s3937_s0 = inlined_call_operand.vmem [shape: bf16[128,16], index: 0, kind: input, shape index: {}]   ;;  %s3938_s1 = inlined_call_operand.vmem [shape: bf16[128,16], index: 1, kind: input, shape index: {}]   ;;  %s3939_s2 = inlined_call_operand.vmem [shape: f32[2,16,32], index: 2, kind: input, shape index: {}]   ;;  %s3940_s3 = inlined_call_operand.vmem [shape: f32[2,16,32], index: 3, kind: input, shape index: {}]   ;;  %s3941_s4 = inlined_call_operand.vmem [shape: bf16[2,16,128], index: 4, kind: input, shape index: {}]   ;;  %s3942_s5 = inlined_call_operand.vmem [shape: bf16[2,32,128], index: 5, kind: input, shape index: {}]   ;;  %s3943_s6 = inlined_call_operand.vmem [shape: f32[2,1,128], index: 6, kind: input, shape index: {}]   ;;  %s3944_s7 = inlined_call_operand.vmem [shape: bf16[128,32], index: 7, kind: output, shape index: {0}]   ;;  %s3945_s8 = inlined_call_operand.vmem [shape: bf16[128,32], index: 8, kind: output, shape index: {1}]   ;;  %s3946_s9 = inlined_call_operand.hbm [shape: f32[2,16,32], index: 9, kind: output, shape index: {2}]   ;;  %s3947_s10 = inlined_call_operand.hbm [shape: f32[2,16,32], index: 10, kind: output, shape index: {3}]  }
   0x1   :  { %v2641_v0 = vld [vmem:[%s3941_s4 + $0x8] sm:$0xff]  ;;  %v2633_v2 = vld [vmem:[%s3938_s1] sm:$0xff] }
   0x2   :  { %v3039_v1 = vld [vmem:[%s3942_s5 + $0x8] sm:$0xff]  ;;  %v73_v3 = vld [vmem:[%s3939_s2] sm:$0xff]  ;;  %346 = vmatpush.bf16.msra.mxu1 %v2641_v0 }
   0x3   :  { %v74_v4 = vld [vmem:[%s3939_s2 + $0x8] sm:$0xff]  ;;  %483 = vmatpush.bf16.msra.mxu2 %v3039_v1  ;;  %v3054_v5 = vld [vmem:[%s3942_s5] sm:$0xff]  ;;  %78 = vst.msk [vmem:[#allocation2] sm:$0xff] %vm77_vm0, %v73_v3 }
   0x4   :  { %v2632_v6 = vld [vmem:[%s3941_s4] sm:$0xff]  ;;  %79 = vst.msk [vmem:[#allocation2 + $0x8] sm:$0xff] %vm77_vm0, %v74_v4 }
   0x5   :  { %v2624_v7 = vld [vmem:[%s3937_s0] sm:$0xff]  ;;  %189 = vmatpush.bf16.msra.mxu0 %v2632_v6 }
   0x6   :  { %17 = vsyncpa [#allocation9], 0  ;;  %2520 = vmatmul.msk.bf16.vlgmr.msra.gmra.mxu1 %vm157_vm1, %v2633_v2  ;;  %v2634_v11 = vld [vmem:[%s3938_s1 + $0x8] sm:$0xff]  ;;  %v2635_v12 = vld [vmem:[%s3938_s1 + $0x10] sm:$0xff]  ;;  %s2973_s26 = smov 96   ;;  %s2974_s30 = smov [#allocation8]  }
   0x7   :  { %484 = vmatpush.bf16.msra.mxu2 %v3054_v5  ;;  %v2636_v13 = vld [vmem:[%s3938_s1 + $0x18] sm:$0xff]  ;;  %v75_v15 = vld [vmem:[%s3939_s2 + $0x10] sm:$0xff]  ;;  %v2637_v17 = vld [vmem:[%s3938_s1 + $0x20] sm:$0xff]  ;;  %s2394_s11 = sshll.u32 %s2974_s30, 4  ;;  %s2396_s14 = sshll.u32 %s3947_s10, 4  ;;  %s2395_s11 = int_to_ptr.vmem [resolvable:$true] %s2394_s11  ;;  %s2397_s14 = int_to_ptr.hbm [resolvable:$true] %s2396_s14 }
   0x8   :  { %2474 = vmatmul.msk.bf16.vlgmr.msra.gmra.mxu0 %vm157_vm1, %v2624_v7  ;;  %v3087_v14 = vld [vmem:[%s3942_s5 + $0x18] sm:$0xff]  ;;  %80 = vst.msk [vmem:[#allocation2 + $0x10] sm:$0xff] %vm77_vm0, %v75_v15  ;;  %v3105_v18 = vld [vmem:[%s3942_s5 + $0x10] sm:$0xff]  ;;  %v82_v19 = vld [vmem:[%s3940_s3] sm:$0xff]  ;;  %s2977_s18 = smov [#allocation6]  }
   0x9   :  { %518 = vmatpush.bf16.msra.mxu3 %v3087_v14  ;;  %v76_v16 = vld [vmem:[%s3939_s2 + $0x18] sm:$0xff]  ;;  %86 = vst.msk [vmem:[#allocation3] sm:$0xff] %vm77_vm0, %v82_v19  ;;  %s2971_s2 = smov 32   ;;  %v83_v24 = vld [vmem:[%s3940_s3 + $0x8] sm:$0xff]  ;;  %v2639_v27 = vld [vmem:[%s3938_s1 + $0x30] sm:$0xff] }
   0xa   :  { %v448_v8 = vld [vmem:[#allocation2] sm:$0xff]  ;;  %81 = vst.msk [vmem:[#allocation2 + $0x18] sm:$0xff] %vm77_vm0, %v76_v16  ;;  %v2638_v25 = vld [vmem:[%s3938_s1 + $0x28] sm:$0xff]  ;;  %v2640_v28 = vld [vmem:[%s3938_s1 + $0x38] sm:$0xff]  ;;  %s2972_s1 = smov 64  }
   0xb   :  { %735 = vmatpush.bf16.msrb.mxu2 %v3039_v1  ;;  %v449_v9 = vld [vmem:[#allocation2 + $0x8] sm:$0xff]  ;;  %87 = vst.msk [vmem:[#allocation3 + $0x8] sm:$0xff] %vm77_vm0, %v83_v24  ;;  %v84_v29 = vld [vmem:[%s3940_s3 + $0x10] sm:$0xff]  ;;  %v3144_v32 = vld [vmem:[%s3943_s6] ss:$0 sm:$0xff] }
   0xc   :  { %v460_v10 = vpack.c.bf16 %v449_v9, %v448_v8  ;;  %88 = vst.msk [vmem:[#allocation3 + $0x10] sm:$0xff] %vm77_vm0, %v84_v29  ;;  %v85_v57 = vld [vmem:[%s3940_s3 + $0x18] sm:$0xff]  ;;  %v3184_v62 = vld [vmem:[%s3943_s6 + $0x1] ss:$0 sm:$0xff]  ;;  %s2383_s3 = sshll.u32 %s3946_s9, 4  ;;  %s2384_s3 = int_to_ptr.hbm [resolvable:$true] %s2383_s3 }
   0xd   :  { %519 = vmatpush.bf16.msra.mxu3 %v3105_v18  ;;  %89 = vst.msk [vmem:[#allocation3 + $0x18] sm:$0xff] %vm77_vm0, %v85_v57 }
   0xe   :  { %2540 = vmatmul.msk.bf16.vlgmr.msra.gmra.mxu2 %vm77_vm0, %v460_v10 }
   0xf   :  { %736 = vmatpush.bf16.msrb.mxu2 %v3054_v5  ;;  %v453_v20 = vld [vmem:[#allocation2 + $0x10] sm:$0xff] }
  0x10   :  { %v450_v23 = vld [vmem:[#allocation3] sm:$0xff] }
  0x11   :  { %762 = vmatpush.bf16.msrb.mxu3 %v3087_v14  ;;  %v454_v21 = vld [vmem:[#allocation2 + $0x18] sm:$0xff]  ;;  %570 = vrot.lane.b32.xlu2 %v450_v23, %s2971_s2 }
  0x12   :  { %v496_v22 = vpack.c.bf16 %v454_v21, %v453_v20  ;;  %v451_v26 = vld [vmem:[#allocation3 + $0x8] sm:$0xff] }
  0x13   :  { %963 = vmatpush.bf16.msra.mxu2 %v3039_v1  ;;  %v456_v46 = vld [vmem:[#allocation3 + $0x10] sm:$0xff] }
  0x14   :  { %2549 = vmatmul.msk.bf16.vlgmr.msra.gmra.mxu3 %vm77_vm0, %v496_v22 }
  0x15   :  { %763 = vmatpush.bf16.msrb.mxu3 %v3105_v18 }
  0x16   :  { %2521 = vmatmul.msk.bf16.gmra.mxu1 %vm157_vm1, %v2634_v11 }
  0x17   :  { %964 = vmatpush.bf16.msra.mxu2 %v3054_v5 }
  0x19   :  { %990 = vmatpush.bf16.msra.mxu3 %v3087_v14  ;;  %572 = vrot.lane.b32.xlu2 %v451_v26, %s2971_s2 }
  0x1d   :  { %991 = vmatpush.bf16.msra.mxu3 %v3105_v18 }
  0x26   :  { %2522 = vmatmul.msk.bf16.gmra.mxu1 %vm157_vm1, %v2635_v12 }
  0x36   :  { %2523 = vmatmul.msk.bf16.gmra.mxu1 %vm157_vm1, %v2636_v13 }
  0x46   :  { %2524 = vmatmul.msk.bf16.gmra.mxu1 %vm157_vm1, %v2637_v17 }
  0x56   :  { %2525 = vmatmul.msk.bf16.gmra.mxu1 %vm157_vm1, %v2638_v25 }
  0x66   :  { %2526 = vmatmul.msk.bf16.gmra.mxu1 %vm157_vm1, %v2639_v27  ;;  %v457_v27 = vld [vmem:[#allocation3 + $0x18] sm:$0xff] }
  0x76   :  { %2527 = vmatmul.msk.bf16.gmra.mxu1 %vm157_vm1, %v2640_v28 }
  0x83   :  { %v3138_v30 = vpop.f32.mrf.mxu1 }
  0x85   :  { %v191_v31 = vpop.f32.mrf.mxu0 }
  0x86   :  { %v234_v34 = vadd.f32 %v3144_v32, %v191_v31 }
  0x8b   :  { %v3146_v33 = vpop.f32.mrf.mxu1 }
  0x8d   :  { %v193_v38 = vpop.f32.mrf.mxu0 }
  0x8e   :  { %v235_v39 = vadd.f32 %v3144_v32, %v193_v38 }
  0x91   :  { %v486_v35 = vpop.f32.mrf.mxu2 }
  0x92   :  { %v491_v36 = vadd.f32 %v486_v35, %v234_v34 }
  0x93   :  { %v3149_v37 = vpop.f32.mrf.mxu1 }
  0x94   :  { %2655 = vtanh.f32 %v491_v36  ;;  %v2550_v54 = vmul.f32 -1.442695, %v491_v36 }
  0x97   :  { %v521_v63 = vpop.f32.mrf.mxu3 }
  0x99   :  { %v488_v40 = vpop.f32.mrf.mxu2 }
  0x9a   :  { %v2656_v41 = vpop.eup %2655  ;;  %v492_v42 = vadd.f32 %v488_v40, %v235_v39 }
  0x9b   :  { %580 = vrot.lane.b32.xlu0 %v2656_v41, %s2972_s1  ;;  %v3153_v43 = vpop.f32.mrf.mxu1 }
  0x9c   :  { %2657 = vtanh.f32 %v492_v42  ;;  %v2551_v56 = vmul.f32 -1.442695, %v492_v42 }
  0x9d   :  { %2659 = vpow2.f32 %v2550_v54 }
  0x9e   :  { %2661 = vpow2.f32 %v2551_v56 }
  0x9f   :  { %v523_v10 = vpop.f32.mrf.mxu3 }
  0xa2   :  { %v2658_v44 = vpop.eup %2657 }
  0xa3   :  { %582 = vrot.lane.b32.xlu0 %v2658_v44, %s2972_s1  ;;  %v3156_v45 = vpop.f32.mrf.mxu1  ;;  %v2660_v58 = vpop.eup %2659 }
  0xa4   :  { %v534_v60 = vadd.f32 1.0, %v2660_v58  ;;  %v2662_v61 = vpop.eup %2661  ;;  %v571_v58 = vpop.permute.xlu2 %570 }
  0xa5   :  { %v535_v3 = vadd.f32 1.0, %v2662_v61 }
  0xa6   :  { %2663 = vrcp.f32 %v534_v60  ;;  %vm541_vm2 = vweird.f32 %v534_v60  ;;  %v547_v19 = vand.u32 2147483648, %v534_v60  ;;  %v545_v22 = vand.u32 2147483647, %v534_v60 }
  0xa7   :  { %vm556_vm6 = vweird.f32 %v535_v3  ;;  %v562_v29 = vand.u32 2147483648, %v535_v3  ;;  %v560_v35 = vand.u32 2147483647, %v535_v3 }
  0xa8   :  { %v548_v24 = vor.u32 1.1754944e-38, %v547_v19  ;;  %vm546_vm5 = vcmp.eq.f32.partialorder %v545_v22, 8.507059e+37 }
  0xa9   :  { %v563_v38 = vor.u32 1.1754944e-38, %v562_v29  ;;  %vm561_vm9 = vcmp.eq.f32.partialorder %v560_v35, 8.507059e+37 }
  0xab   :  { %652 = vrot.lane.b32.xlu0 %v456_v46, %s2971_s2  ;;  %v3159_v47 = vpop.f32.mrf.mxu1 }
  0xac   :  { %v2664_v6 = vpop.eup %2663 }
  0xad   :  { %v537_v7 = vmul.f32 %v2664_v6, %v534_v60  ;;  %vm542_vm3 = vweird.f32 %v2664_v6 }
  0xae   :  { %vm543_vm4 = vmor %vm541_vm2, %vm542_vm3 }
  0xaf   :  { %v538_v12 = vsub.f32 1.0, %v537_v7 }
  0xb1   :  { %v539_v16 = vmul.f32 %v2664_v6, %v538_v12 }
  0xb3   :  { %v3161_v48 = vpop.f32.mrf.mxu1  ;;  %v540_v21 = vadd.f32 %v2664_v6, %v539_v16 }
  0xb5   :  { %v544_v25 = vsel %vm543_vm4, %v2664_v6, %v540_v21 }
  0xb6   :  { %v3190_v28 = vsel %vm546_vm5, %v548_v24, %v544_v25 }
  0xbb   :  { %v3163_v49 = vpop.f32.mrf.mxu1 }
  0xc3   :  { %v3165_v50 = vpop.f32.mrf.mxu1 }
  0xcb   :  { %v3167_v51 = vpop.f32.mrf.mxu1 }
  0xd3   :  { %v3169_v52 = vpop.f32.mrf.mxu1 }
  0xdb   :  { %v3171_v53 = vpop.f32.mrf.mxu1 }
  0xe3   :  { %v3173_v55 = vpop.f32.mrf.mxu1 }
  0xeb   :  { %v3179_v59 = vpop.f32.mrf.mxu1 }
  0xf3   :  { %v383_v0 = vpop.f32.mrf.mxu1 }
  0xf4   :  { %v405_v2 = vadd.f32 %v3184_v62, %v383_v0  ;;  %v573_v0 = vpop.permute.xlu2 %572 }
  0xf6   :  { %v526_v4 = vadd.f32 %v521_v63, %v405_v2 }
  0xf8   :  { %2665 = vtanh.f32 %v526_v4  ;;  %v2552_v44 = vmul.f32 -1.442695, %v526_v4 }
  0xf9   :  { %2667 = vrcp.f32 %v535_v3 }
  0xfb   :  { %v385_v8 = vpop.f32.mrf.mxu1 }
  0xfc   :  { %v406_v9 = vadd.f32 %v3184_v62, %v385_v8  ;;  %v576_v8 = vmul.f32 %v571_v58, %v3190_v28 }
  0xfe   :  { %v2666_v11 = vpop.eup %2665  ;;  %v527_v13 = vadd.f32 %v523_v10, %v406_v9 }
  0xff   :  { %v2668_v15 = vpop.eup %2667  ;;  %662 = vrot.lane.b32.xlu1 %v2666_v11, %s2972_s1 }
 0x100   :  { %2669 = vtanh.f32 %v527_v13  ;;  %v552_v17 = vmul.f32 %v2668_v15, %v535_v3  ;;  %vm557_vm7 = vweird.f32 %v2668_v15  ;;  %v2553_v46 = vmul.f32 -1.442695, %v527_v13 }
 0x101   :  { %vm558_vm8 = vmor %vm556_vm6, %vm557_vm7  ;;  %2671 = vpow2.f32 %v2552_v44 }
 0x102   :  { %v553_v23 = vsub.f32 1.0, %v552_v17  ;;  %2673 = vpow2.f32 %v2553_v46 }
 0x104   :  { %v554_v26 = vmul.f32 %v2668_v15, %v553_v23 }
 0x106   :  { %v2670_v20 = vpop.eup %2669  ;;  %v555_v34 = vadd.f32 %v2668_v15, %v554_v26 }
 0x107   :  { %664 = vrot.lane.b32.xlu1 %v2670_v20, %s2972_s1  ;;  %v2672_v54 = vpop.eup %2671 }
 0x108   :  { %v559_v39 = vsel %vm558_vm8, %v2668_v15, %v555_v34  ;;  %v616_v56 = vadd.f32 1.0, %v2672_v54  ;;  %v2674_v57 = vpop.eup %2673 }
 0x109   :  { %v3195_v40 = vsel %vm561_vm9, %v563_v38, %v559_v39  ;;  %v617_v60 = vadd.f32 1.0, %v2674_v57 }
 0x10a   :  { %2675 = vrcp.f32 %v616_v56  ;;  %v629_v11 = vand.u32 2147483648, %v616_v56  ;;  %vm623_vm11 = vweird.f32 %v616_v56  ;;  %v627_v13 = vand.u32 2147483647, %v616_v56 }
 0x10b   :  { %2677 = vrcp.f32 %v617_v60  ;;  %v644_v24 = vand.u32 2147483648, %v617_v60  ;;  %vm638_vm15 = vweird.f32 %v617_v60  ;;  %v642_v25 = vand.u32 2147483647, %v617_v60 }
 0x10c   :  { %v630_v17 = vor.u32 1.1754944e-38, %v629_v11  ;;  %vm628_vm13 = vcmp.eq.f32.partialorder %v627_v13, 8.507059e+37 }
 0x10d   :  { %v581_v31 = vpop.permute.xlu0 %580  ;;  %vm643_vm3 = vcmp.eq.f32.partialorder %v642_v25, 8.507059e+37 }
 0x10e   :  { %v586_v36 = vmul.f32 %v581_v31, %v3190_v28 }
 0x10f   :  { %654 = vrot.lane.b32.xlu1 %v457_v27, %s2971_s2  ;;  %v645_v27 = vor.u32 1.1754944e-38, %v644_v24 }
 0x110   :  { %590 = vrot.lane.b32.xlu2 %v586_v36, %s2971_s2  ;;  %v2676_v61 = vpop.eup %2675  ;;  %v577_v36 = vmul.f32 %v573_v0, %v3195_v40 }
 0x111   :  { %v619_v63 = vmul.f32 %v2676_v61, %v616_v56  ;;  %v2678_v3 = vpop.eup %2677  ;;  %vm624_vm10 = vweird.f32 %v2676_v61 }
 0x112   :  { %v634_v7 = vmul.f32 %v2678_v3, %v617_v60  ;;  %vm625_vm12 = vmor %vm623_vm11, %vm624_vm10  ;;  %vm639_vm14 = vweird.f32 %v2678_v3 }
 0x113   :  { %v620_v2 = vsub.f32 1.0, %v619_v63  ;;  %vm640_vm2 = vmor %vm638_vm15, %vm639_vm14 }
 0x114   :  { %v635_v10 = vsub.f32 1.0, %v634_v7 }
 0x115   :  { %v583_v41 = vpop.permute.xlu0 %582  ;;  %v621_v6 = vmul.f32 %v2676_v61, %v620_v2 }
 0x116   :  { %v587_v42 = vmul.f32 %v583_v41, %v3195_v40  ;;  %v636_v16 = vmul.f32 %v2678_v3, %v635_v10 }
 0x117   :  { %v622_v4 = vadd.f32 %v2676_v61, %v621_v6 }
 0x118   :  { %592 = vrot.lane.b32.xlu0 %v587_v42, %s2971_s2  ;;  %v637_v22 = vadd.f32 %v2678_v3, %v636_v16 }
 0x119   :  { %v626_v15 = vsel %vm625_vm12, %v2676_v61, %v622_v4 }
 0x11a   :  { %v631_v19 = vsel %vm628_vm13, %v630_v17, %v626_v15  ;;  %v641_v26 = vsel %vm640_vm2, %v2678_v3, %v637_v22 }
 0x11b   :  { %v646_v31 = vsel %vm643_vm3, %v645_v27, %v641_v26 }
 0x11d   :  { %v653_v35 = vpop.permute.xlu0 %652 }
 0x11e   :  { %v658_v57 = vmul.f32 %v653_v35, %v631_v19 }
 0x16a   :  { %v591_v9 = vpop.permute.xlu2 %590 }
 0x16b   :  { %v3200_v12 = vadd.f32 %v591_v9, %v576_v8 }
 0x16d   :  { %2679 = vtanh.f32 %v3200_v12 }
 0x171   :  { %v663_v20 = vpop.permute.xlu1 %662 }
 0x172   :  { %v668_v21 = vmul.f32 %v663_v20, %v631_v19 }
 0x173   :  { %v2680_v23 = vpop.eup %2679 }
 0x174   :  { %602 = vrot.lane.b32.xlu0 %v2680_v23, %s2972_s1  ;;  %672 = vrot.lane.b32.xlu1 %v668_v21, %s2971_s2  ;;  %v2625_v21 = vld [vmem:[%s3937_s0 + $0x8] sm:$0xff] }
 0x175   :  { %2475 = vmatmul.msk.bf16.gmra.mxu0 %vm157_vm1, %v2625_v21 }
 0x179   :  { %v665_v29 = vpop.permute.xlu1 %664 }
 0x17a   :  { %v669_v34 = vmul.f32 %v665_v29, %v646_v31 }
 0x17c   :  { %674 = vrot.lane.b32.xlu2 %v669_v34, %s2971_s2 }
 0x181   :  { %v655_v42 = vpop.permute.xlu1 %654 }
 0x182   :  { %v659_v44 = vmul.f32 %v655_v42, %v646_v31 }
 0x18a   :  { %v593_v38 = vpop.permute.xlu0 %592 }
 0x18b   :  { %v3207_v39 = vadd.f32 %v593_v38, %v577_v36  ;;  %v403_v38 = vadd.f32 %v3184_v62, %v3173_v55 }
 0x18d   :  { %2681 = vtanh.f32 %v3207_v39 }
 0x193   :  { %v2682_v41 = vpop.eup %2681 }
 0x194   :  { %604 = vrot.lane.b32.xlu1 %v2682_v41, %s2972_s1 }
 0x1d6   :  { %v675_v46 = vpop.permute.xlu2 %674 }
 0x1d7   :  { %v3211_v54 = vadd.f32 %v675_v46, %v659_v44  ;;  %v404_v44 = vadd.f32 %v3184_v62, %v3179_v59 }
 0x1d9   :  { %2683 = vtanh.f32 %v3211_v54 }
 0x1df   :  { %v2684_v56 = vpop.eup %2683 }
 0x1e0   :  { %686 = vrot.lane.b32.xlu0 %v2684_v56, %s2972_s1 }
 0x1e6   :  { %v673_v58 = vpop.permute.xlu1 %672  ;;  %v603_v63 = vpop.permute.xlu0 %602 }
 0x1e7   :  { %v3215_v60 = vadd.f32 %v673_v58, %v658_v57  ;;  %v608_v0 = vmul.f32 %v603_v63, %v3190_v28 }
 0x1e9   :  { %2685 = vtanh.f32 %v3215_v60  ;;  %v3220_v3 = vpack.c.bf16 %v608_v0, %v608_v0 }
 0x1eb   :  { %v721_v8 = vunpack.c.l.b16 %v3220_v3 }
 0x1ef   :  { %v2686_v61 = vpop.eup %2685 }
 0x1f0   :  { %684 = vrot.lane.b32.xlu2 %v2686_v61, %s2972_s1 }
 0x1f2   :  { %v196_v23 = vpop.f32.mrf.mxu0 }
 0x1f3   :  { %v236_v24 = vadd.f32 %v3144_v32, %v196_v23 }
 0x1fa   :  { %v198_v27 = vpop.f32.mrf.mxu0 }
 0x1fb   :  { %v237_v29 = vadd.f32 %v3144_v32, %v198_v27 }
 0x206   :  { %v605_v2 = vpop.permute.xlu1 %604 }
 0x207   :  { %v609_v6 = vmul.f32 %v605_v2, %v3195_v40 }
 0x209   :  { %v3223_v7 = vpack.c.bf16 %v609_v6, %v609_v6 }
 0x20b   :  { %v722_v4 = vunpack.c.l.b16 %v3223_v7 }
 0x20d   :  { %v723_v9 = vpack.c.b16 %v722_v4, %v721_v8 }
 0x20f   :  { %724 = vrot.lane.b32.xlu1 %v723_v9, %s2971_s2 }
 0x24a   :  { %v685_v10 = vpop.permute.xlu2 %684 }
 0x24b   :  { %v690_v11 = vmul.f32 %v685_v10, %v631_v19 }
 0x24d   :  { %v3228_v15 = vpack.c.bf16 %v690_v11, %v690_v11 }
 0x24f   :  { %v748_v17 = vunpack.c.l.b16 %v3228_v15 }
 0x252   :  { %v687_v13 = vpop.permute.xlu0 %686 }
 0x253   :  { %v691_v28 = vmul.f32 %v687_v13, %v646_v31 }
 0x255   :  { %v3230_v16 = vpack.c.bf16 %v691_v28, %v691_v28 }
 0x257   :  { %v749_v40 = vunpack.c.l.b16 %v3230_v16 }
 0x259   :  { %v750_v20 = vpack.c.b16 %v749_v40, %v748_v17 }
 0x25b   :  { %751 = vrot.lane.b32.xlu2 %v750_v20, %s2971_s2 }
 0x281   :  { %v725_v19 = vpop.permute.xlu1 %724 }
 0x282   :  { %2556 = vmatmul.msk.bf16.vlgmr.msrb.gmra.mxu2 %vm77_vm0, %v725_v19 }
 0x283   :  { %1191 = vmatpush.bf16.msrb.mxu2 %v3039_v1 }
 0x287   :  { %1192 = vmatpush.bf16.msrb.mxu2 %v3054_v5 }
 0x2b5   :  { %v752_v22 = vpop.permute.xlu2 %751 }
 0x2b6   :  { %2557 = vmatmul.msk.bf16.vlgmr.msrb.gmra.mxu3 %vm77_vm0, %v752_v22 }
 0x2b7   :  { %1218 = vmatpush.bf16.msrb.mxu3 %v3087_v14 }
 0x2bb   :  { %1219 = vmatpush.bf16.msrb.mxu3 %v3105_v18 }
 0x305   :  { %v738_v25 = vpop.f32.mrf.mxu2 }
 0x306   :  { %v743_v26 = vadd.f32 %v738_v25, %v236_v24 }
 0x308   :  { %2687 = vtanh.f32 %v743_v26  ;;  %v2558_v61 = vmul.f32 -1.442695, %v743_v26 }
 0x30d   :  { %v740_v31 = vpop.f32.mrf.mxu2 }
 0x30e   :  { %v2688_v34 = vpop.eup %2687  ;;  %v744_v35 = vadd.f32 %v740_v31, %v237_v29 }
 0x30f   :  { %816 = vrot.lane.b32.xlu0 %v2688_v34, %s2972_s1 }
 0x310   :  { %2689 = vtanh.f32 %v744_v35  ;;  %v2559_v63 = vmul.f32 -1.442695, %v744_v35 }
 0x316   :  { %v2690_v36 = vpop.eup %2689 }
 0x317   :  { %818 = vrot.lane.b32.xlu1 %v2690_v36, %s2972_s1 }
 0x339   :  { %v765_v41 = vpop.f32.mrf.mxu3 }
 0x33a   :  { %v770_v42 = vadd.f32 %v765_v41, %v403_v38 }
 0x33c   :  { %2691 = vtanh.f32 %v770_v42  ;;  %v2560_v4 = vmul.f32 -1.442695, %v770_v42 }
 0x341   :  { %v767_v46 = vpop.f32.mrf.mxu3 }
 0x342   :  { %v2692_v56 = vpop.eup %2691  ;;  %v771_v57 = vadd.f32 %v767_v46, %v404_v44 }
 0x343   :  { %890 = vrot.lane.b32.xlu2 %v2692_v56, %s2972_s1 }
 0x344   :  { %2693 = vtanh.f32 %v771_v57 }
 0x345   :  { %2695 = vpow2.f32 %v2558_v61 }
 0x346   :  { %2697 = vpow2.f32 %v2559_v63 }
 0x34a   :  { %v2694_v58 = vpop.eup %2693 }
 0x34b   :  { %892 = vrot.lane.b32.xlu0 %v2694_v58, %s2972_s1  ;;  %v2696_v0 = vpop.eup %2695  ;;  %v2561_v58 = vmul.f32 -1.442695, %v771_v57 }
 0x34c   :  { %v778_v55 = vadd.f32 1.0, %v2696_v0  ;;  %v2698_v2 = vpop.eup %2697 }
 0x34d   :  { %v779_v6 = vadd.f32 1.0, %v2698_v2 }
 0x34e   :  { %2699 = vrcp.f32 %v778_v55  ;;  %v791_v20 = vand.u32 2147483648, %v778_v55  ;;  %vm785_vm5 = vweird.f32 %v778_v55  ;;  %v789_v21 = vand.u32 2147483647, %v778_v55 }
 0x34f   :  { %2701 = vrcp.f32 %v779_v6  ;;  %v806_v31 = vand.u32 2147483648, %v779_v6  ;;  %vm800_vm9 = vweird.f32 %v779_v6  ;;  %v804_v34 = vand.u32 2147483647, %v779_v6 }
 0x350   :  { %2703 = vpow2.f32 %v2560_v4  ;;  %v792_v24 = vor.u32 1.1754944e-38, %v791_v20  ;;  %vm790_vm7 = vcmp.eq.f32.partialorder %v789_v21, 8.507059e+37 }
 0x351   :  { %v807_v38 = vor.u32 1.1754944e-38, %v806_v31  ;;  %vm805_vm11 = vcmp.eq.f32.partialorder %v804_v34, 8.507059e+37 }
 0x354   :  { %v2700_v8 = vpop.eup %2699 }
 0x355   :  { %v781_v59 = vmul.f32 %v2700_v8, %v778_v55  ;;  %v2702_v10 = vpop.eup %2701  ;;  %vm786_vm4 = vweird.f32 %v2700_v8 }
 0x356   :  { %v796_v13 = vmul.f32 %v2702_v10, %v779_v6  ;;  %v2704_v28 = vpop.eup %2703  ;;  %vm787_vm6 = vmor %vm785_vm5, %vm786_vm4  ;;  %vm801_vm8 = vweird.f32 %v2702_v10 }
 0x357   :  { %v782_v9 = vsub.f32 1.0, %v781_v59  ;;  %v852_v19 = vadd.f32 1.0, %v2704_v28  ;;  %vm802_vm10 = vmor %vm800_vm9, %vm801_vm8 }
 0x358   :  { %v797_v40 = vsub.f32 1.0, %v796_v13 }
 0x359   :  { %v783_v11 = vmul.f32 %v2700_v8, %v782_v9  ;;  %2705 = vrcp.f32 %v852_v19  ;;  %v865_v0 = vand.u32 2147483648, %v852_v19  ;;  %vm859_vm13 = vweird.f32 %v852_v19 }
 0x35a   :  { %v798_v23 = vmul.f32 %v2702_v10, %v797_v40  ;;  %2707 = vpow2.f32 %v2561_v58  ;;  %v863_v55 = vand.u32 2147483647, %v852_v19 }
 0x35b   :  { %v784_v17 = vadd.f32 %v2700_v8, %v783_v11 }
 0x35c   :  { %v799_v29 = vadd.f32 %v2702_v10, %v798_v23  ;;  %vm864_vm15 = vcmp.eq.f32.partialorder %v863_v55, 8.507059e+37 }
 0x35d   :  { %v788_v22 = vsel %vm787_vm6, %v2700_v8, %v784_v17  ;;  %v866_v8 = vor.u32 1.1754944e-38, %v865_v0 }
 0x35e   :  { %v3255_v26 = vsel %vm790_vm7, %v792_v24, %v788_v22  ;;  %v803_v35 = vsel %vm802_vm10, %v2702_v10, %v799_v29 }
 0x35f   :  { %v2706_v36 = vpop.eup %2705  ;;  %v3259_v42 = vsel %vm805_vm11, %v807_v38, %v803_v35  ;;  %v812_v34 = vmul.f32 %v3255_v26, %v3200_v12 }
 0x360   :  { %v855_v46 = vmul.f32 %v2706_v36, %v852_v19  ;;  %vm860_vm12 = vweird.f32 %v2706_v36  ;;  %v2708_v2 = vpop.eup %2707 }
 0x361   :  { %vm861_vm14 = vmor %vm859_vm13, %vm860_vm12  ;;  %v853_v59 = vadd.f32 1.0, %v2708_v2 }
 0x362   :  { %v856_v56 = vsub.f32 1.0, %v855_v46 }
 0x363   :  { %2709 = vrcp.f32 %v853_v59  ;;  %v880_v40 = vand.u32 2147483648, %v853_v59  ;;  %vm874_vm3 = vweird.f32 %v853_v59  ;;  %v878_v20 = vand.u32 2147483647, %v853_v59 }
 0x364   :  { %v857_v61 = vmul.f32 %v2706_v36, %v856_v56 }
 0x365   :  { %v881_v19 = vor.u32 1.1754944e-38, %v880_v40  ;;  %vm879_vm5 = vcmp.eq.f32.partialorder %v878_v20, 8.507059e+37  ;;  %v2626_v40 = vld [vmem:[%s3937_s0 + $0x10] sm:$0xff] }
 0x366   :  { %v858_v63 = vadd.f32 %v2706_v36, %v857_v61  ;;  %2476 = vmatmul.msk.bf16.gmra.mxu0 %vm157_vm1, %v2626_v40 }
 0x368   :  { %v862_v6 = vsel %vm861_vm14, %v2706_v36, %v858_v63 }
 0x369   :  { %v867_v9 = vsel %vm864_vm15, %v866_v8, %v862_v6  ;;  %v2710_v57 = vpop.eup %2709 }
 0x36a   :  { %v870_v11 = vmul.f32 %v2710_v57, %v853_v59  ;;  %vm875_vm2 = vweird.f32 %v2710_v57 }
 0x36b   :  { %vm876_vm4 = vmor %vm874_vm3, %vm875_vm2 }
 0x36c   :  { %v871_v13 = vsub.f32 1.0, %v870_v11 }
 0x36e   :  { %v872_v28 = vmul.f32 %v2710_v57, %v871_v13 }
 0x370   :  { %v873_v17 = vadd.f32 %v2710_v57, %v872_v28 }
 0x372   :  { %v877_v21 = vsel %vm876_vm4, %v2710_v57, %v873_v17 }
 0x373   :  { %v882_v22 = vsel %vm879_vm5, %v881_v19, %v877_v21 }
 0x374   :  { %v887_v12 = vmul.f32 %v882_v22, %v3211_v54 }
 0x381   :  { %v817_v25 = vpop.permute.xlu0 %816 }
 0x382   :  { %v822_v27 = vmul.f32 %v817_v25, %v3255_v26  ;;  %v813_v25 = vmul.f32 %v3259_v42, %v3207_v39  ;;  %v886_v39 = vmul.f32 %v867_v9, %v3215_v60 }
 0x384   :  { %826 = vrot.lane.b32.xlu1 %v822_v27, %s2971_s2 }
 0x389   :  { %v819_v41 = vpop.permute.xlu1 %818 }
 0x38a   :  { %v823_v44 = vmul.f32 %v819_v41, %v3259_v42 }
 0x38c   :  { %828 = vrot.lane.b32.xlu2 %v823_v44, %s2971_s2 }
 0x39d   :  { %v891_v4 = vpop.permute.xlu2 %890 }
 0x39e   :  { %v896_v10 = vmul.f32 %v891_v4, %v867_v9 }
 0x3a0   :  { %900 = vrot.lane.b32.xlu0 %v896_v10, %s2971_s2 }
 0x3bd   :  { %v893_v23 = vpop.permute.xlu0 %892 }
 0x3be   :  { %v897_v24 = vmul.f32 %v893_v23, %v882_v22 }
 0x3c0   :  { %902 = vrot.lane.b32.xlu1 %v897_v24, %s2971_s2 }
 0x3e3   :  { %v201_v21 = vpop.f32.mrf.mxu0 }
 0x3e4   :  { %v238_v19 = vadd.f32 %v3144_v32, %v201_v21 }
 0x3e6   :  { %v829_v27 = vpop.permute.xlu2 %828 }
 0x3e7   :  { %v3267_v29 = vadd.f32 %v829_v27, %v813_v25 }
 0x3e9   :  { %2711 = vtanh.f32 %v3267_v29 }
 0x3eb   :  { %v203_v24 = vpop.f32.mrf.mxu0 }
 0x3ec   :  { %v239_v25 = vadd.f32 %v3144_v32, %v203_v24 }
 0x3ef   :  { %v2712_v31 = vpop.eup %2711 }
 0x3f0   :  { %840 = vrot.lane.b32.xlu0 %v2712_v31, %s2972_s1 }
 0x3f6   :  { %v827_v35 = vpop.permute.xlu1 %826 }
 0x3f7   :  { %v3273_v36 = vadd.f32 %v827_v35, %v812_v34 }
 0x3f9   :  { %2713 = vtanh.f32 %v3273_v36 }
 0x3ff   :  { %v2714_v38 = vpop.eup %2713 }
 0x400   :  { %838 = vrot.lane.b32.xlu2 %v2714_v38, %s2972_s1  ;;  %v402_v38 = vadd.f32 %v3184_v62, %v3171_v53 }
 0x412   :  { %v901_v41 = vpop.permute.xlu0 %900 }
 0x413   :  { %v3278_v44 = vadd.f32 %v901_v41, %v886_v39 }
 0x415   :  { %2715 = vtanh.f32 %v3278_v44 }
 0x41b   :  { %v2716_v46 = vpop.eup %2715 }
 0x41c   :  { %912 = vrot.lane.b32.xlu1 %v2716_v46, %s2972_s1 }
 0x432   :  { %v903_v56 = vpop.permute.xlu1 %902 }
 0x433   :  { %v3283_v58 = vadd.f32 %v903_v56, %v887_v12 }
 0x435   :  { %2717 = vtanh.f32 %v3283_v58 }
 0x43b   :  { %v2718_v61 = vpop.eup %2717 }
 0x43c   :  { %914 = vrot.lane.b32.xlu2 %v2718_v61, %s2972_s1 }
 0x45a   :  { %v839_v63 = vpop.permute.xlu2 %838 }
 0x45b   :  { %v844_v60 = vmul.f32 %v839_v63, %v3255_v26 }
 0x45d   :  { %v3288_v55 = vpack.c.bf16 %v844_v60, %v844_v60 }
 0x45f   :  { %v949_v54 = vunpack.c.l.b16 %v3288_v55 }
 0x462   :  { %v841_v0 = vpop.permute.xlu0 %840 }
 0x463   :  { %v845_v2 = vmul.f32 %v841_v0, %v3259_v42 }
 0x465   :  { %v3291_v6 = vpack.c.bf16 %v845_v2, %v845_v2 }
 0x467   :  { %v950_v8 = vunpack.c.l.b16 %v3291_v6 }
 0x469   :  { %v951_v59 = vpack.c.b16 %v950_v8, %v949_v54 }
 0x46b   :  { %952 = vrot.lane.b32.xlu0 %v951_v59, %s2971_s2 }
 0x48e   :  { %v913_v4 = vpop.permute.xlu1 %912 }
 0x48f   :  { %v918_v10 = vmul.f32 %v913_v4, %v867_v9 }
 0x491   :  { %v3296_v11 = vpack.c.bf16 %v918_v10, %v918_v10 }
 0x493   :  { %v976_v28 = vunpack.c.l.b16 %v3296_v11 }
 0x496   :  { %v915_v57 = vpop.permute.xlu2 %914 }
 0x497   :  { %v919_v26 = vmul.f32 %v915_v57, %v882_v22 }
 0x499   :  { %v3298_v13 = vpack.c.bf16 %v919_v26, %v919_v26 }
 0x49b   :  { %v977_v42 = vunpack.c.l.b16 %v3298_v13 }
 0x49d   :  { %v978_v17 = vpack.c.b16 %v977_v42, %v976_v28 }
 0x49f   :  { %979 = vrot.lane.b32.xlu1 %v978_v17, %s2971_s2 }
 0x4dd   :  { %v953_v9 = vpop.permute.xlu0 %952 }
 0x4de   :  { %2566 = vmatmul.msk.bf16.vlgmr.msra.gmra.mxu2 %vm77_vm0, %v953_v9 }
 0x4df   :  { %1419 = vmatpush.bf16.msra.mxu2 %v3039_v1 }
 0x4e3   :  { %1420 = vmatpush.bf16.msra.mxu2 %v3054_v5 }
 0x511   :  { %v980_v20 = vpop.permute.xlu1 %979 }
 0x512   :  { %2567 = vmatmul.msk.bf16.vlgmr.msra.gmra.mxu3 %vm77_vm0, %v980_v20 }
 0x513   :  { %1446 = vmatpush.bf16.msra.mxu3 %v3087_v14  ;;  %v401_v14 = vadd.f32 %v3184_v62, %v3169_v52 }
 0x517   :  { %1447 = vmatpush.bf16.msra.mxu3 %v3105_v18 }
 0x561   :  { %v966_v22 = vpop.f32.mrf.mxu2 }
 0x562   :  { %v971_v23 = vadd.f32 %v966_v22, %v238_v19 }
 0x564   :  { %2719 = vtanh.f32 %v971_v23  ;;  %v2568_v35 = vmul.f32 -1.442695, %v971_v23 }
 0x569   :  { %v968_v27 = vpop.f32.mrf.mxu2 }
 0x56a   :  { %v2720_v1 = vpop.eup %2719  ;;  %v972_v31 = vadd.f32 %v968_v27, %v239_v25 }
 0x56b   :  { %1044 = vrot.lane.b32.xlu2 %v2720_v1, %s2972_s1 }
 0x56c   :  { %2721 = vtanh.f32 %v972_v31  ;;  %v2569_v60 = vmul.f32 -1.442695, %v972_v31 }
 0x572   :  { %v2722_v5 = vpop.eup %2721 }
 0x573   :  { %1046 = vrot.lane.b32.xlu0 %v2722_v5, %s2972_s1 }
 0x595   :  { %v993_v18 = vpop.f32.mrf.mxu3 }
 0x596   :  { %v998_v34 = vadd.f32 %v993_v18, %v401_v14 }
 0x598   :  { %2723 = vtanh.f32 %v998_v34  ;;  %v2570_v1 = vmul.f32 -1.442695, %v998_v34 }
 0x599   :  { %2725 = vpow2.f32 %v2568_v35 }
 0x59d   :  { %v995_v32 = vpop.f32.mrf.mxu3 }
 0x59e   :  { %v2724_v39 = vpop.eup %2723  ;;  %v999_v41 = vadd.f32 %v995_v32, %v402_v38 }
 0x59f   :  { %1118 = vrot.lane.b32.xlu1 %v2724_v39, %s2972_s1  ;;  %v2726_v46 = vpop.eup %2725 }
 0x5a0   :  { %2727 = vtanh.f32 %v999_v41  ;;  %v1006_v12 = vadd.f32 1.0, %v2726_v46  ;;  %v2571_v40 = vmul.f32 -1.442695, %v999_v41 }
 0x5a2   :  { %2729 = vrcp.f32 %v1006_v12  ;;  %v1019_v2 = vand.u32 2147483648, %v1006_v12  ;;  %vm1013_vm7 = vweird.f32 %v1006_v12  ;;  %v1017_v54 = vand.u32 2147483647, %v1006_v12 }
 0x5a3   :  { %2731 = vpow2.f32 %v2569_v60 }
 0x5a4   :  { %v1020_v4 = vor.u32 1.1754944e-38, %v1019_v2  ;;  %vm1018_vm9 = vcmp.eq.f32.partialorder %v1017_v54, 8.507059e+37 }
 0x5a6   :  { %v2728_v56 = vpop.eup %2727 }
 0x5a7   :  { %1120 = vrot.lane.b32.xlu2 %v2728_v56, %s2972_s1 }
 0x5a8   :  { %v2730_v52 = vpop.eup %2729 }
 0x5a9   :  { %v1009_v61 = vmul.f32 %v2730_v52, %v1006_v12  ;;  %vm1014_vm6 = vweird.f32 %v2730_v52  ;;  %v2732_v8 = vpop.eup %2731 }
 0x5aa   :  { %vm1015_vm8 = vmor %vm1013_vm7, %vm1014_vm6  ;;  %v1007_v10 = vadd.f32 1.0, %v2732_v8 }
 0x5ab   :  { %v1010_v63 = vsub.f32 1.0, %v1009_v61 }
 0x5ac   :  { %2733 = vrcp.f32 %v1007_v10  ;;  %v1034_v22 = vand.u32 2147483648, %v1007_v10  ;;  %vm1028_vm11 = vweird.f32 %v1007_v10  ;;  %v1032_v23 = vand.u32 2147483647, %v1007_v10 }
 0x5ad   :  { %v1011_v0 = vmul.f32 %v2730_v52, %v1010_v63  ;;  %2735 = vpow2.f32 %v2571_v40 }
 0x5ae   :  { %v1035_v27 = vor.u32 1.1754944e-38, %v1034_v22  ;;  %vm1033_vm13 = vcmp.eq.f32.partialorder %v1032_v23, 8.507059e+37 }
 0x5af   :  { %v1012_v53 = vadd.f32 %v2730_v52, %v1011_v0 }
 0x5b1   :  { %v1016_v59 = vsel %vm1015_vm8, %v2730_v52, %v1012_v53 }
 0x5b2   :  { %v3323_v26 = vsel %vm1018_vm9, %v1020_v4, %v1016_v59  ;;  %v2734_v42 = vpop.eup %2733 }
 0x5b3   :  { %v1024_v17 = vmul.f32 %v2734_v42, %v1007_v10  ;;  %v2736_v21 = vpop.eup %2735  ;;  %vm1029_vm10 = vweird.f32 %v2734_v42  ;;  %v1040_v40 = vmul.f32 %v3323_v26, %v3273_v36 }
 0x5b4   :  { %v1081_v24 = vadd.f32 1.0, %v2736_v21  ;;  %vm1030_vm12 = vmor %vm1028_vm11, %vm1029_vm10 }
 0x5b5   :  { %v1025_v9 = vsub.f32 1.0, %v1024_v17 }
 0x5b6   :  { %2737 = vrcp.f32 %v1081_v24  ;;  %v1108_v12 = vand.u32 2147483648, %v1081_v24  ;;  %vm1102_vm15 = vweird.f32 %v1081_v24  ;;  %v1106_v56 = vand.u32 2147483647, %v1081_v24 }
 0x5b7   :  { %v1026_v20 = vmul.f32 %v2734_v42, %v1025_v9  ;;  %2739 = vpow2.f32 %v2570_v1 }
 0x5b8   :  { %v1109_v63 = vor.u32 1.1754944e-38, %v1108_v12  ;;  %vm1107_vm3 = vcmp.eq.f32.partialorder %v1106_v56, 8.507059e+37 }
 0x5b9   :  { %v1027_v19 = vadd.f32 %v2734_v42, %v1026_v20 }
 0x5bb   :  { %v1031_v25 = vsel %vm1030_vm12, %v2734_v42, %v1027_v19 }
 0x5bc   :  { %v3327_v5 = vsel %vm1033_vm13, %v1035_v27, %v1031_v25  ;;  %v2738_v18 = vpop.eup %2737 }
 0x5bd   :  { %v2740_v35 = vpop.eup %2739  ;;  %v1098_v38 = vmul.f32 %v2738_v18, %v1081_v24  ;;  %vm1103_vm14 = vweird.f32 %v2738_v18  ;;  %v1041_v19 = vmul.f32 %v3327_v5, %v3267_v29 }
 0x5be   :  { %v1080_v32 = vadd.f32 1.0, %v2740_v35  ;;  %vm1104_vm2 = vmor %vm1102_vm15, %vm1103_vm14 }
 0x5bf   :  { %v1099_v39 = vsub.f32 1.0, %v1098_v38 }
 0x5c0   :  { %2741 = vrcp.f32 %v1080_v32  ;;  %v1093_v59 = vand.u32 2147483648, %v1080_v32  ;;  %vm1087_vm5 = vweird.f32 %v1080_v32  ;;  %v1091_v4 = vand.u32 2147483647, %v1080_v32 }
 0x5c1   :  { %v1100_v41 = vmul.f32 %v2738_v18, %v1099_v39 }
 0x5c2   :  { %vm1092_vm7 = vcmp.eq.f32.partialorder %v1091_v4, 8.507059e+37  ;;  %v3392_v4 = vld [vmem:[%s3942_s5 + $0x18] sm:$0xff] }
 0x5c3   :  { %v1101_v46 = vadd.f32 %v2738_v18, %v1100_v41 }
 0x5c5   :  { %v1045_v57 = vpop.permute.xlu2 %1044  ;;  %v1105_v52 = vsel %vm1104_vm2, %v2738_v18, %v1101_v46 }
 0x5c6   :  { %v1050_v28 = vmul.f32 %v1045_v57, %v3323_v26  ;;  %v2742_v34 = vpop.eup %2741  ;;  %v1110_v60 = vsel %vm1107_vm3, %v1109_v63, %v1105_v52  ;;  %v1094_v57 = vor.u32 1.1754944e-38, %v1093_v59 }
 0x5c7   :  { %v1083_v61 = vmul.f32 %v2742_v34, %v1080_v32  ;;  %vm1088_vm4 = vweird.f32 %v2742_v34  ;;  %v1115_v1 = vmul.f32 %v1110_v60, %v3283_v58 }
 0x5c8   :  { %1054 = vrot.lane.b32.xlu0 %v1050_v28, %s2971_s2  ;;  %vm1089_vm6 = vmor %vm1087_vm5, %vm1088_vm4 }
 0x5c9   :  { %v1084_v2 = vsub.f32 1.0, %v1083_v61 }
 0x5cb   :  { %v1085_v54 = vmul.f32 %v2742_v34, %v1084_v2  ;;  %v2627_v2 = vld [vmem:[%s3937_s0 + $0x18] sm:$0xff] }
 0x5cc   :  { %2477 = vmatmul.msk.bf16.gmra.mxu0 %vm157_vm1, %v2627_v2 }
 0x5cd   :  { %v1086_v8 = vadd.f32 %v2742_v34, %v1085_v54 }
 0x5cf   :  { %v1090_v10 = vsel %vm1089_vm6, %v2742_v34, %v1086_v8  ;;  %v3385_v8 = vld [vmem:[%s3942_s5] sm:$0xff] }
 0x5d0   :  { %v1095_v42 = vsel %vm1092_vm7, %v1094_v57, %v1090_v10  ;;  %v3398_v10 = vld [vmem:[%s3942_s5 + $0x10] sm:$0xff] }
 0x5d1   :  { %v1114_v36 = vmul.f32 %v1095_v42, %v3278_v44 }
 0x5e5   :  { %v1047_v31 = vpop.permute.xlu0 %1046 }
 0x5e6   :  { %v1051_v14 = vmul.f32 %v1047_v31, %v3327_v5 }
 0x5e8   :  { %1056 = vrot.lane.b32.xlu1 %v1051_v14, %s2971_s2 }
 0x601   :  { %v1121_v0 = vpop.permute.xlu2 %1120 }
 0x602   :  { %v1125_v53 = vmul.f32 %v1121_v0, %v1110_v60 }
 0x604   :  { %1130 = vrot.lane.b32.xlu0 %v1125_v53, %s2971_s2 }
 0x611   :  { %v1119_v28 = vpop.permute.xlu1 %1118 }
 0x612   :  { %v1124_v17 = vmul.f32 %v1119_v28, %v1095_v42  ;;  %v3404_v28 = vld [vmem:[%s3943_s6] ss:$0 sm:$0xff] }
 0x614   :  { %1128 = vrot.lane.b32.xlu2 %v1124_v17, %s2971_s2 }
 0x63a   :  { %v1055_v9 = vpop.permute.xlu0 %1054 }
 0x63b   :  { %v3335_v20 = vadd.f32 %v1055_v9, %v1040_v40 }
 0x63d   :  { %2743 = vtanh.f32 %v3335_v20 }
 0x643   :  { %v2744_v21 = vpop.eup %2743 }
 0x644   :  { %1066 = vrot.lane.b32.xlu1 %v2744_v21, %s2972_s1 }
 0x649   :  { %v206_v57 = vpop.f32.mrf.mxu0 }
 0x651   :  { %v208_v9 = vpop.f32.mrf.mxu0 }
 0x652   :  { %v241_v21 = vadd.f32 %v3404_v28, %v208_v9 }
 0x65a   :  { %v1057_v22 = vpop.permute.xlu1 %1056 }
 0x65b   :  { %v3341_v23 = vadd.f32 %v1057_v22, %v1041_v19 }
 0x65d   :  { %2745 = vtanh.f32 %v3341_v23 }
 0x663   :  { %v2746_v24 = vpop.eup %2745 }
 0x664   :  { %1068 = vrot.lane.b32.xlu2 %v2746_v24, %s2972_s1 }
 0x66e   :  { %v1129_v25 = vpop.permute.xlu2 %1128 }
 0x66f   :  { %v3346_v27 = vadd.f32 %v1129_v25, %v1114_v36 }
 0x671   :  { %2747 = vtanh.f32 %v3346_v27 }
 0x676   :  { %v1131_v31 = vpop.permute.xlu0 %1130 }
 0x677   :  { %v2748_v14 = vpop.eup %2747  ;;  %v3350_v29 = vadd.f32 %v1131_v31, %v1115_v1  ;;  %v399_v31 = vadd.f32 %v3184_v62, %v3165_v50 }
 0x678   :  { %1140 = vrot.lane.b32.xlu0 %v2748_v14, %s2972_s1 }
 0x679   :  { %2749 = vtanh.f32 %v3350_v29 }
 0x67f   :  { %v2750_v18 = vpop.eup %2749 }
 0x680   :  { %1142 = vrot.lane.b32.xlu1 %v2750_v18, %s2972_s1 }
 0x6b6   :  { %v1067_v35 = vpop.permute.xlu1 %1066 }
 0x6b7   :  { %v1072_v44 = vmul.f32 %v1067_v35, %v3323_v26 }
 0x6b9   :  { %v3356_v32 = vpack.c.bf16 %v1072_v44, %v1072_v44 }
 0x6bb   :  { %v1177_v41 = vunpack.c.l.b16 %v3356_v32 }
 0x6be   :  { %v1069_v38 = vpop.permute.xlu2 %1068 }
 0x6bf   :  { %v1073_v39 = vmul.f32 %v1069_v38, %v3327_v5  ;;  %v3415_v38 = vld [vmem:[%s3943_s6 + $0x1] ss:$0 sm:$0xff] }
 0x6c1   :  { %v3359_v58 = vpack.c.bf16 %v1073_v39, %v1073_v39  ;;  %v400_v39 = vadd.f32 %v3415_v38, %v3167_v51 }
 0x6c3   :  { %v1178_v46 = vunpack.c.l.b16 %v3359_v58 }
 0x6c5   :  { %v1179_v34 = vpack.c.b16 %v1178_v46, %v1177_v41 }
 0x6c7   :  { %1180 = vrot.lane.b32.xlu2 %v1179_v34, %s2971_s2 }
 0x6ea   :  { %v1141_v12 = vpop.permute.xlu0 %1140 }
 0x6eb   :  { %v1146_v56 = vmul.f32 %v1141_v12, %v1095_v42  ;;  %v240_v42 = vadd.f32 %v3404_v28, %v206_v57 }
 0x6ed   :  { %v3364_v61 = vpack.c.bf16 %v1146_v56, %v1146_v56 }
 0x6ef   :  { %v1204_v0 = vunpack.c.l.b16 %v3364_v61 }
 0x6f2   :  { %v1143_v52 = vpop.permute.xlu1 %1142 }
 0x6f3   :  { %v1147_v26 = vmul.f32 %v1143_v52, %v1110_v60  ;;  %v3379_v60 = vld [vmem:[%s3942_s5 + $0x8] sm:$0xff]  ;;  %s2976_s5 = smov 8  }
 0x6f5   :  { %v3366_v63 = vpack.c.bf16 %v1147_v26, %v1147_v26 }
 0x6f7   :  { %v1205_v5 = vunpack.c.l.b16 %v3366_v63 }
 0x6f9   :  { %v1206_v53 = vpack.c.b16 %v1205_v5, %v1204_v0 }
 0x6fb   :  { %1207 = vrot.lane.b32.xlu0 %v1206_v53, %s2971_s2 }
 0x721   :  { %v1181_v54 = vpop.permute.xlu2 %1180 }
 0x722   :  { %2576 = vmatmul.msk.bf16.vlgmr.msrb.gmra.mxu2 %vm77_vm0, %v1181_v54 }
 0x723   :  { %1647 = vmatpush.bf16.msrb.mxu2 %v3379_v60 }
 0x727   :  { %1648 = vmatpush.bf16.msrb.mxu2 %v3385_v8 }
 0x76d   :  { %v1208_v59 = vpop.permute.xlu0 %1207 }
 0x76e   :  { %2577 = vmatmul.msk.bf16.vlgmr.msrb.gmra.mxu3 %vm77_vm0, %v1208_v59 }
 0x76f   :  { %1674 = vmatpush.bf16.msrb.mxu3 %v3392_v4 }
 0x773   :  { %1675 = vmatpush.bf16.msrb.mxu3 %v3398_v10 }
 0x7a5   :  { %v1194_v17 = vpop.f32.mrf.mxu2 }
 0x7a6   :  { %v1199_v40 = vadd.f32 %v1194_v17, %v240_v42 }
 0x7a8   :  { %2751 = vtanh.f32 %v1199_v40  ;;  %v2578_v44 = vmul.f32 -1.442695, %v1199_v40 }
 0x7ad   :  { %v1196_v19 = vpop.f32.mrf.mxu2 }
 0x7ae   :  { %v2752_v22 = vpop.eup %2751  ;;  %v1200_v24 = vadd.f32 %v1196_v19, %v241_v21 }
 0x7af   :  { %1272 = vrot.lane.b32.xlu1 %v2752_v22, %s2972_s1 }
 0x7b0   :  { %2753 = vtanh.f32 %v1200_v24  ;;  %v2579_v25 = vmul.f32 -1.442695, %v1200_v24 }
 0x7b2   :  { %2755 = vpow2.f32 %v2579_v25 }
 0x7b6   :  { %v2754_v36 = vpop.eup %2753 }
 0x7b7   :  { %1274 = vrot.lane.b32.xlu2 %v2754_v36, %s2972_s1 }
 0x7b8   :  { %v2756_v1 = vpop.eup %2755 }
 0x7b9   :  { %v1235_v14 = vadd.f32 1.0, %v2756_v1 }
 0x7bb   :  { %v1262_v53 = vand.u32 2147483648, %v1235_v14  ;;  %vm1256_vm9 = vweird.f32 %v1235_v14  ;;  %v1260_v2 = vand.u32 2147483647, %v1235_v14 }
 0x7bd   :  { %v1263_v57 = vor.u32 1.1754944e-38, %v1262_v53  ;;  %vm1261_vm11 = vcmp.eq.f32.partialorder %v1260_v2, 8.507059e+37 }
 0x7f1   :  { %v1221_v18 = vpop.f32.mrf.mxu3 }
 0x7f2   :  { %v1226_v35 = vadd.f32 %v1221_v18, %v399_v31 }
 0x7f4   :  { %2757 = vtanh.f32 %v1226_v35  ;;  %v2580_v18 = vmul.f32 -1.442695, %v1226_v35 }
 0x7f5   :  { %2759 = vrcp.f32 %v1235_v14 }
 0x7f6   :  { %2761 = vpow2.f32 %v2578_v44 }
 0x7f9   :  { %v1223_v41 = vpop.f32.mrf.mxu3 }
 0x7fa   :  { %v2758_v46 = vpop.eup %2757  ;;  %v1227_v34 = vadd.f32 %v1223_v41, %v400_v39 }
 0x7fb   :  { %v2760_v12 = vpop.eup %2759  ;;  %1346 = vrot.lane.b32.xlu0 %v2758_v46, %s2972_s1 }
 0x7fc   :  { %2763 = vtanh.f32 %v1227_v34  ;;  %v2762_v50 = vpop.eup %2761  ;;  %v1252_v62 = vmul.f32 %v2760_v12, %v1235_v14  ;;  %vm1257_vm8 = vweird.f32 %v2760_v12  ;;  %v2581_v44 = vmul.f32 -1.442695, %v1227_v34 }
 0x7fd   :  { %v1234_v56 = vadd.f32 1.0, %v2762_v50  ;;  %vm1258_vm10 = vmor %vm1256_vm9, %vm1257_vm8 }
 0x7fe   :  { %v1253_v26 = vsub.f32 1.0, %v1252_v62 }
 0x7ff   :  { %2765 = vrcp.f32 %v1234_v56  ;;  %v1247_v22 = vand.u32 2147483648, %v1234_v56  ;;  %vm1241_vm13 = vweird.f32 %v1234_v56  ;;  %v1245_v24 = vand.u32 2147483647, %v1234_v56 }
 0x800   :  { %v1254_v0 = vmul.f32 %v2760_v12, %v1253_v26  ;;  %2767 = vpow2.f32 %v2580_v18 }
 0x801   :  { %v1248_v25 = vor.u32 1.1754944e-38, %v1247_v22  ;;  %vm1246_vm15 = vcmp.eq.f32.partialorder %v1245_v24, 8.507059e+37  ;;  %2769 = vpow2.f32 %v2581_v44 }
 0x802   :  { %v2764_v52 = vpop.eup %2763  ;;  %v1255_v5 = vadd.f32 %v2760_v12, %v1254_v0 }
 0x803   :  { %1348 = vrot.lane.b32.xlu1 %v2764_v52, %s2972_s1 }
 0x804   :  { %v1259_v54 = vsel %vm1258_vm10, %v2760_v12, %v1255_v5 }
 0x805   :  { %v2766_v51 = vpop.eup %2765  ;;  %v3421_v17 = vsel %vm1261_vm11, %v1263_v57, %v1259_v54 }
 0x806   :  { %v1237_v59 = vmul.f32 %v2766_v51, %v1234_v56  ;;  %vm1242_vm12 = vweird.f32 %v2766_v51  ;;  %v2768_v39 = vpop.eup %2767  ;;  %v1269_v44 = vmul.f32 %v3421_v17, %v3341_v23 }
 0x807   :  { %vm1243_vm14 = vmor %vm1241_vm13, %vm1242_vm12  ;;  %v1308_v41 = vadd.f32 1.0, %v2768_v39  ;;  %v2770_v46 = vpop.eup %2769 }
 0x808   :  { %v1238_v9 = vsub.f32 1.0, %v1237_v59  ;;  %v1309_v12 = vadd.f32 1.0, %v2770_v46 }
 0x809   :  { %2771 = vrcp.f32 %v1308_v41  ;;  %v1321_v53 = vand.u32 2147483648, %v1308_v41  ;;  %vm1315_vm3 = vweird.f32 %v1308_v41  ;;  %v1319_v35 = vand.u32 2147483647, %v1308_v41 }
 0x80a   :  { %v1239_v21 = vmul.f32 %v2766_v51, %v1238_v9  ;;  %2773 = vrcp.f32 %v1309_v12  ;;  %v1336_v9 = vand.u32 2147483648, %v1309_v12  ;;  %vm1330_vm7 = vweird.f32 %v1309_v12 }
 0x80b   :  { %v1322_v54 = vor.u32 1.1754944e-38, %v1321_v53  ;;  %vm1320_vm5 = vcmp.eq.f32.partialorder %v1319_v35, 8.507059e+37 }
 0x80c   :  { %v1240_v19 = vadd.f32 %v2766_v51, %v1239_v21  ;;  %v1334_v21 = vand.u32 2147483647, %v1309_v12  ;;  %v1337_v22 = vor.u32 1.1754944e-38, %v1336_v9 }
 0x80e   :  { %v1244_v36 = vsel %vm1243_vm14, %v2766_v51, %v1240_v19  ;;  %vm1335_vm9 = vcmp.eq.f32.partialorder %v1334_v21, 8.507059e+37 }
 0x80f   :  { %v3425_v31 = vsel %vm1246_vm15, %v1248_v25, %v1244_v36  ;;  %v2772_v50 = vpop.eup %2771 }
 0x810   :  { %v1311_v62 = vmul.f32 %v2772_v50, %v1308_v41  ;;  %v2774_v52 = vpop.eup %2773  ;;  %vm1316_vm2 = vweird.f32 %v2772_v50 }
 0x811   :  { %v1275_v42 = vpop.permute.xlu2 %1274  ;;  %v1326_v0 = vmul.f32 %v2774_v52, %v1309_v12  ;;  %vm1317_vm4 = vmor %vm1315_vm3, %vm1316_vm2  ;;  %vm1331_vm6 = vweird.f32 %v2774_v52 }
 0x812   :  { %v1279_v40 = vmul.f32 %v1275_v42, %v3421_v17  ;;  %v1312_v56 = vsub.f32 1.0, %v1311_v62  ;;  %vm1332_vm8 = vmor %vm1330_vm7, %vm1331_vm6 }
 0x813   :  { %v1327_v51 = vsub.f32 1.0, %v1326_v0 }
 0x814   :  { %1284 = vrot.lane.b32.xlu0 %v1279_v40, %s2971_s2  ;;  %v1313_v26 = vmul.f32 %v2772_v50, %v1312_v56 }
 0x815   :  { %v1328_v2 = vmul.f32 %v2774_v52, %v1327_v51 }
 0x816   :  { %v1314_v5 = vadd.f32 %v2772_v50, %v1313_v26 }
 0x817   :  { %v1329_v40 = vadd.f32 %v2774_v52, %v1328_v2 }
 0x818   :  { %v1318_v34 = vsel %vm1317_vm4, %v2772_v50, %v1314_v5 }
 0x819   :  { %v1323_v57 = vsel %vm1320_vm5, %v1322_v54, %v1318_v34  ;;  %v1333_v19 = vsel %vm1332_vm8, %v2774_v52, %v1329_v40 }
 0x81a   :  { %v1338_v24 = vsel %vm1335_vm9, %v1337_v22, %v1333_v19  ;;  %v1342_v23 = vmul.f32 %v1323_v57, %v3346_v27 }
 0x821   :  { %v1273_v1 = vpop.permute.xlu1 %1272 }
 0x822   :  { %v1278_v14 = vmul.f32 %v1273_v1, %v3425_v31  ;;  %v1268_v1 = vmul.f32 %v3425_v31, %v3335_v20  ;;  %v1343_v20 = vmul.f32 %v1338_v24, %v3350_v29 }
 0x824   :  { %1282 = vrot.lane.b32.xlu2 %v1278_v14, %s2971_s2 }
 0x86d   :  { %v1347_v59 = vpop.permute.xlu0 %1346 }
 0x86e   :  { %v1352_v42 = vmul.f32 %v1347_v59, %v1323_v57 }
 0x870   :  { %1356 = vrot.lane.b32.xlu1 %v1352_v42, %s2971_s2 }
 0x875   :  { %v1349_v36 = vpop.permute.xlu1 %1348 }
 0x876   :  { %v1353_v25 = vmul.f32 %v1349_v36, %v1338_v24  ;;  %v2628_v36 = vld [vmem:[%s3937_s0 + $0x20] sm:$0xff] }
 0x877   :  { %2478 = vmatmul.msk.bf16.gmra.mxu0 %vm157_vm1, %v2628_v36 }
 0x878   :  { %1358 = vrot.lane.b32.xlu2 %v1353_v25, %s2971_s2 }
 0x87e   :  { %v1283_v14 = vpop.permute.xlu2 %1282 }
 0x87f   :  { %v3433_v18 = vadd.f32 %v1283_v14, %v1268_v1 }
 0x881   :  { %2775 = vtanh.f32 %v3433_v18 }
 0x886   :  { %v1285_v39 = vpop.permute.xlu0 %1284 }
 0x887   :  { %v2776_v41 = vpop.eup %2775  ;;  %v3438_v46 = vadd.f32 %v1285_v39, %v1269_v44 }
 0x888   :  { %1294 = vrot.lane.b32.xlu0 %v2776_v41, %s2972_s1 }
 0x889   :  { %2777 = vtanh.f32 %v3438_v46 }
 0x88f   :  { %v2778_v12 = vpop.eup %2777 }
 0x890   :  { %1296 = vrot.lane.b32.xlu1 %v2778_v12, %s2972_s1 }
 0x8d2   :  { %v1359_v50 = vpop.permute.xlu2 %1358 }
 0x8d3   :  { %v3444_v62 = vadd.f32 %v1359_v50, %v1343_v20 }
 0x8d5   :  { %2779 = vtanh.f32 %v3444_v62 }
 0x8db   :  { %v2780_v56 = vpop.eup %2779 }
 0x8dc   :  { %1370 = vrot.lane.b32.xlu0 %v2780_v56, %s2972_s1 }
 0x8e2   :  { %v1357_v52 = vpop.permute.xlu1 %1356 }
 0x8e3   :  { %v3449_v26 = vadd.f32 %v1357_v52, %v1342_v23  ;;  %v397_v23 = vadd.f32 %v3415_v38, %v3161_v48 }
 0x8e5   :  { %2781 = vtanh.f32 %v3449_v26 }
 0x8eb   :  { %v2782_v0 = vpop.eup %2781 }
 0x8ec   :  { %1368 = vrot.lane.b32.xlu2 %v2782_v0, %s2972_s1 }
 0x8f4   :  { %v211_v25 = vpop.f32.mrf.mxu0 }
 0x8f5   :  { %v242_v1 = vadd.f32 %v3404_v28, %v211_v25 }
 0x8fa   :  { %v1295_v5 = vpop.permute.xlu0 %1294 }
 0x8fb   :  { %v1300_v29 = vmul.f32 %v1295_v5, %v3425_v31  ;;  %v398_v5 = vadd.f32 %v3415_v38, %v3163_v49 }
 0x8fc   :  { %v213_v39 = vpop.f32.mrf.mxu0 }
 0x8fd   :  { %v3454_v53 = vpack.c.bf16 %v1300_v29, %v1300_v29  ;;  %v243_v41 = vadd.f32 %v3404_v28, %v213_v39 }
 0x8ff   :  { %v1405_v27 = vunpack.c.l.b16 %v3454_v53 }
 0x902   :  { %v1297_v51 = vpop.permute.xlu1 %1296 }
 0x903   :  { %v1301_v35 = vmul.f32 %v1297_v51, %v3421_v17 }
 0x905   :  { %v3457_v34 = vpack.c.bf16 %v1301_v35, %v1301_v35 }
 0x907   :  { %v1406_v2 = vunpack.c.l.b16 %v3457_v34 }
 0x909   :  { %v1407_v54 = vpack.c.b16 %v1406_v2, %v1405_v27 }
 0x90b   :  { %1408 = vrot.lane.b32.xlu1 %v1407_v54, %s2971_s2 }
 0x946   :  { %v1369_v59 = vpop.permute.xlu2 %1368 }
 0x947   :  { %v1374_v42 = vmul.f32 %v1369_v59, %v1323_v57 }
 0x949   :  { %v3462_v9 = vpack.c.bf16 %v1374_v42, %v1374_v42 }
 0x94b   :  { %v1432_v19 = vunpack.c.l.b16 %v3462_v9 }
 0x94e   :  { %v1371_v40 = vpop.permute.xlu0 %1370 }
 0x94f   :  { %v1375_v31 = vmul.f32 %v1371_v40, %v1338_v24 }
 0x951   :  { %v3464_v21 = vpack.c.bf16 %v1375_v31, %v1375_v31 }
 0x953   :  { %v1433_v17 = vunpack.c.l.b16 %v3464_v21 }
 0x955   :  { %v1434_v22 = vpack.c.b16 %v1433_v17, %v1432_v19 }
 0x957   :  { %1435 = vrot.lane.b32.xlu2 %v1434_v22, %s2971_s2 }
 0x97d   :  { %v1409_v57 = vpop.permute.xlu1 %1408 }
 0x97e   :  { %2586 = vmatmul.msk.bf16.vlgmr.msra.gmra.mxu2 %vm77_vm0, %v1409_v57 }
 0x97f   :  { %1875 = vmatpush.bf16.msra.mxu2 %v3379_v60 }
 0x983   :  { %1876 = vmatpush.bf16.msra.mxu2 %v3385_v8 }
 0x9b1   :  { %v1436_v24 = vpop.permute.xlu2 %1435 }
 0x9b2   :  { %2587 = vmatmul.msk.bf16.vlgmr.msra.gmra.mxu3 %vm77_vm0, %v1436_v24 }
 0x9b3   :  { %1902 = vmatpush.bf16.msra.mxu3 %v3392_v4 }
 0x9b7   :  { %1903 = vmatpush.bf16.msra.mxu3 %v3398_v10 }
 0xa01   :  { %v1422_v14 = vpop.f32.mrf.mxu2 }
 0xa02   :  { %v1427_v44 = vadd.f32 %v1422_v14, %v242_v1 }
 0xa04   :  { %2783 = vtanh.f32 %v1427_v44  ;;  %v2588_v2 = vmul.f32 -1.442695, %v1427_v44 }
 0xa09   :  { %v1424_v12 = vpop.f32.mrf.mxu2 }
 0xa0a   :  { %v2784_v20 = vpop.eup %2783  ;;  %v1428_v50 = vadd.f32 %v1424_v12, %v243_v41 }
 0xa0b   :  { %1500 = vrot.lane.b32.xlu0 %v2784_v20, %s2972_s1 }
 0xa0c   :  { %2785 = vtanh.f32 %v1428_v50  ;;  %v2589_v54 = vmul.f32 -1.442695, %v1428_v50 }
 0xa12   :  { %v2786_v56 = vpop.eup %2785 }
 0xa13   :  { %1502 = vrot.lane.b32.xlu1 %v2786_v56, %s2972_s1 }
 0xa35   :  { %v1449_v52 = vpop.f32.mrf.mxu3 }
 0xa36   :  { %v1454_v0 = vadd.f32 %v1449_v52, %v397_v23 }
 0xa38   :  { %2787 = vtanh.f32 %v1454_v0  ;;  %v2590_v19 = vmul.f32 -1.442695, %v1454_v0 }
 0xa3d   :  { %v1451_v29 = vpop.f32.mrf.mxu3 }
 0xa3e   :  { %v2788_v51 = vpop.eup %2787  ;;  %v1455_v35 = vadd.f32 %v1451_v29, %v398_v5 }
 0xa3f   :  { %1574 = vrot.lane.b32.xlu2 %v2788_v51, %s2972_s1 }
 0xa40   :  { %2789 = vtanh.f32 %v1455_v35 }
 0xa41   :  { %2791 = vpow2.f32 %v2588_v2 }
 0xa42   :  { %2793 = vpow2.f32 %v2589_v54 }
 0xa46   :  { %v2790_v27 = vpop.eup %2789 }
 0xa47   :  { %1576 = vrot.lane.b32.xlu0 %v2790_v27, %s2972_s1  ;;  %v2792_v59 = vpop.eup %2791 }
 0xa48   :  { %v1462_v48 = vadd.f32 1.0, %v2792_v59  ;;  %v2794_v42 = vpop.eup %2793 }
 0xa49   :  { %v1463_v40 = vadd.f32 1.0, %v2794_v42 }
 0xa4a   :  { %2795 = vrcp.f32 %v1462_v48  ;;  %v1475_v14 = vand.u32 2147483648, %v1462_v48  ;;  %vm1469_vm11 = vweird.f32 %v1462_v48  ;;  %v1473_v44 = vand.u32 2147483647, %v1462_v48 }
 0xa4b   :  { %2797 = vrcp.f32 %v1463_v40  ;;  %v1490_v0 = vand.u32 2147483648, %v1463_v40  ;;  %vm1484_vm15 = vweird.f32 %v1463_v40  ;;  %v1488_v5 = vand.u32 2147483647, %v1463_v40 }
 0xa4c   :  { %2799 = vpow2.f32 %v2590_v19  ;;  %v1476_v20 = vor.u32 1.1754944e-38, %v1475_v14  ;;  %vm1474_vm13 = vcmp.eq.f32.partialorder %v1473_v44, 8.507059e+37 }
 0xa4d   :  { %v1491_v27 = vor.u32 1.1754944e-38, %v1490_v0  ;;  %vm1489_vm3 = vcmp.eq.f32.partialorder %v1488_v5, 8.507059e+37 }
 0xa50   :  { %v2796_v31 = vpop.eup %2795 }
 0xa51   :  { %v1465_v49 = vmul.f32 %v2796_v31, %v1462_v48  ;;  %v2798_v22 = vpop.eup %2797  ;;  %vm1470_vm10 = vweird.f32 %v2796_v31 }
 0xa52   :  { %v1480_v57 = vmul.f32 %v2798_v22, %v1463_v40  ;;  %v2800_v24 = vpop.eup %2799  ;;  %vm1471_vm12 = vmor %vm1469_vm11, %vm1470_vm10  ;;  %vm1485_vm14 = vweird.f32 %v2798_v22 }
 0xa53   :  { %v1466_v17 = vsub.f32 1.0, %v1465_v49  ;;  %v1536_v39 = vadd.f32 1.0, %v2800_v24  ;;  %vm1486_vm2 = vmor %vm1484_vm15, %vm1485_vm14 }
 0xa54   :  { %v1481_v1 = vsub.f32 1.0, %v1480_v57 }
 0xa55   :  { %v1467_v36 = vmul.f32 %v2796_v31, %v1466_v17  ;;  %2801 = vrcp.f32 %v1536_v39  ;;  %v1549_v40 = vand.u32 2147483648, %v1536_v39  ;;  %vm1543_vm5 = vweird.f32 %v1536_v39 }
 0xa56   :  { %v1482_v12 = vmul.f32 %v2798_v22, %v1481_v1  ;;  %v1547_v17 = vand.u32 2147483647, %v1536_v39 }
 0xa57   :  { %v1468_v25 = vadd.f32 %v2796_v31, %v1467_v36  ;;  %v1550_v57 = vor.u32 1.1754944e-38, %v1549_v40 }
 0xa58   :  { %v1483_v52 = vadd.f32 %v2798_v22, %v1482_v12  ;;  %vm1548_vm7 = vcmp.eq.f32.partialorder %v1547_v17, 8.507059e+37 }
 0xa59   :  { %v1472_v41 = vsel %vm1471_vm12, %v2796_v31, %v1468_v25  ;;  %v2591_v31 = vmul.f32 -1.442695, %v1455_v35 }
 0xa5a   :  { %v3489_v56 = vsel %vm1474_vm13, %v1476_v20, %v1472_v41  ;;  %v1487_v29 = vsel %vm1486_vm2, %v2798_v22, %v1483_v52 }
 0xa5b   :  { %v2802_v51 = vpop.eup %2801  ;;  %v3493_v54 = vsel %vm1489_vm3, %v1491_v27, %v1487_v29  ;;  %2803 = vpow2.f32 %v2591_v31 }
 0xa5c   :  { %v1539_v48 = vmul.f32 %v2802_v51, %v1536_v39  ;;  %vm1544_vm4 = vweird.f32 %v2802_v51 }
 0xa5d   :  { %vm1545_vm6 = vmor %vm1543_vm5, %vm1544_vm4 }
 0xa5e   :  { %v1540_v42 = vsub.f32 1.0, %v1539_v48  ;;  %v1496_v48 = vmul.f32 %v3489_v56, %v3433_v18 }
 0xa60   :  { %v1541_v49 = vmul.f32 %v2802_v51, %v1540_v42 }
 0xa61   :  { %v2804_v22 = vpop.eup %2803 }
 0xa62   :  { %v1542_v19 = vadd.f32 %v2802_v51, %v1541_v49  ;;  %v1537_v24 = vadd.f32 1.0, %v2804_v22 }
 0xa64   :  { %v1546_v36 = vsel %vm1545_vm6, %v2802_v51, %v1542_v19  ;;  %2805 = vrcp.f32 %v1537_v24  ;;  %vm1558_vm9 = vweird.f32 %v1537_v24  ;;  %v1562_v39 = vand.u32 2147483647, %v1537_v24 }
 0xa65   :  { %v1551_v1 = vsel %vm1548_vm7, %v1550_v57, %v1546_v36  ;;  %v1497_v51 = vmul.f32 %v3493_v54, %v3438_v46 }
 0xa66   :  { %vm1563_vm11 = vcmp.eq.f32.partialorder %v1562_v39, 8.507059e+37  ;;  %v1570_v46 = vmul.f32 %v1551_v1, %v3449_v26 }
 0xa6a   :  { %v2806_v35 = vpop.eup %2805 }
 0xa6b   :  { %v1554_v44 = vmul.f32 %v2806_v35, %v1537_v24  ;;  %vm1559_vm8 = vweird.f32 %v2806_v35 }
 0xa6c   :  { %vm1560_vm10 = vmor %vm1558_vm9, %vm1559_vm8 }
 0xa6d   :  { %v1555_v41 = vsub.f32 1.0, %v1554_v44 }
 0xa6f   :  { %v1556_v12 = vmul.f32 %v2806_v35, %v1555_v41 }
 0xa71   :  { %v1557_v20 = vadd.f32 %v2806_v35, %v1556_v12 }
 0xa7d   :  { %v1501_v50 = vpop.permute.xlu0 %1500 }
 0xa7e   :  { %v1506_v23 = vmul.f32 %v1501_v50, %v3489_v56  ;;  %v1564_v50 = vand.u32 2147483648, %v1537_v24 }
 0xa80   :  { %1510 = vrot.lane.b32.xlu1 %v1506_v23, %s2971_s2  ;;  %v1561_v23 = vsel %vm1560_vm10, %v2806_v35, %v1557_v20  ;;  %v1565_v52 = vor.u32 1.1754944e-38, %v1564_v50 }
 0xa82   :  { %v1566_v0 = vsel %vm1563_vm11, %v1565_v52, %v1561_v23 }
 0xa83   :  { %v1571_v18 = vmul.f32 %v1566_v0, %v3444_v62 }
 0xa85   :  { %v1503_v2 = vpop.permute.xlu1 %1502 }
 0xa86   :  { %v1507_v59 = vmul.f32 %v1503_v2, %v3493_v54 }
 0xa88   :  { %1512 = vrot.lane.b32.xlu2 %v1507_v59, %s2971_s2 }
 0xa99   :  { %v1575_v25 = vpop.permute.xlu2 %1574 }
 0xa9a   :  { %v1580_v14 = vmul.f32 %v1575_v25, %v1551_v1 }
 0xa9c   :  { %1584 = vrot.lane.b32.xlu0 %v1580_v14, %s2971_s2 }
 0xab9   :  { %v1577_v5 = vpop.permute.xlu0 %1576 }
 0xaba   :  { %v1581_v29 = vmul.f32 %v1577_v5, %v1566_v0 }
 0xabc   :  { %1586 = vrot.lane.b32.xlu1 %v1581_v29, %s2971_s2 }
 0xae2   :  { %v1513_v27 = vpop.permute.xlu2 %1512 }
 0xae3   :  { %v3501_v2 = vadd.f32 %v1513_v27, %v1497_v51  ;;  %v2629_v51 = vld [vmem:[%s3937_s0 + $0x28] sm:$0xff] }
 0xae4   :  { %2479 = vmatmul.msk.bf16.gmra.mxu0 %vm157_vm1, %v2629_v51 }
 0xae5   :  { %2807 = vtanh.f32 %v3501_v2 }
 0xaeb   :  { %v2808_v59 = vpop.eup %2807 }
 0xaec   :  { %1524 = vrot.lane.b32.xlu0 %v2808_v59, %s2972_s1 }
 0xaf2   :  { %v1511_v42 = vpop.permute.xlu1 %1510 }
 0xaf3   :  { %v3507_v31 = vadd.f32 %v1511_v42, %v1496_v48 }
 0xaf5   :  { %2809 = vtanh.f32 %v3507_v31 }
 0xafb   :  { %v2810_v49 = vpop.eup %2809 }
 0xafc   :  { %1522 = vrot.lane.b32.xlu2 %v2810_v49, %s2972_s1 }
 0xb0e   :  { %v1585_v19 = vpop.permute.xlu0 %1584 }
 0xb0f   :  { %v3512_v40 = vadd.f32 %v1585_v19, %v1570_v46 }
 0xb11   :  { %2811 = vtanh.f32 %v3512_v40 }
 0xb17   :  { %v2812_v17 = vpop.eup %2811 }
 0xb18   :  { %1596 = vrot.lane.b32.xlu1 %v2812_v17, %s2972_s1 }
 0xb2e   :  { %v1587_v22 = vpop.permute.xlu1 %1586 }
 0xb2f   :  { %v3517_v36 = vadd.f32 %v1587_v22, %v1571_v18 }
 0xb31   :  { %2813 = vtanh.f32 %v3517_v36 }
 0xb37   :  { %v2814_v57 = vpop.eup %2813 }
 0xb38   :  { %1598 = vrot.lane.b32.xlu2 %v2814_v57, %s2972_s1  ;;  %v396_v57 = vadd.f32 %v3415_v38, %v3159_v47 }
 0xb56   :  { %v1523_v24 = vpop.permute.xlu2 %1522 }
 0xb57   :  { %v1528_v26 = vmul.f32 %v1523_v24, %v3489_v56 }
 0xb59   :  { %v3522_v14 = vpack.c.bf16 %v1528_v26, %v1528_v26 }
 0xb5b   :  { %v1633_v62 = vunpack.c.l.b16 %v3522_v14 }
 0xb5e   :  { %v1525_v25 = vpop.permute.xlu0 %1524 }
 0xb5f   :  { %v1529_v35 = vmul.f32 %v1525_v25, %v3493_v54 }
 0xb61   :  { %v3525_v44 = vpack.c.bf16 %v1529_v35, %v1529_v35  ;;  %v216_v27 = vpop.f32.mrf.mxu0 }
 0xb62   :  { %v244_v59 = vadd.f32 %v3404_v28, %v216_v27 }
 0xb63   :  { %v1634_v41 = vunpack.c.l.b16 %v3525_v44 }
 0xb65   :  { %v1635_v12 = vpack.c.b16 %v1634_v41, %v1633_v62 }
 0xb67   :  { %1636 = vrot.lane.b32.xlu0 %v1635_v12, %s2971_s2 }
 0xb69   :  { %v218_v49 = vpop.f32.mrf.mxu0 }
 0xb6a   :  { %v245_v46 = vadd.f32 %v3404_v28, %v218_v49 }
 0xb8a   :  { %v1597_v20 = vpop.permute.xlu1 %1596 }
 0xb8b   :  { %v1602_v50 = vmul.f32 %v1597_v20, %v1551_v1 }
 0xb8d   :  { %v3530_v23 = vpack.c.bf16 %v1602_v50, %v1602_v50 }
 0xb8f   :  { %v1660_v5 = vunpack.c.l.b16 %v3530_v23 }
 0xb92   :  { %v1599_v39 = vpop.permute.xlu2 %1598 }
 0xb93   :  { %v1603_v56 = vmul.f32 %v1599_v39, %v1566_v0 }
 0xb95   :  { %v3532_v52 = vpack.c.bf16 %v1603_v56, %v1603_v56 }
 0xb97   :  { %v1661_v54 = vunpack.c.l.b16 %v3532_v52 }
 0xb99   :  { %v1662_v29 = vpack.c.b16 %v1661_v54, %v1660_v5 }
 0xb9b   :  { %1663 = vrot.lane.b32.xlu1 %v1662_v29, %s2971_s2 }
 0xbd9   :  { %v1637_v1 = vpop.permute.xlu0 %1636 }
 0xbda   :  { %2596 = vmatmul.msk.bf16.vlgmr.msrb.gmra.mxu2 %vm77_vm0, %v1637_v1 }
 0xbdb   :  { %2103 = vmatpush.bf16.msrb.mxu2 %v3379_v60 }
 0xbdf   :  { %2104 = vmatpush.bf16.msrb.mxu2 %v3385_v8 }
 0xc0d   :  { %v1664_v0 = vpop.permute.xlu1 %1663 }
 0xc0e   :  { %2597 = vmatmul.msk.bf16.vlgmr.msrb.gmra.mxu3 %vm77_vm0, %v1664_v0 }
 0xc0f   :  { %2129 = vmatpush.bf16.msrb.mxu3 %v3392_v4  ;;  %v395_v4 = vadd.f32 %v3415_v38, %v3156_v45 }
 0xc13   :  { %2130 = vmatpush.bf16.msrb.mxu3 %v3398_v10 }
 0xc5d   :  { %v1650_v48 = vpop.f32.mrf.mxu2 }
 0xc5e   :  { %v1655_v42 = vadd.f32 %v1650_v48, %v244_v59 }
 0xc60   :  { %2815 = vtanh.f32 %v1655_v42  ;;  %v2598_v22 = vmul.f32 -1.442695, %v1655_v42 }
 0xc65   :  { %v1652_v19 = vpop.f32.mrf.mxu2 }
 0xc66   :  { %v2816_v60 = vpop.eup %2815  ;;  %v1656_v17 = vadd.f32 %v1652_v19, %v245_v46 }
 0xc67   :  { %1728 = vrot.lane.b32.xlu2 %v2816_v60, %s2972_s1 }
 0xc68   :  { %2817 = vtanh.f32 %v1656_v17  ;;  %v2599_v50 = vmul.f32 -1.442695, %v1656_v17 }
 0xc6e   :  { %v2818_v8 = vpop.eup %2817 }
 0xc6f   :  { %1730 = vrot.lane.b32.xlu0 %v2818_v8, %s2972_s1 }
 0xc91   :  { %v1677_v10 = vpop.f32.mrf.mxu3 }
 0xc92   :  { %v1682_v18 = vadd.f32 %v1677_v10, %v395_v4 }
 0xc94   :  { %2819 = vtanh.f32 %v1682_v18 }
 0xc95   :  { %2821 = vpow2.f32 %v2598_v22 }
 0xc99   :  { %v1679_v24 = vpop.f32.mrf.mxu3 }
 0xc9a   :  { %v2820_v26 = vpop.eup %2819  ;;  %v1683_v25 = vadd.f32 %v1679_v24, %v396_v57  ;;  %v2600_v24 = vmul.f32 -1.442695, %v1682_v18 }
 0xc9b   :  { %1802 = vrot.lane.b32.xlu1 %v2820_v26, %s2972_s1  ;;  %v2822_v35 = vpop.eup %2821 }
 0xc9c   :  { %2823 = vtanh.f32 %v1683_v25  ;;  %v1690_v62 = vadd.f32 1.0, %v2822_v35  ;;  %v2601_v49 = vmul.f32 -1.442695, %v1683_v25 }
 0xc9e   :  { %2825 = vrcp.f32 %v1690_v62  ;;  %v1703_v56 = vand.u32 2147483648, %v1690_v62  ;;  %vm1697_vm13 = vweird.f32 %v1690_v62  ;;  %v1701_v5 = vand.u32 2147483647, %v1690_v62 }
 0xc9f   :  { %2827 = vpow2.f32 %v2599_v50 }
 0xca0   :  { %v1704_v51 = vor.u32 1.1754944e-38, %v1703_v56  ;;  %vm1702_vm15 = vcmp.eq.f32.partialorder %v1701_v5, 8.507059e+37 }
 0xca2   :  { %v2824_v41 = vpop.eup %2823 }
 0xca3   :  { %1804 = vrot.lane.b32.xlu2 %v2824_v41, %s2972_s1 }
 0xca4   :  { %v2826_v45 = vpop.eup %2825 }
 0xca5   :  { %v1693_v12 = vmul.f32 %v2826_v45, %v1690_v62  ;;  %vm1698_vm12 = vweird.f32 %v2826_v45  ;;  %v2828_v54 = vpop.eup %2827 }
 0xca6   :  { %vm1699_vm14 = vmor %vm1697_vm13, %vm1698_vm12  ;;  %v1691_v1 = vadd.f32 1.0, %v2828_v54 }
 0xca7   :  { %v1694_v20 = vsub.f32 1.0, %v1693_v12 }
 0xca8   :  { %2829 = vrcp.f32 %v1691_v1  ;;  %v1718_v8 = vand.u32 2147483648, %v1691_v1  ;;  %vm1712_vm3 = vweird.f32 %v1691_v1  ;;  %v1716_v4 = vand.u32 2147483647, %v1691_v1 }
 0xca9   :  { %v1695_v39 = vmul.f32 %v2826_v45, %v1694_v20  ;;  %2831 = vpow2.f32 %v2601_v49 }
 0xcaa   :  { %v1719_v57 = vor.u32 1.1754944e-38, %v1718_v8  ;;  %vm1717_vm5 = vcmp.eq.f32.partialorder %v1716_v4, 8.507059e+37 }
 0xcab   :  { %v1696_v47 = vadd.f32 %v2826_v45, %v1695_v39 }
 0xcad   :  { %v1700_v29 = vsel %vm1699_vm14, %v2826_v45, %v1696_v47 }
 0xcae   :  { %v3557_v27 = vsel %vm1702_vm15, %v1704_v51, %v1700_v29  ;;  %v2830_v48 = vpop.eup %2829 }
 0xcaf   :  { %v1708_v42 = vmul.f32 %v2830_v48, %v1691_v1  ;;  %v2832_v60 = vpop.eup %2831  ;;  %vm1713_vm2 = vweird.f32 %v2830_v48 }
 0xcb0   :  { %v1765_v10 = vadd.f32 1.0, %v2832_v60  ;;  %vm1714_vm4 = vmor %vm1712_vm3, %vm1713_vm2 }
 0xcb1   :  { %v1709_v46 = vsub.f32 1.0, %v1708_v42 }
 0xcb2   :  { %2833 = vrcp.f32 %v1765_v10  ;;  %v1792_v47 = vand.u32 2147483648, %v1765_v10  ;;  %vm1786_vm7 = vweird.f32 %v1765_v10  ;;  %v1790_v56 = vand.u32 2147483647, %v1765_v10 }
 0xcb3   :  { %v1710_v19 = vmul.f32 %v2830_v48, %v1709_v46  ;;  %2835 = vpow2.f32 %v2600_v24 }
 0xcb4   :  { %v1793_v29 = vor.u32 1.1754944e-38, %v1792_v47  ;;  %vm1791_vm9 = vcmp.eq.f32.partialorder %v1790_v56, 8.507059e+37 }
 0xcb5   :  { %v1711_v17 = vadd.f32 %v2830_v48, %v1710_v19 }
 0xcb7   :  { %v1715_v22 = vsel %vm1714_vm4, %v2830_v48, %v1711_v17 }
 0xcb8   :  { %v3561_v35 = vsel %vm1717_vm5, %v1719_v57, %v1715_v22  ;;  %v2834_v62 = vpop.eup %2833 }
 0xcb9   :  { %v2836_v41 = vpop.eup %2835  ;;  %v1782_v45 = vmul.f32 %v2834_v62, %v1765_v10  ;;  %vm1787_vm6 = vweird.f32 %v2834_v62  ;;  %v1724_v10 = vmul.f32 %v3557_v27, %v3507_v31 }
 0xcba   :  { %v1764_v12 = vadd.f32 1.0, %v2836_v41  ;;  %vm1788_vm8 = vmor %vm1786_vm7, %vm1787_vm6 }
 0xcbb   :  { %v1783_v20 = vsub.f32 1.0, %v1782_v45 }
 0xcbc   :  { %2837 = vrcp.f32 %v1764_v12  ;;  %v1777_v49 = vand.u32 2147483648, %v1764_v12  ;;  %vm1771_vm11 = vweird.f32 %v1764_v12  ;;  %v1775_v46 = vand.u32 2147483647, %v1764_v12 }
 0xcbd   :  { %v1784_v50 = vmul.f32 %v2834_v62, %v1783_v20 }
 0xcbe   :  { %v1778_v60 = vor.u32 1.1754944e-38, %v1777_v49  ;;  %vm1776_vm13 = vcmp.eq.f32.partialorder %v1775_v46, 8.507059e+37 }
 0xcbf   :  { %v1785_v39 = vadd.f32 %v2834_v62, %v1784_v50 }
 0xcc1   :  { %v1729_v0 = vpop.permute.xlu2 %1728  ;;  %v1789_v5 = vsel %vm1788_vm8, %v2834_v62, %v1785_v39 }
 0xcc2   :  { %v1734_v59 = vmul.f32 %v1729_v0, %v3557_v27  ;;  %v2838_v18 = vpop.eup %2837  ;;  %v1794_v51 = vsel %vm1791_vm9, %v1793_v29, %v1789_v5 }
 0xcc3   :  { %v1767_v54 = vmul.f32 %v2838_v18, %v1764_v12  ;;  %vm1772_vm10 = vweird.f32 %v2838_v18  ;;  %v1799_v20 = vmul.f32 %v1794_v51, %v3517_v36 }
 0xcc4   :  { %1738 = vrot.lane.b32.xlu0 %v1734_v59, %s2971_s2  ;;  %vm1773_vm12 = vmor %vm1771_vm11, %vm1772_vm10 }
 0xcc5   :  { %v1768_v59 = vsub.f32 1.0, %v1767_v54 }
 0xcc7   :  { %v1769_v48 = vmul.f32 %v2838_v18, %v1768_v59 }
 0xcc9   :  { %v1770_v42 = vadd.f32 %v2838_v18, %v1769_v48 }
 0xccb   :  { %v1774_v19 = vsel %vm1773_vm12, %v2838_v18, %v1770_v42 }
 0xccc   :  { %v1779_v8 = vsel %vm1776_vm13, %v1778_v60, %v1774_v19 }
 0xccd   :  { %v1798_v31 = vmul.f32 %v1779_v8, %v3512_v40 }
 0xce1   :  { %v1731_v26 = vpop.permute.xlu0 %1730 }
 0xce2   :  { %v1735_v25 = vmul.f32 %v1731_v26, %v3561_v35  ;;  %v1725_v26 = vmul.f32 %v3561_v35, %v3501_v2 }
 0xce4   :  { %1740 = vrot.lane.b32.xlu1 %v1735_v25, %s2971_s2 }
 0xcfd   :  { %v1805_v1 = vpop.permute.xlu2 %1804 }
 0xcfe   :  { %v1809_v0 = vmul.f32 %v1805_v1, %v1794_v51 }
 0xd00   :  { %1814 = vrot.lane.b32.xlu0 %v1809_v0, %s2971_s2 }
 0xd0d   :  { %v1803_v17 = vpop.permute.xlu1 %1802 }
 0xd0e   :  { %v1808_v4 = vmul.f32 %v1803_v17, %v1779_v8  ;;  %v2630_v17 = vld [vmem:[%s3937_s0 + $0x30] sm:$0xff] }
 0xd0f   :  { %2480 = vmatmul.msk.bf16.gmra.mxu0 %vm157_vm1, %v2630_v17 }
 0xd10   :  { %1812 = vrot.lane.b32.xlu2 %v1808_v4, %s2971_s2 }
 0xd36   :  { %v1739_v22 = vpop.permute.xlu0 %1738 }
 0xd37   :  { %v3569_v57 = vadd.f32 %v1739_v22, %v1724_v10 }
 0xd39   :  { %2839 = vtanh.f32 %v3569_v57 }
 0xd3f   :  { %v2840_v24 = vpop.eup %2839 }
 0xd40   :  { %1750 = vrot.lane.b32.xlu1 %v2840_v24, %s2972_s1 }
 0xd56   :  { %v1741_v25 = vpop.permute.xlu1 %1740 }
 0xd57   :  { %v3575_v62 = vadd.f32 %v1741_v25, %v1725_v26 }
 0xd59   :  { %2841 = vtanh.f32 %v3575_v62 }
 0xd5f   :  { %v2842_v41 = vpop.eup %2841 }
 0xd60   :  { %1752 = vrot.lane.b32.xlu2 %v2842_v41, %s2972_s1 }
 0xd6a   :  { %v1813_v45 = vpop.permute.xlu2 %1812 }
 0xd6b   :  { %v3580_v12 = vadd.f32 %v1813_v45, %v1798_v31 }
 0xd6d   :  { %2843 = vtanh.f32 %v3580_v12 }
 0xd72   :  { %v1815_v50 = vpop.permute.xlu0 %1814 }
 0xd73   :  { %v2844_v39 = vpop.eup %2843  ;;  %v3584_v2 = vadd.f32 %v1815_v50, %v1799_v20 }
 0xd74   :  { %1824 = vrot.lane.b32.xlu0 %v2844_v39, %s2972_s1 }
 0xd75   :  { %2845 = vtanh.f32 %v3584_v2 }
 0xd7b   :  { %v2846_v18 = vpop.eup %2845 }
 0xd7c   :  { %1826 = vrot.lane.b32.xlu1 %v2846_v18, %s2972_s1  ;;  %v393_v18 = vadd.f32 %v3415_v38, %v3149_v37 }
 0xdb2   :  { %v1751_v47 = vpop.permute.xlu1 %1750 }
 0xdb3   :  { %v1756_v40 = vmul.f32 %v1751_v47, %v3557_v27 }
 0xdb5   :  { %v3590_v5 = vpack.c.bf16 %v1756_v40, %v1756_v40 }
 0xdb7   :  { %v1861_v29 = vunpack.c.l.b16 %v3590_v5 }
 0xdba   :  { %v1753_v56 = vpop.permute.xlu2 %1752 }
 0xdbb   :  { %v1757_v54 = vmul.f32 %v1753_v56, %v3561_v35 }
 0xdbd   :  { %v3593_v36 = vpack.c.bf16 %v1757_v54, %v1757_v54 }
 0xdbf   :  { %v1862_v1 = vunpack.c.l.b16 %v3593_v36 }
 0xdc1   :  { %v1863_v0 = vpack.c.b16 %v1862_v1, %v1861_v29 }
 0xdc3   :  { %1864 = vrot.lane.b32.xlu2 %v1863_v0, %s2971_s2 }
 0xde6   :  { %v1825_v59 = vpop.permute.xlu0 %1824 }
 0xde7   :  { %v1830_v48 = vmul.f32 %v1825_v59, %v1779_v8 }
 0xde9   :  { %v3598_v49 = vpack.c.bf16 %v1830_v48, %v1830_v48 }
 0xdeb   :  { %v1888_v19 = vunpack.c.l.b16 %v3598_v49 }
 0xdee   :  { %v1827_v42 = vpop.permute.xlu1 %1826 }
 0xdef   :  { %v1831_v27 = vmul.f32 %v1827_v42, %v1794_v51  ;;  %v221_v51 = vpop.f32.mrf.mxu0 }
 0xdf0   :  { %v246_v10 = vadd.f32 %v3404_v28, %v221_v51 }
 0xdf1   :  { %v3600_v46 = vpack.c.bf16 %v1831_v27, %v1831_v27 }
 0xdf3   :  { %v1889_v35 = vunpack.c.l.b16 %v3600_v46 }
 0xdf5   :  { %v1890_v60 = vpack.c.b16 %v1889_v35, %v1888_v19 }
 0xdf7   :  { %1891 = vrot.lane.b32.xlu0 %v1890_v60, %s2971_s2  ;;  %v223_v26 = vpop.f32.mrf.mxu0 }
 0xdf8   :  { %v247_v25 = vadd.f32 %v3404_v28, %v223_v26  ;;  %v394_v28 = vadd.f32 %v3415_v38, %v3153_v43 }
 0xe1d   :  { %v1865_v8 = vpop.permute.xlu2 %1864 }
 0xe1e   :  { %2606 = vmatmul.msk.bf16.vlgmr.msra.gmra.mxu2 %vm77_vm0, %v1865_v8 }
 0xe69   :  { %v1892_v4 = vpop.permute.xlu0 %1891 }
 0xe6a   :  { %2607 = vmatmul.msk.bf16.vlgmr.msra.gmra.mxu3 %vm77_vm0, %v1892_v4 }
 0xea1   :  { %v1878_v22 = vpop.f32.mrf.mxu2 }
 0xea2   :  { %v1883_v24 = vadd.f32 %v1878_v22, %v246_v10 }
 0xea4   :  { %2847 = vtanh.f32 %v1883_v24  ;;  %v2608_v54 = vmul.f32 -1.442695, %v1883_v24 }
 0xea9   :  { %v1880_v41 = vpop.f32.mrf.mxu2 }
 0xeaa   :  { %v2848_v31 = vpop.eup %2847  ;;  %v1884_v45 = vadd.f32 %v1880_v41, %v247_v25 }
 0xeab   :  { %1956 = vrot.lane.b32.xlu1 %v2848_v31, %s2972_s1 }
 0xeac   :  { %2849 = vtanh.f32 %v1884_v45  ;;  %v2609_v50 = vmul.f32 -1.442695, %v1884_v45 }
 0xeae   :  { %2851 = vpow2.f32 %v2609_v50 }
 0xeb2   :  { %v2850_v20 = vpop.eup %2849 }
 0xeb3   :  { %1958 = vrot.lane.b32.xlu2 %v2850_v20, %s2972_s1 }
 0xeb4   :  { %v2852_v39 = vpop.eup %2851 }
 0xeb5   :  { %v1919_v47 = vadd.f32 1.0, %v2852_v39 }
 0xeb7   :  { %v1946_v38 = vand.u32 2147483648, %v1919_v47  ;;  %vm1940_vm15 = vweird.f32 %v1919_v47  ;;  %v1944_v17 = vand.u32 2147483647, %v1919_v47 }
 0xeb9   :  { %v1947_v51 = vor.u32 1.1754944e-38, %v1946_v38  ;;  %vm1945_vm3 = vcmp.eq.f32.partialorder %v1944_v17, 8.507059e+37 }
 0xeed   :  { %v1905_v40 = vpop.f32.mrf.mxu3 }
 0xeee   :  { %v1910_v56 = vadd.f32 %v1905_v40, %v393_v18 }
 0xef0   :  { %2853 = vtanh.f32 %v1910_v56  ;;  %v2610_v40 = vmul.f32 -1.442695, %v1910_v56 }
 0xef1   :  { %2855 = vrcp.f32 %v1919_v47 }
 0xef2   :  { %2857 = vpow2.f32 %v2608_v54 }
 0xef5   :  { %v1907_v29 = vpop.f32.mrf.mxu3 }
 0xef6   :  { %v2854_v1 = vpop.eup %2853  ;;  %v1911_v0 = vadd.f32 %v1907_v29, %v394_v28 }
 0xef7   :  { %v2856_v59 = vpop.eup %2855  ;;  %2030 = vrot.lane.b32.xlu0 %v2854_v1, %s2972_s1 }
 0xef8   :  { %2859 = vtanh.f32 %v1911_v0  ;;  %v2858_v48 = vpop.eup %2857  ;;  %v1936_v42 = vmul.f32 %v2856_v59, %v1919_v47  ;;  %vm1941_vm14 = vweird.f32 %v2856_v59  ;;  %v2611_v54 = vmul.f32 -1.442695, %v1911_v0 }
 0xef9   :  { %v1918_v37 = vadd.f32 1.0, %v2858_v48  ;;  %vm1942_vm2 = vmor %vm1940_vm15, %vm1941_vm14 }
 0xefa   :  { %v1937_v19 = vsub.f32 1.0, %v1936_v42 }
 0xefb   :  { %2861 = vrcp.f32 %v1918_v37  ;;  %v1931_v31 = vand.u32 2147483648, %v1918_v37  ;;  %vm1925_vm5 = vweird.f32 %v1918_v37  ;;  %v1929_v45 = vand.u32 2147483647, %v1918_v37 }
 0xefc   :  { %v1938_v35 = vmul.f32 %v2856_v59, %v1937_v19  ;;  %2863 = vpow2.f32 %v2610_v40 }
 0xefd   :  { %v1932_v50 = vor.u32 1.1754944e-38, %v1931_v31  ;;  %vm1930_vm7 = vcmp.eq.f32.partialorder %v1929_v45, 8.507059e+37  ;;  %2865 = vpow2.f32 %v2611_v54 }
 0xefe   :  { %v2860_v27 = vpop.eup %2859  ;;  %v1939_v60 = vadd.f32 %v2856_v59, %v1938_v35 }
 0xeff   :  { %2032 = vrot.lane.b32.xlu1 %v2860_v27, %s2972_s1 }
 0xf00   :  { %v1943_v8 = vsel %vm1942_vm2, %v2856_v59, %v1939_v60 }
 0xf01   :  { %v2862_v43 = vpop.eup %2861  ;;  %v3621_v22 = vsel %vm1945_vm3, %v1947_v51, %v1943_v8 }
 0xf02   :  { %v1921_v4 = vmul.f32 %v2862_v43, %v1918_v37  ;;  %vm1926_vm4 = vweird.f32 %v2862_v43  ;;  %v2864_v28 = vpop.eup %2863  ;;  %v1953_v54 = vmul.f32 %v3621_v22, %v3575_v62 }
 0xf03   :  { %vm1927_vm6 = vmor %vm1925_vm5, %vm1926_vm4  ;;  %v1992_v29 = vadd.f32 1.0, %v2864_v28  ;;  %v2866_v1 = vpop.eup %2865 }
 0xf04   :  { %v1922_v26 = vsub.f32 1.0, %v1921_v4  ;;  %v1993_v59 = vadd.f32 1.0, %v2866_v1 }
 0xf05   :  { %2867 = vrcp.f32 %v1992_v29  ;;  %v2005_v38 = vand.u32 2147483648, %v1992_v29  ;;  %vm1999_vm9 = vweird.f32 %v1992_v29  ;;  %v2003_v56 = vand.u32 2147483647, %v1992_v29 }
 0xf06   :  { %v1923_v25 = vmul.f32 %v2862_v43, %v1922_v26  ;;  %2869 = vrcp.f32 %v1993_v59  ;;  %v2020_v26 = vand.u32 2147483648, %v1993_v59  ;;  %vm2014_vm13 = vweird.f32 %v1993_v59 }
 0xf07   :  { %v2006_v8 = vor.u32 1.1754944e-38, %v2005_v38  ;;  %vm2004_vm11 = vcmp.eq.f32.partialorder %v2003_v56, 8.507059e+37 }
 0xf08   :  { %v1924_v41 = vadd.f32 %v2862_v43, %v1923_v25  ;;  %v2018_v25 = vand.u32 2147483647, %v1993_v59  ;;  %v2021_v31 = vor.u32 1.1754944e-38, %v2020_v26 }
 0xf0a   :  { %v1928_v20 = vsel %vm1927_vm6, %v2862_v43, %v1924_v41  ;;  %vm2019_vm15 = vcmp.eq.f32.partialorder %v2018_v25, 8.507059e+37 }
 0xf0b   :  { %v3625_v18 = vsel %vm1930_vm7, %v1932_v50, %v1928_v20  ;;  %v2868_v48 = vpop.eup %2867 }
 0xf0c   :  { %v1995_v42 = vmul.f32 %v2868_v48, %v1992_v29  ;;  %v2870_v27 = vpop.eup %2869  ;;  %vm2000_vm8 = vweird.f32 %v2868_v48 }
 0xf0d   :  { %v1959_v10 = vpop.permute.xlu2 %1958  ;;  %v2010_v35 = vmul.f32 %v2870_v27, %v1993_v59  ;;  %vm2001_vm10 = vmor %vm1999_vm9, %vm2000_vm8  ;;  %vm2015_vm12 = vweird.f32 %v2870_v27  ;;  %vm702_vm9 = vcmask 257024  }
 0xf0e   :  { %v1963_v24 = vmul.f32 %v1959_v10, %v3621_v22  ;;  %v1996_v37 = vsub.f32 1.0, %v1995_v42  ;;  %vm2016_vm14 = vmor %vm2014_vm13, %vm2015_vm12 }
 0xf0f   :  { %v2011_v43 = vsub.f32 1.0, %v2010_v35 }
 0xf10   :  { %1968 = vrot.lane.b32.xlu0 %v1963_v24, %s2971_s2  ;;  %v1997_v19 = vmul.f32 %v2868_v48, %v1996_v37 }
 0xf11   :  { %v2012_v17 = vmul.f32 %v2870_v27, %v2011_v43 }
 0xf12   :  { %v1998_v60 = vadd.f32 %v2868_v48, %v1997_v19 }
 0xf13   :  { %v2013_v24 = vadd.f32 %v2870_v27, %v2012_v17 }
 0xf14   :  { %v2002_v0 = vsel %vm2001_vm10, %v2868_v48, %v1998_v60 }
 0xf15   :  { %v2007_v51 = vsel %vm2004_vm11, %v2006_v8, %v2002_v0  ;;  %v2017_v41 = vsel %vm2016_vm14, %v2870_v27, %v2013_v24 }
 0xf16   :  { %v2022_v45 = vsel %vm2019_vm15, %v2021_v31, %v2017_v41  ;;  %v2026_v62 = vmul.f32 %v2007_v51, %v3580_v12 }
 0xf1d   :  { %v1957_v39 = vpop.permute.xlu1 %1956 }
 0xf1e   :  { %v1962_v47 = vmul.f32 %v1957_v39, %v3625_v18  ;;  %v1952_v39 = vmul.f32 %v3625_v18, %v3569_v57  ;;  %v2027_v57 = vmul.f32 %v2022_v45, %v3584_v2 }
 0xf20   :  { %1966 = vrot.lane.b32.xlu2 %v1962_v47, %s2971_s2 }
 0xf69   :  { %v2031_v4 = vpop.permute.xlu0 %2030 }
 0xf6a   :  { %v2036_v10 = vmul.f32 %v2031_v4, %v2007_v51 }
 0xf6c   :  { %2040 = vrot.lane.b32.xlu1 %v2036_v10, %s2971_s2 }
 0xf71   :  { %v2033_v20 = vpop.permute.xlu1 %2032 }
 0xf72   :  { %v2037_v50 = vmul.f32 %v2033_v20, %v2022_v45  ;;  %v2631_v20 = vld [vmem:[%s3937_s0 + $0x38] sm:$0xff] }
 0xf73   :  { %2481 = vmatmul.msk.bf16.gmra.mxu0 %vm157_vm1, %v2631_v20 }
 0xf74   :  { %2042 = vrot.lane.b32.xlu2 %v2037_v50, %s2971_s2 }
 0xf7a   :  { %v1967_v47 = vpop.permute.xlu2 %1966 }
 0xf7b   :  { %v3633_v40 = vadd.f32 %v1967_v47, %v1952_v39  ;;  %v2917_v39 = vld [vmem:[%s3943_s6] ss:$0 sm:$0xff] }
 0xf7d   :  { %2871 = vtanh.f32 %v3633_v40 }
 0xf82   :  { %v1969_v28 = vpop.permute.xlu0 %1968 }
 0xf83   :  { %v2872_v29 = vpop.eup %2871  ;;  %v3638_v1 = vadd.f32 %v1969_v28, %v1953_v54 }
 0xf84   :  { %1978 = vrot.lane.b32.xlu0 %v2872_v29, %s2972_s1 }
 0xf85   :  { %2873 = vtanh.f32 %v3638_v1 }
 0xf8b   :  { %v2874_v59 = vpop.eup %2873 }
 0xf8c   :  { %1980 = vrot.lane.b32.xlu1 %v2874_v59, %s2972_s1 }
 0xfce   :  { %v2043_v48 = vpop.permute.xlu2 %2042 }
 0xfcf   :  { %v3644_v42 = vadd.f32 %v2043_v48, %v2027_v57 }
 0xfd1   :  { %2875 = vtanh.f32 %v3644_v42 }
 0xfd7   :  { %v2876_v37 = vpop.eup %2875 }
 0xfd8   :  { %2054 = vrot.lane.b32.xlu0 %v2876_v37, %s2972_s1 }
 0xfde   :  { %v2041_v27 = vpop.permute.xlu1 %2040 }
 0xfdf   :  { %v3649_v19 = vadd.f32 %v2041_v27, %v2026_v62  ;;  %v2918_v27 = vld [vmem:[%s3943_s6 + $0x1] ss:$0 sm:$0xff] }
 0xfe1   :  { %2877 = vtanh.f32 %v3649_v19 }
 0xfe7   :  { %v2878_v35 = vpop.eup %2877 }
 0xfe8   :  { %2052 = vrot.lane.b32.xlu2 %v2878_v35, %s2972_s1  ;;  %v391_v35 = vadd.f32 %v2918_v27, %v3138_v30 }
 0xff6   :  { %v1979_v60 = vpop.permute.xlu0 %1978 }
 0xff7   :  { %v1984_v2 = vmul.f32 %v1979_v60, %v3625_v18 }
 0xff9   :  { %v3654_v38 = vpack.c.bf16 %v1984_v2, %v1984_v2 }
 0xffb   :  { %v2089_v12 = vunpack.c.l.b16 %v3654_v38 }
 0xffe   :  { %v1981_v43 = vpop.permute.xlu1 %1980 }
 0xfff   :  { %v1985_v56 = vmul.f32 %v1981_v43, %v3621_v22  ;;  %v392_v43 = vadd.f32 %v2918_v27, %v3146_v33 }
0x1001   :  { %v3657_v0 = vpack.c.bf16 %v1985_v56, %v1985_v56 }
0x1003   :  { %v2090_v17 = vunpack.c.l.b16 %v3657_v0 }
0x1005   :  { %v2091_v8 = vpack.c.b16 %v2090_v17, %v2089_v12 }
0x1007   :  { %2092 = vrot.lane.b32.xlu1 %v2091_v8, %s2971_s2 }
0x1042   :  { %v2053_v4 = vpop.permute.xlu2 %2052 }
0x1043   :  { %v2058_v10 = vmul.f32 %v2053_v4, %v2007_v51 }
0x1045   :  { %v3662_v26 = vpack.c.bf16 %v2058_v10, %v2058_v10 }
0x1047   :  { %v2115_v41 = vunpack.c.l.b16 %v3662_v26 }
0x104a   :  { %v2055_v24 = vpop.permute.xlu0 %2054 }
0x104b   :  { %v2059_v18 = vmul.f32 %v2055_v24, %v2022_v45  ;;  %v226_v45 = vpop.f32.mrf.mxu0 }
0x104c   :  { %v248_v47 = vadd.f32 %v2917_v39, %v226_v45 }
0x104d   :  { %v3664_v25 = vpack.c.bf16 %v2059_v18, %v2059_v18 }
0x104f   :  { %v2116_v22 = vunpack.c.l.b16 %v3664_v25 }
0x1051   :  { %v2117_v31 = vpack.c.b16 %v2116_v22, %v2115_v41 }
0x1053   :  { %2118 = vrot.lane.b32.xlu2 %v2117_v31, %s2971_s2  ;;  %v228_v29 = vpop.f32.mrf.mxu0 }
0x1054   :  { %v249_v59 = vadd.f32 %v2917_v39, %v228_v29 }
0x1079   :  { %v2093_v51 = vpop.permute.xlu1 %2092 }
0x107a   :  { %2616 = vmatmul.msk.bf16.vlgmr.msrb.gmra.mxu2 %vm77_vm0, %v2093_v51 }
0x10ad   :  { %v2119_v50 = vpop.permute.xlu2 %2118 }
0x10ae   :  { %2617 = vmatmul.msk.bf16.vlgmr.msrb.gmra.mxu3 %vm77_vm0, %v2119_v50 }
0x10fd   :  { %v2106_v54 = vpop.f32.mrf.mxu2 }
0x10fe   :  { %v2111_v28 = vadd.f32 %v2106_v54, %v248_v47 }
0x1100   :  { %2879 = vtanh.f32 %v2111_v28  ;;  %v2618_v30 = vmul.f32 -1.442695, %v2111_v28 }
0x1105   :  { %v2108_v57 = vpop.f32.mrf.mxu2 }
0x1106   :  { %v2880_v48 = vpop.eup %2879  ;;  %v2112_v37 = vadd.f32 %v2108_v57, %v249_v59 }
0x1107   :  { %2183 = vrot.lane.b32.xlu0 %v2880_v48, %s2972_s1 }
0x1108   :  { %2881 = vtanh.f32 %v2112_v37  ;;  %v2619_v33 = vmul.f32 -1.442695, %v2112_v37 }
0x110e   :  { %v2882_v62 = vpop.eup %2881 }
0x110f   :  { %2185 = vrot.lane.b32.xlu1 %v2882_v62, %s2972_s1 }
0x1117   :  { %696 = vrot.lane.b32.xlu1 %v3220_v3, %s2971_s2 }
0x111f   :  { %711 = vrot.lane.b32.xlu1 %v3230_v16, %s2971_s2 }
0x1127   :  { %926 = vrot.lane.b32.xlu1 %v3291_v6, %s2971_s2 }
0x1131   :  { %v2132_v60 = vpop.f32.mrf.mxu3 }
0x1132   :  { %v2137_v2 = vadd.f32 %v2132_v60, %v391_v35 }
0x1134   :  { %2883 = vtanh.f32 %v2137_v2  ;;  %v2620_v10 = vmul.f32 -1.442695, %v2137_v2 }
0x1139   :  { %v2134_v56 = vpop.f32.mrf.mxu3 }
0x113a   :  { %v2884_v12 = vpop.eup %2883  ;;  %v2138_v3 = vadd.f32 %v2134_v56, %v392_v43 }
0x113b   :  { %2257 = vrot.lane.b32.xlu2 %v2884_v12, %s2972_s1 }
0x113c   :  { %2885 = vtanh.f32 %v2138_v3  ;;  %v2621_v56 = vmul.f32 -1.442695, %v2138_v3 }
0x113d   :  { %2887 = vpow2.f32 %v2618_v30 }
0x113e   :  { %2889 = vpow2.f32 %v2619_v33 }
0x1142   :  { %v2886_v16 = vpop.eup %2885 }
0x1143   :  { %698 = vrot.lane.b32.xlu2 %v3223_v7, %s2971_s2  ;;  %2259 = vrot.lane.b32.xlu0 %v2886_v16, %s2972_s1  ;;  %v2888_v6 = vpop.eup %2887 }
0x1144   :  { %v2145_v7 = vadd.f32 1.0, %v2888_v6  ;;  %v2890_v17 = vpop.eup %2889 }
0x1145   :  { %v2146_v8 = vadd.f32 1.0, %v2890_v17 }
0x1146   :  { %2891 = vrcp.f32 %v2145_v7  ;;  %v2158_v31 = vand.u32 2147483648, %v2145_v7  ;;  %vm2152_vm2 = vweird.f32 %v2145_v7  ;;  %v2156_v20 = vand.u32 2147483647, %v2145_v7 }
0x1147   :  { %2893 = vrcp.f32 %v2146_v8  ;;  %v2173_v59 = vand.u32 2147483648, %v2146_v8  ;;  %vm2167_vm6 = vweird.f32 %v2146_v8  ;;  %v2171_v57 = vand.u32 2147483647, %v2146_v8 }
0x1148   :  { %2895 = vpow2.f32 %v2620_v10  ;;  %v2159_v39 = vor.u32 1.1754944e-38, %v2158_v31  ;;  %vm2157_vm4 = vcmp.eq.f32.partialorder %v2156_v20, 8.507059e+37 }
0x1149   :  { %v2174_v62 = vor.u32 1.1754944e-38, %v2173_v59  ;;  %vm2172_vm8 = vcmp.eq.f32.partialorder %v2171_v57, 8.507059e+37 }
0x114b   :  { %924 = vrot.lane.b32.xlu2 %v3288_v55, %s2971_s2  ;;  %709 = vrot.lane.b32.xlu0 %v3228_v15, %s2971_s2 }
0x114c   :  { %v2892_v4 = vpop.eup %2891 }
0x114d   :  { %v2148_v55 = vmul.f32 %v2892_v4, %v2145_v7  ;;  %v2894_v24 = vpop.eup %2893  ;;  %vm2153_vm1 = vweird.f32 %v2892_v4 }
0x114e   :  { %v2163_v41 = vmul.f32 %v2894_v24, %v2146_v8  ;;  %vm2154_vm3 = vmor %vm2152_vm2, %vm2153_vm1  ;;  %vm2168_vm5 = vweird.f32 %v2894_v24 }
0x114f   :  { %v2149_v15 = vsub.f32 1.0, %v2148_v55  ;;  %vm2169_vm7 = vmor %vm2167_vm6, %vm2168_vm5 }
0x1151   :  { %v2150_v18 = vmul.f32 %v2892_v4, %v2149_v15 }
0x1153   :  { %937 = vrot.lane.b32.xlu2 %v3296_v11, %s2971_s2  ;;  %939 = vrot.lane.b32.xlu0 %v3298_v13, %s2971_s2  ;;  %v2896_v11 = vpop.eup %2895  ;;  %v2151_v22 = vadd.f32 %v2892_v4, %v2150_v18  ;;  %v2164_v13 = vsub.f32 1.0, %v2163_v41 }
0x1154   :  { %v2219_v51 = vadd.f32 1.0, %v2896_v11 }
0x1155   :  { %v2155_v50 = vsel %vm2154_vm3, %v2892_v4, %v2151_v22  ;;  %v2165_v45 = vmul.f32 %v2894_v24, %v2164_v13 }
0x1156   :  { %2897 = vrcp.f32 %v2219_v51  ;;  %v3703_v54 = vsel %vm2157_vm4, %v2159_v39, %v2155_v50  ;;  %v2232_v33 = vand.u32 2147483648, %v2219_v51  ;;  %vm2226_vm11 = vweird.f32 %v2219_v51 }
0x1157   :  { %v2166_v29 = vadd.f32 %v2894_v24, %v2165_v45  ;;  %2899 = vpow2.f32 %v2621_v56  ;;  %v2230_v6 = vand.u32 2147483647, %v2219_v51 }
0x1158   :  { %v2233_v8 = vor.u32 1.1754944e-38, %v2232_v33 }
0x1159   :  { %v2170_v48 = vsel %vm2169_vm7, %v2894_v24, %v2166_v29  ;;  %vm2231_vm13 = vcmp.eq.f32.partialorder %v2230_v6, 8.507059e+37 }
0x115a   :  { %v3707_v35 = vsel %vm2172_vm8, %v2174_v62, %v2170_v48 }
0x115c   :  { %v2898_v37 = vpop.eup %2897 }
0x115d   :  { %v2222_v2 = vmul.f32 %v2898_v37, %v2219_v51  ;;  %vm2227_vm10 = vweird.f32 %v2898_v37  ;;  %v2900_v17 = vpop.eup %2899 }
0x115e   :  { %vm2228_vm12 = vmor %vm2226_vm11, %vm2227_vm10 }
0x115f   :  { %v2223_v43 = vsub.f32 1.0, %v2222_v2 }
0x1161   :  { %v2224_v16 = vmul.f32 %v2898_v37, %v2223_v43 }
0x1163   :  { %v2225_v30 = vadd.f32 %v2898_v37, %v2224_v16 }
0x1165   :  { %v2229_v3 = vsel %vm2228_vm12, %v2898_v37, %v2225_v30 }
0x1166   :  { %v3723_v55 = vsel %vm2231_vm13, %v2233_v8, %v2229_v3 }
0x1167   :  { %v2253_v39 = vmul.f32 %v3723_v55, %v3649_v19 }
0x1179   :  { %v2184_v47 = vpop.permute.xlu0 %2183 }
0x117a   :  { %v2189_v28 = vmul.f32 %v2184_v47, %v3703_v54 }
0x117c   :  { %2193 = vrot.lane.b32.xlu0 %v2189_v28, %s2971_s2 }
0x1181   :  { %v2186_v27 = vpop.permute.xlu1 %2185 }
0x1182   :  { %v2190_v60 = vmul.f32 %v2186_v27, %v3707_v35 }
0x1184   :  { %2195 = vrot.lane.b32.xlu1 %v2190_v60, %s2971_s2 }
0x1189   :  { %v697_v12 = vpop.permute.xlu1 %696 }
0x118a   :  { %703 = vst.msk [vmem:[%s3944_s7] sm:$0xf] %vm702_vm9, %v697_v12 }
0x118c   :  { %1152 = vrot.lane.b32.xlu1 %v3356_v32, %s2971_s2  ;;  %v2220_v32 = vadd.f32 1.0, %v2900_v17 }
0x118e   :  { %2901 = vrcp.f32 %v2220_v32  ;;  %vm2241_vm15 = vweird.f32 %v2220_v32  ;;  %v2245_v13 = vand.u32 2147483647, %v2220_v32 }
0x1190   :  { %vm2246_vm2 = vcmp.eq.f32.partialorder %v2245_v13, 8.507059e+37 }
0x1191   :  { %v712_v7 = vpop.permute.xlu1 %711 }
0x1192   :  { %2555 = vst.msk [vmem:[%s3945_s8 + $0x3c] sm:$0xf] %vm702_vm9, %v712_v7 }
0x1194   :  { %1167 = vrot.lane.b32.xlu1 %v3366_v63, %s2971_s2  ;;  %v2902_v24 = vpop.eup %2901 }
0x1195   :  { %v2258_v4 = vpop.permute.xlu2 %2257  ;;  %v2237_v18 = vmul.f32 %v2902_v24, %v2220_v32  ;;  %vm2242_vm14 = vweird.f32 %v2902_v24 }
0x1196   :  { %v2263_v10 = vmul.f32 %v2258_v4, %v3723_v55  ;;  %vm2243_vm1 = vmor %vm2241_vm15, %vm2242_vm14 }
0x1198   :  { %2267 = vrot.lane.b32.xlu2 %v2263_v10, %s2971_s2 }
0x1199   :  { %v927_v15 = vpop.permute.xlu1 %926 }
0x119a   :  { %2563 = vst.msk [vmem:[%s3944_s7 + $0xc] sm:$0xf] %vm702_vm9, %v927_v15 }
0x119c   :  { %1393 = vrot.lane.b32.xlu1 %v3462_v9, %s2971_s2  ;;  %v2238_v9 = vsub.f32 1.0, %v2237_v18 }
0x119d   :  { %v699_v63 = vpop.permute.xlu2 %698 }
0x119e   :  { %704 = vst.msk [vmem:[%s3944_s7 + $0x4] sm:$0xf] %vm702_vm9, %v699_v63  ;;  %v2239_v11 = vmul.f32 %v2902_v24, %v2238_v9 }
0x11a0   :  { %1154 = vrot.lane.b32.xlu2 %v3359_v58, %s2971_s2  ;;  %v2240_v58 = vadd.f32 %v2902_v24, %v2239_v11 }
0x11a2   :  { %v2244_v31 = vsel %vm2243_vm1, %v2902_v24, %v2240_v58 }
0x11a4   :  { %1623 = vrot.lane.b32.xlu1 %v3532_v52, %s2971_s2  ;;  %v2247_v52 = vand.u32 2147483648, %v2220_v32 }
0x11a5   :  { %v925_v41 = vpop.permute.xlu2 %924 }
0x11a6   :  { %2562 = vst.msk [vmem:[%s3944_s7 + $0x8] sm:$0xf] %vm702_vm9, %v925_v41  ;;  %v2248_v20 = vor.u32 1.1754944e-38, %v2247_v52 }
0x11a8   :  { %1380 = vrot.lane.b32.xlu2 %v3454_v53, %s2971_s2  ;;  %v3753_v53 = vsel %vm2246_vm2, %v2248_v20, %v2244_v31 }
0x11ad   :  { %v938_v22 = vpop.permute.xlu2 %937 }
0x11ae   :  { %2564 = vst.msk [vmem:[%s3945_s8 + $0x30] sm:$0xf] %vm702_vm9, %v938_v22 }
0x11b0   :  { %1395 = vrot.lane.b32.xlu2 %v3464_v21, %s2971_s2 }
0x11b5   :  { %v2260_v51 = vpop.permute.xlu0 %2259 }
0x11b6   :  { %v2264_v50 = vmul.f32 %v2260_v51, %v3753_v53 }
0x11b8   :  { %1610 = vrot.lane.b32.xlu2 %v3525_v44, %s2971_s2  ;;  %2269 = vrot.lane.b32.xlu0 %v2264_v50, %s2971_s2 }
0x11bd   :  { %v710_v45 = vpop.permute.xlu0 %709 }
0x11be   :  { %2554 = vst.msk [vmem:[%s3945_s8 + $0x38] sm:$0xf] %vm702_vm9, %v710_v45 }
0x11c0   :  { %1836 = vrot.lane.b32.xlu2 %v3590_v5, %s2971_s2  ;;  %1165 = vrot.lane.b32.xlu0 %v3364_v61, %s2971_s2  ;;  %v2179_v61 = vmul.f32 %v3703_v54, %v3633_v40 }
0x11c5   :  { %v940_v21 = vpop.permute.xlu0 %939 }
0x11c6   :  { %2565 = vst.msk [vmem:[%s3945_s8 + $0x34] sm:$0xf] %vm702_vm9, %v940_v21 }
0x11c8   :  { %1382 = vrot.lane.b32.xlu0 %v3457_v34, %s2971_s2 }
0x11d0   :  { %1608 = vrot.lane.b32.xlu0 %v3522_v14, %s2971_s2  ;;  %v2180_v14 = vmul.f32 %v3707_v35, %v3638_v1 }
0x11d8   :  { %1621 = vrot.lane.b32.xlu0 %v3530_v23, %s2971_s2 }
0x11e0   :  { %1838 = vrot.lane.b32.xlu0 %v3593_v36, %s2971_s2 }
0x11ee   :  { %v2194_v44 = vpop.permute.xlu0 %2193 }
0x11ef   :  { %v2199_v5 = vadd.f32 %v2194_v44, %v2179_v61 }
0x11f1   :  { %2903 = vtanh.f32 %v2199_v5 }
0x11f2   :  { %v2268_v47 = vpop.permute.xlu2 %2267 }
0x11f3   :  { %v2273_v34 = vadd.f32 %v2268_v47, %v2253_v39 }
0x11f5   :  { %2905 = vtanh.f32 %v2273_v34 }
0x11f6   :  { %v2196_v28 = vpop.permute.xlu1 %2195 }
0x11f7   :  { %v2904_v23 = vpop.eup %2903  ;;  %v2200_v29 = vadd.f32 %v2196_v28, %v2180_v14 }
0x11f8   :  { %2205 = vrot.lane.b32.xlu1 %v2904_v23, %s2972_s1 }
0x11f9   :  { %2907 = vtanh.f32 %v2200_v29 }
0x11fa   :  { %v1155_v36 = vpop.permute.xlu2 %1154 }
0x11fb   :  { %v2906_v40 = vpop.eup %2905  ;;  %2573 = vst.msk [vmem:[%s3944_s7 + $0x14] sm:$0xf] %vm702_vm9, %v1155_v36 }
0x11fc   :  { %2279 = vrot.lane.b32.xlu0 %v2906_v40, %s2972_s1 }
0x11fe   :  { %v1153_v19 = vpop.permute.xlu1 %1152 }
0x11ff   :  { %v2908_v59 = vpop.eup %2907  ;;  %2572 = vst.msk [vmem:[%s3944_s7 + $0x10] sm:$0xf] %vm702_vm9, %v1153_v19 }
0x1200   :  { %2207 = vrot.lane.b32.xlu2 %v2908_v59, %s2972_s1 }
0x1202   :  { %v1381_v1 = vpop.permute.xlu2 %1380 }
0x1203   :  { %2582 = vst.msk [vmem:[%s3944_s7 + $0x18] sm:$0xf] %vm702_vm9, %v1381_v1 }
0x1204   :  { %2064 = vrot.lane.b32.xlu0 %v3654_v38, %s2971_s2 }
0x1206   :  { %v1168_v57 = vpop.permute.xlu1 %1167 }
0x1207   :  { %2575 = vst.msk [vmem:[%s3945_s8 + $0x2c] sm:$0xf] %vm702_vm9, %v1168_v57 }
0x1208   :  { %1851 = vrot.lane.b32.xlu2 %v3600_v46, %s2971_s2 }
0x120a   :  { %v1396_v48 = vpop.permute.xlu2 %1395 }
0x120b   :  { %2585 = vst.msk [vmem:[%s3945_s8 + $0x24] sm:$0xf] %vm702_vm9, %v1396_v48 }
0x120c   :  { %2326 = vrot.lane.b32.xlu0 %v2200_v29, %s2973_s26 }
0x120e   :  { %v1394_v37 = vpop.permute.xlu1 %1393 }
0x120f   :  { %2584 = vst.msk [vmem:[%s3945_s8 + $0x20] sm:$0xf] %vm702_vm9, %v1394_v37 }
0x1210   :  { %2077 = vrot.lane.b32.xlu2 %v3662_v26, %s2971_s2  ;;  %v2254_v26 = vmul.f32 %v3753_v53, %v3644_v42 }
0x1212   :  { %v1611_v38 = vpop.permute.xlu2 %1610 }
0x1213   :  { %2593 = vst.msk [vmem:[%s3944_s7 + $0x24] sm:$0xf] %vm702_vm9, %v1611_v38 }
0x1214   :  { %2344 = vrot.lane.b32.xlu0 %v2273_v34, %s2973_s26 }
0x1216   :  { %v1624_v46 = vpop.permute.xlu1 %1623 }
0x1217   :  { %2595 = vst.msk [vmem:[%s3945_s8 + $0x1c] sm:$0xf] %vm702_vm9, %v1624_v46 }
0x1218   :  { %2324 = vrot.lane.b32.xlu2 %v2199_v5, %s2973_s26 }
0x121a   :  { %v1837_v62 = vpop.permute.xlu2 %1836 }
0x121b   :  { %2602 = vst.msk [vmem:[%s3944_s7 + $0x28] sm:$0xf] %vm702_vm9, %v1837_v62 }
0x1220   :  { %2079 = vrot.lane.b32.xlu2 %v3664_v25, %s2971_s2 }
0x122a   :  { %v2270_v27 = vpop.permute.xlu0 %2269 }
0x122b   :  { %v2274_v60 = vadd.f32 %v2270_v27, %v2254_v26 }
0x122d   :  { %2909 = vtanh.f32 %v2274_v60 }
0x1232   :  { %v1166_v2 = vpop.permute.xlu0 %1165 }
0x1233   :  { %v2910_v43 = vpop.eup %2909  ;;  %2574 = vst.msk [vmem:[%s3945_s8 + $0x28] sm:$0xf] %vm702_vm9, %v1166_v2 }
0x1234   :  { %2281 = vrot.lane.b32.xlu1 %v2910_v43, %s2972_s1  ;;  %s2381_s1 = sshll.u32 %s2977_s18, 4  ;;  %s2382_s1 = int_to_ptr.vmem [resolvable:$true] %s2381_s1 }
0x123a   :  { %v1383_v56 = vpop.permute.xlu0 %1382 }
0x123b   :  { %2583 = vst.msk [vmem:[%s3944_s7 + $0x1c] sm:$0xf] %vm702_vm9, %v1383_v56 }
0x123c   :  { %1849 = vrot.lane.b32.xlu1 %v3598_v49, %s2971_s2 }
0x1242   :  { %v1609_v42 = vpop.permute.xlu0 %1608 }
0x1243   :  { %2592 = vst.msk [vmem:[%s3944_s7 + $0x20] sm:$0xf] %vm702_vm9, %v1609_v42 }
0x1244   :  { %2066 = vrot.lane.b32.xlu1 %v3657_v0, %s2971_s2 }
0x124a   :  { %v1622_v25 = vpop.permute.xlu0 %1621 }
0x124b   :  { %2594 = vst.msk [vmem:[%s3945_s8 + $0x18] sm:$0xf] %vm702_vm9, %v1622_v25 }
0x124c   :  { %2346 = vrot.lane.b32.xlu1 %v2274_v60, %s2973_s26 }
0x1252   :  { %v1839_v12 = vpop.permute.xlu0 %1838 }
0x1253   :  { %2603 = vst.msk [vmem:[%s3944_s7 + $0x2c] sm:$0xf] %vm702_vm9, %v1839_v12 }
0x125a   :  { %v2208_v49 = vpop.permute.xlu2 %2207 }
0x125b   :  { %v2212_v16 = vmul.f32 %v2208_v49, %v3707_v35 }
0x125d   :  { %2316 = vrot.lane.b32.xlu1 %v2212_v16, %s2971_s2  ;;  %v2288_v8 = vpack.c.bf16 %v2212_v16, %v2212_v16 }
0x1262   :  { %v1852_v0 = vpop.permute.xlu2 %1851 }
0x1263   :  { %2605 = vst.msk [vmem:[%s3945_s8 + $0x14] sm:$0xf] %vm702_vm9, %v1852_v0 }
0x126a   :  { %v2206_v30 = vpop.permute.xlu1 %2205  ;;  %v2078_v33 = vpop.permute.xlu2 %2077 }
0x126b   :  { %v2211_v6 = vmul.f32 %v2206_v30, %v3703_v54  ;;  %2614 = vst.msk [vmem:[%s3945_s8 + $0x8] sm:$0xf] %vm702_vm9, %v2078_v33 }
0x126d   :  { %2314 = vrot.lane.b32.xlu0 %v2211_v6, %s2971_s2  ;;  %v2287_v3 = vpack.c.bf16 %v2211_v6, %v2211_v6 }
0x126e   :  { %v2280_v35 = vpop.permute.xlu0 %2279 }
0x126f   :  { %v2285_v7 = vmul.f32 %v2280_v35, %v3723_v55 }
0x1271   :  { %2334 = vrot.lane.b32.xlu1 %v2285_v7, %s2971_s2  ;;  %v2300_v18 = vpack.c.bf16 %v2285_v7, %v2285_v7 }
0x1272   :  { %v2325_v17 = vpop.permute.xlu2 %2324 }
0x1273   :  { %2330 = vst.msk [vmem:[#allocation3] sm:$0xff] %vm77_vm0, %v2325_v17 }
0x1274   :  { %2360 = vst.msk [vmem:[#allocation8] sm:$0xff] %vm77_vm0, %v2325_v17 }
0x1275   :  { %2291 = vrot.lane.b32.xlu0 %v2287_v3, %s2971_s2 }
0x1276   :  { %v2065_v54 = vpop.permute.xlu0 %2064 }
0x1277   :  { %2612 = vst.msk [vmem:[%s3944_s7 + $0x30] sm:$0xf] %vm702_vm9, %v2065_v54 }
0x1279   :  { %2293 = vrot.lane.b32.xlu1 %v2288_v8, %s2971_s2 }
0x127a   :  { %v2080_v32 = vpop.permute.xlu2 %2079 }
0x127b   :  { %2615 = vst.msk [vmem:[%s3945_s8 + $0xc] sm:$0xf] %vm702_vm9, %v2080_v32 }
0x127e   :  { %v2327_v4 = vpop.permute.xlu0 %2326 }
0x127f   :  { %2331 = vst.msk [vmem:[#allocation3 + $0x8] sm:$0xff] %vm77_vm0, %v2327_v4 }
0x1280   :  { %2361 = vst.msk [vmem:[#allocation8 + $0x8] sm:$0xff] %vm77_vm0, %v2327_v4 }
0x1286   :  { %v2345_v55 = vpop.permute.xlu0 %2344 }
0x1287   :  { %2350 = vst.msk [vmem:[#allocation3 + $0x10] sm:$0xff] %vm77_vm0, %v2345_v55 }
0x1288   :  { %2363 = vst.msk [vmem:[#allocation8 + $0x10] sm:$0xff] %vm77_vm0, %v2345_v55 }
0x12a6   :  { %v2282_v10 = vpop.permute.xlu1 %2281 }
0x12a7   :  { %v2286_v15 = vmul.f32 %v2282_v10, %v3753_v53 }
0x12a9   :  { %v2301_v63 = vpack.c.bf16 %v2286_v15, %v2286_v15  ;;  %2336 = vrot.lane.b32.xlu2 %v2286_v15, %s2971_s2 }
0x12ab   :  { %2306 = vrot.lane.b32.xlu0 %v2301_v63, %s2971_s2 }
0x12ae   :  { %v1850_v24 = vpop.permute.xlu1 %1849 }
0x12af   :  { %2604 = vst.msk [vmem:[%s3945_s8 + $0x10] sm:$0xf] %vm702_vm9, %v1850_v24 }
0x12b1   :  { %2304 = vrot.lane.b32.xlu2 %v2300_v18, %s2971_s2  ;;  %s2975_s2 = smov 128  }
0x12b6   :  { %v2067_v41 = vpop.permute.xlu1 %2066 }
0x12b7   :  { %2613 = vst.msk [vmem:[%s3944_s7 + $0x34] sm:$0xf] %vm702_vm9, %v2067_v41 }
0x12be   :  { %v2347_v9 = vpop.permute.xlu1 %2346 }
0x12bf   :  { %2351 = vst.msk [vmem:[#allocation3 + $0x18] sm:$0xff] %vm77_vm0, %v2347_v9 }
0x12c0   :  { %2364 = vst.msk [vmem:[#allocation8 + $0x18] sm:$0xff] %vm77_vm0, %v2347_v9 }
0x12c1   :  { %2402 = dma.vmem_to_hbm [thread:$0]  %s2395_s11, 512, %s2397_s14, [#allocation9], %s2975_s2, %s2975_s2, %s2976_s5  }
0x12cf   :  { %v2317_v11 = vpop.permute.xlu1 %2316 }
0x12d0   :  { %2321 = vst.msk [vmem:[#allocation2 + $0x8] sm:$0xff] %vm77_vm0, %v2317_v11 }
0x12d1   :  { %2356 = vst.msk [vmem:[#allocation6 + $0x8] sm:$0xff] %vm77_vm0, %v2317_v11 }
0x12df   :  { %v2315_v22 = vpop.permute.xlu0 %2314 }
0x12e0   :  { %2320 = vst.msk [vmem:[#allocation2] sm:$0xff] %vm77_vm0, %v2315_v22 }
0x12e1   :  { %2355 = vst.msk [vmem:[#allocation6] sm:$0xff] %vm77_vm0, %v2315_v22 }
0x12e3   :  { %v2335_v58 = vpop.permute.xlu1 %2334 }
0x12e4   :  { %2340 = vst.msk [vmem:[#allocation2 + $0x10] sm:$0xff] %vm77_vm0, %v2335_v58 }
0x12e5   :  { %2358 = vst.msk [vmem:[#allocation6 + $0x10] sm:$0xff] %vm77_vm0, %v2335_v58 }
0x12e7   :  { %v2292_v52 = vpop.permute.xlu0 %2291 }
0x12e8   :  { %2622 = vst.msk [vmem:[%s3944_s7 + $0x38] sm:$0xf] %vm702_vm9, %v2292_v52 }
0x12eb   :  { %v2294_v13 = vpop.permute.xlu1 %2293 }
0x12ec   :  { %2623 = vst.msk [vmem:[%s3944_s7 + $0x3c] sm:$0xf] %vm702_vm9, %v2294_v13 }
0x1303   :  { %v2337_v31 = vpop.permute.xlu2 %2336 }
0x1304   :  { %2341 = vst.msk [vmem:[#allocation2 + $0x18] sm:$0xff] %vm77_vm0, %v2337_v31 }
0x1305   :  { %2359 = vst.msk [vmem:[#allocation6 + $0x18] sm:$0xff] %vm77_vm0, %v2337_v31 }
0x1306   :  { %2389 = dma.vmem_to_hbm [thread:$0]  %s2382_s1, 512, %s2384_s3, [#allocation7], %s2975_s2, %s2975_s2, %s2976_s5  }
0x130b   :  { %v2305_v20 = vpop.permute.xlu2 %2304 }
0x130c   :  { %2310 = vst.msk [vmem:[%s3945_s8] sm:$0xf] %vm702_vm9, %v2305_v20 }
0x131d   :  { %v2307_v53 = vpop.permute.xlu0 %2306 }
0x131e   :  { %2311 = vst.msk [vmem:[%s3945_s8 + $0x4] sm:$0xf] %vm702_vm9, %v2307_v53 }
0x131f   :  { %2967 = dma.done.wait [#allocation7], 512  }
0x1320   :  { %2968 = vsyncadd [#allocation7], 4294966784 }
0x1321   :  { %2969 = dma.done.wait [#allocation9], 512  }
0x1322   :  { %2970 = vsyncadd [#allocation9], 4294966784 }
0x1323   :  { %2421 = vsyncpa [#allocation7], 1 }
0x1324   :  { %2422 = vsyncpa [#allocation9], 1 }

</bundles_post_ra>
